<compile_context>
chip_gen: v7x
topology: tpu7x:2x2x1
jax: 0.10.0
libtpu: 0.0.40
codegen_flags: <defaults>
</compile_context>

<pallas_src>
import functools

import jax
import jax.numpy as jnp
from jax.experimental import pallas as pl
from jax.experimental.pallas import tpu as pltpu

LN_EPS = 1e-5


def _round_up(a, b):
    return ((a + b - 1) // b) * b


def _layer_norm(x, gamma, beta):
    mu = jnp.mean(x, axis=-1, keepdims=True)
    xc = x - mu
    var = jnp.mean(xc * xc, axis=-1, keepdims=True)
    inv = jax.lax.rsqrt(var + LN_EPS)
    return xc * inv * gamma + beta


# --------------------------------------------------------------------------
# Kernel
# --------------------------------------------------------------------------
def gradient_processor_kernel(
    x_ref,
    wf_ref, bf_ref, g1_ref, be1_ref,
    w2_ref, b2_ref, g2_ref, be2_ref,
    w3_ref, b3_ref,
    ws2_ref, bs2_ref, wc2_ref, bc2_ref,
    out_ref,
    *, hidden_dim,
):
    H = hidden_dim
    # In-kernel cast: x arrives f32 from HBM, bf16 only as an MXU operand.
    xb = x_ref[...].astype(jnp.bfloat16)  # (TM, D)

    # ---- fused first layer: [w1 | ws1 | wc1] packed into one lane-dense
    #      (D, 128) weight -> single MXU pass, f32 accumulation ----
    fused = (
        jnp.dot(xb, wf_ref[...], preferred_element_type=jnp.float32) + bf_ref[...]
    )  # (TM, 128) f32; cols [0:H]=h1, [H:H+H//2]=s1, [H+H//2:H+3H//4]=c1, rest 0

    # ---- grad_transform branch: LN over exactly the H real h1 lanes ----
    h = _layer_norm(fused[:, :H], g1_ref[...], be1_ref[...])
    h = jnp.maximum(h, 0.0)
    # TODO(synk): training-mode Dropout(0.1) omitted (eval/identity semantics).
    h = (
        jnp.dot(h.astype(jnp.bfloat16), w2_ref[...],
                preferred_element_type=jnp.float32)
        + b2_ref[...]
    )
    h = _layer_norm(h, g2_ref[...], be2_ref[...])
    h = jnp.maximum(h, 0.0)
    transformed = (
        jnp.dot(h.astype(jnp.bfloat16), w3_ref[...],
                preferred_element_type=jnp.float32)
        + b3_ref[...]
    )  # (TM, D) f32

    # ---- grad_scale & clip_predictor: width-1 heads as VPU mul + lane sums
    #      (MXU has slack but VPU/XLU are not the binding slot here; the
    #      padded weight rows are zero outside their branch's lanes). ----
    relu_f = jnp.maximum(fused, 0.0)
    s2 = jnp.sum(relu_f * ws2_ref[...], axis=-1, keepdims=True) + bs2_ref[...]
    scale = jax.nn.sigmoid(s2)                      # (TM, 1)
    c2 = jnp.sum(relu_f * wc2_ref[...], axis=-1, keepdims=True) + bc2_ref[...]
    clip_thresh = jax.nn.sigmoid(c2) * 10.0         # (TM, 1)

    # ---- scale + norm-based clipping: single rsqrt on the EUP ----
    scaled = transformed * scale
    sumsq = jnp.sum(scaled * scaled, axis=-1, keepdims=True)
    clip_factor = jnp.minimum(clip_thresh * jax.lax.rsqrt(sumsq + 1e-16), 1.0)
    out_ref[...] = scaled * clip_factor


# --------------------------------------------------------------------------
# Parameter handling
# --------------------------------------------------------------------------
def init_params(key, input_dim, hidden_dim):
    """Deterministic synthetic parameter init (uniform, PyTorch-Linear-like fan-in).

    Weights are stored (in, out). PyTorch nn.Linear weights are (out, in): a
    real import must transpose them before calling prepare_params().
    """
    def lin(k, fan_in, fan_out):
        kw, kb = jax.random.split(k)
        bound = 1.0 / jnp.sqrt(fan_in)
        w = jax.random.uniform(kw, (fan_in, fan_out), jnp.float32, -bound, bound)
        b = jax.random.uniform(kb, (1, fan_out), jnp.float32, -bound, bound)
        return w, b

    keys = jax.random.split(key, 7)
    D, H = input_dim, hidden_dim
    p = {}
    p["w1"], p["b1"] = lin(keys[0], D, H)
    p["g1"], p["be1"] = jnp.ones((1, H), jnp.float32), jnp.zeros((1, H), jnp.float32)
    p["w2"], p["b2"] = lin(keys[1], H, H)
    p["g2"], p["be2"] = jnp.ones((1, H), jnp.float32), jnp.zeros((1, H), jnp.float32)
    p["w3"], p["b3"] = lin(keys[2], H, D)
    p["ws1"], p["bs1"] = lin(keys[3], D, H // 2)
    p["ws2"], p["bs2"] = lin(keys[4], H // 2, 1)
    p["wc1"], p["bc1"] = lin(keys[5], D, H // 4)
    p["wc2"], p["bc2"] = lin(keys[6], H // 4, 1)
    return p


def prepare_params(params):
    """One-time packing of kernel-ready parameters (done at load time, not per call).

    Packs [w1 | ws1 | wc1] into one lane-dense (D, 128) bf16 weight, pads the
    width-1 head weights to the fused width, and casts matmul weights to bf16.
    """
    D, H = params["w1"].shape
    Hs, Hc = H // 2, H // 4
    FW = _round_up(H + Hs + Hc, 128)          # fused first-layer width (lane-dense)

    wf = jnp.zeros((D, FW), jnp.float32)
    wf = wf.at[:, :H].set(params["w1"])
    wf = wf.at[:, H:H + Hs].set(params["ws1"])
    wf = wf.at[:, H + Hs:H + Hs + Hc].set(params["wc1"])
    bf = jnp.zeros((1, FW), jnp.float32)
    bf = bf.at[:, :H].set(params["b1"])
    bf = bf.at[:, H:H + Hs].set(params["bs1"])
    bf = bf.at[:, H + Hs:H + Hs + Hc].set(params["bc1"])
    ws2p = jnp.zeros((1, FW), jnp.float32).at[:, H:H + Hs].set(
        params["ws2"].reshape(1, Hs))
    wc2p = jnp.zeros((1, FW), jnp.float32).at[:, H + Hs:H + Hs + Hc].set(
        params["wc2"].reshape(1, Hc))

    return {
        "wf": wf.astype(jnp.bfloat16), "bf": bf,
        "g1": params["g1"], "be1": params["be1"],
        "w2": params["w2"].astype(jnp.bfloat16), "b2": params["b2"],
        "g2": params["g2"], "be2": params["be2"],
        "w3": params["w3"].astype(jnp.bfloat16), "b3": params["b3"],
        "ws2": ws2p, "bs2": params["bs2"],
        "wc2": wc2p, "bc2": params["bc2"],
    }


_PARAM_ORDER = ("wf", "bf", "g1", "be1", "w2", "b2", "g2", "be2",
                "w3", "b3", "ws2", "bs2", "wc2", "bc2")


def _pick_row_tile(n_rows, row_tile):
    """Row tile: multiple of 8 (sublane), capped by row_tile (VMEM budget on
    v7x), and arranged so the parallel grid has an even number of steps >= 2
    (keeps both v7x TensorCores busy; harmless on v5e/v6e)."""
    if n_rows <= 16:
        return n_rows                       # single full-array block
    tm = max(8, (min(row_tile, n_rows) // 8) * 8)
    steps = pl.cdiv(n_rows, tm)
    if steps < 2 or steps % 2 == 1:
        steps = max(2, steps + (steps % 2))
        tm = max(8, _round_up(pl.cdiv(n_rows, steps), 8))
    return tm


# --------------------------------------------------------------------------
# Wrapper
# --------------------------------------------------------------------------
@functools.partial(jax.jit, static_argnames=("row_tile", "donate_input"))
def gradient_processor(gradients, prepared, row_tile=1024, donate_input=False):
    """gradients: (B, S, D) float32 -> (B, S, D) float32.

    `prepared` = prepare_params(params). The task_context branch of the
    PyTorch forward is a no-op on the output, so it is omitted.
    Set donate_input=True only when the caller donates `gradients`.
    """
    B, S, D = gradients.shape
    H = prepared["g1"].shape[1]
    N = B * S

    flat = gradients.reshape(N, D)            # stays f32; kernel casts to bf16
    TM = _pick_row_tile(N, row_tile)
    grid = (pl.cdiv(N, TM),)                  # ragged last block is fine: rows
                                              # are independent, OOB writes dropped

    param_vals = [prepared[k] for k in _PARAM_ORDER]

    # Full-array blocks for the (small) parameters; only rows are tiled.
    def full_spec(a):
        nd = a.ndim
        return pl.BlockSpec(a.shape, lambda i, _nd=nd: (0,) * _nd)

    in_specs = [pl.BlockSpec((TM, D), lambda i: (i, 0))] + [
        full_spec(a) for a in param_vals
    ]
    out_spec = pl.BlockSpec((TM, D), lambda i: (i, 0))

    kernel = functools.partial(gradient_processor_kernel, hidden_dim=H)

    out = pl.pallas_call(
        kernel,
        out_shape=jax.ShapeDtypeStruct((N, D), jnp.float32),
        grid=grid,
        in_specs=in_specs,
        out_specs=out_spec,
        input_output_aliases=({0: 0} if donate_input else {}),
        compiler_params=pltpu.CompilerParams(
            dimension_semantics=("parallel",)
        ),
    )(flat, *param_vals)
    return out.reshape(B, S, D)


# --------------------------------------------------------------------------
# Pure-JAX reference (mirrors the PyTorch forward, eval-mode dropout)
# --------------------------------------------------------------------------
def gradient_processor_ref(gradients, params):
    B, S, D = gradients.shape
    x = gradients.reshape(-1, D)
    h = jnp.maximum(_layer_norm(x @ params["w1"] + params["b1"],
                                params["g1"], params["be1"]), 0.0)
    h = jnp.maximum(_layer_norm(h @ params["w2"] + params["b2"],
                                params["g2"], params["be2"]), 0.0)
    t = h @ params["w3"] + params["b3"]
    s = jax.nn.sigmoid(
        jnp.maximum(x @ params["ws1"] + params["bs1"], 0.0) @ params["ws2"]
        + params["bs2"])
    scaled = t * s
    c = jax.nn.sigmoid(
        jnp.maximum(x @ params["wc1"] + params["bc1"], 0.0) @ params["wc2"]
        + params["bc2"]) * 10.0
    n = jnp.linalg.norm(scaled, axis=-1, keepdims=True)
    f = jnp.minimum(c / (n + 1e-8), 1.0)
    return (scaled * f).reshape(B, S, D)


if __name__ == "__main__":
    # (batch, seq, grad_dim): N = 512 rows -> TM=256, grid=2, so the single
    # "parallel" axis can still split evenly across v7x's two TensorCores.
    B, S = 2, 256
    INPUT_DIM, HIDDEN_DIM = 128, 64

    key = jax.random.PRNGKey(0)
    k_params, k_x = jax.random.split(key)
    params = init_params(k_params, INPUT_DIM, HIDDEN_DIM)
    prepared = prepare_params(params)          # one-time packing / bf16 casts
    gradients = jax.random.normal(k_x, (B, S, INPUT_DIM), jnp.float32)

    out = gradient_processor(gradients, prepared)
    out = jax.block_until_ready(out)

    ref = gradient_processor_ref(gradients, params)
    assert out.shape == (B, S, INPUT_DIM)
    assert bool(jnp.all(jnp.isfinite(out)))
    # bf16 MXU operands vs f32 reference -> relaxed tolerance.
    assert jnp.allclose(out, ref, rtol=5e-2, atol=5e-2), "mismatch vs pure-JAX reference"

    print("KERNEL_OK")
</pallas_src>

<mosaic_0001>
module attributes {stable_mosaic.version = 11 : i64} {
  func.func @gradient_processor_kernel(%arg0: i32, %arg1: memref<256x128xf32, #tpu.memory_space<vmem>>, %arg2: memref<128x128xbf16, #tpu.memory_space<vmem>>, %arg3: memref<1x128xf32, #tpu.memory_space<vmem>>, %arg4: memref<1x64xf32, #tpu.memory_space<vmem>>, %arg5: memref<1x64xf32, #tpu.memory_space<vmem>>, %arg6: memref<64x64xbf16, #tpu.memory_space<vmem>>, %arg7: memref<1x64xf32, #tpu.memory_space<vmem>>, %arg8: memref<1x64xf32, #tpu.memory_space<vmem>>, %arg9: memref<1x64xf32, #tpu.memory_space<vmem>>, %arg10: memref<64x128xbf16, #tpu.memory_space<vmem>>, %arg11: memref<1x128xf32, #tpu.memory_space<vmem>>, %arg12: memref<1x128xf32, #tpu.memory_space<vmem>>, %arg13: memref<1x1xf32, #tpu.memory_space<vmem>>, %arg14: memref<1x128xf32, #tpu.memory_space<vmem>>, %arg15: memref<1x1xf32, #tpu.memory_space<vmem>>, %arg16: memref<256x128xf32, #tpu.memory_space<vmem>>) attributes {dimension_semantics = [#tpu.dimension_semantics<parallel>], iteration_bounds = array<i64: 2>, scalar_prefetch = 0 : i64, scratch_operands = 0 : i64, tpu.core_type = #tpu.core_type<tc>, window_params = [{transform_indices = @transform_0, window_bounds = array<i64: 256, 128>}, {pipeline_mode = #tpu.pipeline_mode<synchronous>, transform_indices = @transform_1, window_bounds = array<i64: 128, 128>}, {pipeline_mode = #tpu.pipeline_mode<synchronous>, transform_indices = @transform_2, window_bounds = array<i64: 1, 128>}, {pipeline_mode = #tpu.pipeline_mode<synchronous>, transform_indices = @transform_3, window_bounds = array<i64: 1, 64>}, {pipeline_mode = #tpu.pipeline_mode<synchronous>, transform_indices = @transform_4, window_bounds = array<i64: 1, 64>}, {pipeline_mode = #tpu.pipeline_mode<synchronous>, transform_indices = @transform_5, window_bounds = array<i64: 64, 64>}, {pipeline_mode = #tpu.pipeline_mode<synchronous>, transform_indices = @transform_6, window_bounds = array<i64: 1, 64>}, {pipeline_mode = #tpu.pipeline_mode<synchronous>, transform_indices = @transform_7, window_bounds = array<i64: 1, 64>}, {pipeline_mode = #tpu.pipeline_mode<synchronous>, transform_indices = @transform_8, window_bounds = array<i64: 1, 64>}, {pipeline_mode = #tpu.pipeline_mode<synchronous>, transform_indices = @transform_9, window_bounds = array<i64: 64, 128>}, {pipeline_mode = #tpu.pipeline_mode<synchronous>, transform_indices = @transform_10, window_bounds = array<i64: 1, 128>}, {pipeline_mode = #tpu.pipeline_mode<synchronous>, transform_indices = @transform_11, window_bounds = array<i64: 1, 128>}, {pipeline_mode = #tpu.pipeline_mode<synchronous>, transform_indices = @transform_12, window_bounds = array<i64: 1, 1>}, {pipeline_mode = #tpu.pipeline_mode<synchronous>, transform_indices = @transform_13, window_bounds = array<i64: 1, 128>}, {pipeline_mode = #tpu.pipeline_mode<synchronous>, transform_indices = @transform_14, window_bounds = array<i64: 1, 1>}, {transform_indices = @transform_15, window_bounds = array<i64: 256, 128>}]} {
    %c0 = arith.constant 0 : index
    %c0_0 = arith.constant 0 : index
    %0 = vector.load %arg1[%c0, %c0_0] : memref<256x128xf32, #tpu.memory_space<vmem>>, vector<256x128xf32>
    %1 = arith.truncf %0 : vector<256x128xf32> to vector<256x128xbf16>
    %c0_1 = arith.constant 0 : index
    %c0_2 = arith.constant 0 : index
    %2 = vector.load %arg2[%c0_1, %c0_2] : memref<128x128xbf16, #tpu.memory_space<vmem>>, vector<128x128xbf16>
    %cst = arith.constant dense<0.000000e+00> : vector<256x128xf32>
    %3 = tpu.matmul %1, %2, %cst {dimension_numbers = #tpu.dot_dimension_numbers<[1], [0], [0], [1], [0, 0, 1, 1], [], []>} : vector<256x128xbf16>, vector<128x128xbf16>, vector<256x128xf32> -> vector<256x128xf32>
    %c0_3 = arith.constant 0 : index
    %c0_4 = arith.constant 0 : index
    %4 = vector.load %arg3[%c0_3, %c0_4] : memref<1x128xf32, #tpu.memory_space<vmem>>, vector<1x128xf32>
    %5 = vector.broadcast %4 : vector<1x128xf32> to vector<256x128xf32>
    %6 = arith.addf %3, %5 : vector<256x128xf32>
    %7 = vector.extract_strided_slice %6 {offsets = [0, 0], sizes = [256, 64], strides = [1, 1]} : vector<256x128xf32> to vector<256x64xf32>
    %c0_5 = arith.constant 0 : index
    %c0_6 = arith.constant 0 : index
    %8 = vector.load %arg4[%c0_5, %c0_6] : memref<1x64xf32, #tpu.memory_space<vmem>>, vector<1x64xf32>
    %c0_7 = arith.constant 0 : index
    %c0_8 = arith.constant 0 : index
    %9 = vector.load %arg5[%c0_7, %c0_8] : memref<1x64xf32, #tpu.memory_space<vmem>>, vector<1x64xf32>
    %cst_9 = arith.constant dense<0.000000e+00> : vector<256xf32>
    %10 = vector.multi_reduction <add>, %7, %cst_9 [1] : vector<256x64xf32> to vector<256xf32>
    %11 = vector.shape_cast %10 : vector<256xf32> to vector<256x1xf32>
    %cst_10 = arith.constant 6.400000e+01 : f32
    %12 = vector.broadcast %cst_10 : f32 to vector<256x1xf32>
    %13 = arith.divf %11, %12 : vector<256x1xf32>
    %14 = vector.broadcast %13 : vector<256x1xf32> to vector<256x64xf32>
    %15 = arith.subf %7, %14 : vector<256x64xf32>
    %16 = arith.mulf %15, %15 : vector<256x64xf32>
    %cst_11 = arith.constant dense<0.000000e+00> : vector<256xf32>
    %17 = vector.multi_reduction <add>, %16, %cst_11 [1] : vector<256x64xf32> to vector<256xf32>
    %18 = vector.shape_cast %17 : vector<256xf32> to vector<256x1xf32>
    %cst_12 = arith.constant 6.400000e+01 : f32
    %19 = vector.broadcast %cst_12 : f32 to vector<256x1xf32>
    %20 = arith.divf %18, %19 : vector<256x1xf32>
    %cst_13 = arith.constant 9.99999974E-6 : f32
    %21 = vector.broadcast %cst_13 : f32 to vector<256x1xf32>
    %22 = arith.addf %20, %21 : vector<256x1xf32>
    %23 = math.rsqrt %22 : vector<256x1xf32>
    %24 = vector.broadcast %23 : vector<256x1xf32> to vector<256x64xf32>
    %25 = arith.mulf %15, %24 : vector<256x64xf32>
    %26 = vector.broadcast %8 : vector<1x64xf32> to vector<256x64xf32>
    %27 = arith.mulf %25, %26 : vector<256x64xf32>
    %28 = vector.broadcast %9 : vector<1x64xf32> to vector<256x64xf32>
    %29 = arith.addf %27, %28 : vector<256x64xf32>
    %cst_14 = arith.constant 0.000000e+00 : f32
    %30 = vector.broadcast %cst_14 : f32 to vector<256x64xf32>
    %31 = arith.maximumf %29, %30 : vector<256x64xf32>
    %32 = arith.truncf %31 : vector<256x64xf32> to vector<256x64xbf16>
    %c0_15 = arith.constant 0 : index
    %c0_16 = arith.constant 0 : index
    %33 = vector.load %arg6[%c0_15, %c0_16] : memref<64x64xbf16, #tpu.memory_space<vmem>>, vector<64x64xbf16>
    %cst_17 = arith.constant dense<0.000000e+00> : vector<256x64xf32>
    %34 = tpu.matmul %32, %33, %cst_17 {dimension_numbers = #tpu.dot_dimension_numbers<[1], [0], [0], [1], [0, 0, 1, 1], [], []>} : vector<256x64xbf16>, vector<64x64xbf16>, vector<256x64xf32> -> vector<256x64xf32>
    %c0_18 = arith.constant 0 : index
    %c0_19 = arith.constant 0 : index
    %35 = vector.load %arg7[%c0_18, %c0_19] : memref<1x64xf32, #tpu.memory_space<vmem>>, vector<1x64xf32>
    %36 = vector.broadcast %35 : vector<1x64xf32> to vector<256x64xf32>
    %37 = arith.addf %34, %36 : vector<256x64xf32>
    %c0_20 = arith.constant 0 : index
    %c0_21 = arith.constant 0 : index
    %38 = vector.load %arg8[%c0_20, %c0_21] : memref<1x64xf32, #tpu.memory_space<vmem>>, vector<1x64xf32>
    %c0_22 = arith.constant 0 : index
    %c0_23 = arith.constant 0 : index
    %39 = vector.load %arg9[%c0_22, %c0_23] : memref<1x64xf32, #tpu.memory_space<vmem>>, vector<1x64xf32>
    %cst_24 = arith.constant dense<0.000000e+00> : vector<256xf32>
    %40 = vector.multi_reduction <add>, %37, %cst_24 [1] : vector<256x64xf32> to vector<256xf32>
    %41 = vector.shape_cast %40 : vector<256xf32> to vector<256x1xf32>
    %cst_25 = arith.constant 6.400000e+01 : f32
    %42 = vector.broadcast %cst_25 : f32 to vector<256x1xf32>
    %43 = arith.divf %41, %42 : vector<256x1xf32>
    %44 = vector.broadcast %43 : vector<256x1xf32> to vector<256x64xf32>
    %45 = arith.subf %37, %44 : vector<256x64xf32>
    %46 = arith.mulf %45, %45 : vector<256x64xf32>
    %cst_26 = arith.constant dense<0.000000e+00> : vector<256xf32>
    %47 = vector.multi_reduction <add>, %46, %cst_26 [1] : vector<256x64xf32> to vector<256xf32>
    %48 = vector.shape_cast %47 : vector<256xf32> to vector<256x1xf32>
    %cst_27 = arith.constant 6.400000e+01 : f32
    %49 = vector.broadcast %cst_27 : f32 to vector<256x1xf32>
    %50 = arith.divf %48, %49 : vector<256x1xf32>
    %cst_28 = arith.constant 9.99999974E-6 : f32
    %51 = vector.broadcast %cst_28 : f32 to vector<256x1xf32>
    %52 = arith.addf %50, %51 : vector<256x1xf32>
    %53 = math.rsqrt %52 : vector<256x1xf32>
    %54 = vector.broadcast %53 : vector<256x1xf32> to vector<256x64xf32>
    %55 = arith.mulf %45, %54 : vector<256x64xf32>
    %56 = vector.broadcast %38 : vector<1x64xf32> to vector<256x64xf32>
    %57 = arith.mulf %55, %56 : vector<256x64xf32>
    %58 = vector.broadcast %39 : vector<1x64xf32> to vector<256x64xf32>
    %59 = arith.addf %57, %58 : vector<256x64xf32>
    %cst_29 = arith.constant 0.000000e+00 : f32
    %60 = vector.broadcast %cst_29 : f32 to vector<256x64xf32>
    %61 = arith.maximumf %59, %60 : vector<256x64xf32>
    %62 = arith.truncf %61 : vector<256x64xf32> to vector<256x64xbf16>
    %c0_30 = arith.constant 0 : index
    %c0_31 = arith.constant 0 : index
    %63 = vector.load %arg10[%c0_30, %c0_31] : memref<64x128xbf16, #tpu.memory_space<vmem>>, vector<64x128xbf16>
    %cst_32 = arith.constant dense<0.000000e+00> : vector<256x128xf32>
    %64 = tpu.matmul %62, %63, %cst_32 {dimension_numbers = #tpu.dot_dimension_numbers<[1], [0], [0], [1], [0, 0, 1, 1], [], []>} : vector<256x64xbf16>, vector<64x128xbf16>, vector<256x128xf32> -> vector<256x128xf32>
    %c0_33 = arith.constant 0 : index
    %c0_34 = arith.constant 0 : index
    %65 = vector.load %arg11[%c0_33, %c0_34] : memref<1x128xf32, #tpu.memory_space<vmem>>, vector<1x128xf32>
    %66 = vector.broadcast %65 : vector<1x128xf32> to vector<256x128xf32>
    %67 = arith.addf %64, %66 : vector<256x128xf32>
    %cst_35 = arith.constant 0.000000e+00 : f32
    %68 = vector.broadcast %cst_35 : f32 to vector<256x128xf32>
    %69 = arith.maximumf %6, %68 : vector<256x128xf32>
    %c0_36 = arith.constant 0 : index
    %c0_37 = arith.constant 0 : index
    %70 = vector.load %arg12[%c0_36, %c0_37] : memref<1x128xf32, #tpu.memory_space<vmem>>, vector<1x128xf32>
    %71 = vector.broadcast %70 : vector<1x128xf32> to vector<256x128xf32>
    %72 = arith.mulf %69, %71 : vector<256x128xf32>
    %cst_38 = arith.constant dense<0.000000e+00> : vector<256xf32>
    %73 = vector.multi_reduction <add>, %72, %cst_38 [1] : vector<256x128xf32> to vector<256xf32>
    %74 = vector.shape_cast %73 : vector<256xf32> to vector<256x1xf32>
    %c0_39 = arith.constant 0 : index
    %c0_40 = arith.constant 0 : index
    %75 = vector.load %arg13[%c0_39, %c0_40] : memref<1x1xf32, #tpu.memory_space<vmem>>, vector<1x1xf32>
    %76 = vector.broadcast %75 : vector<1x1xf32> to vector<256x1xf32>
    %77 = arith.addf %74, %76 : vector<256x1xf32>
    %78 = arith.negf %77 : vector<256x1xf32>
    %79 = math.exp %78 : vector<256x1xf32>
    %cst_41 = arith.constant 1.000000e+00 : f32
    %80 = vector.broadcast %cst_41 : f32 to vector<256x1xf32>
    %81 = arith.addf %80, %79 : vector<256x1xf32>
    %82 = arith.divf %80, %81 : vector<256x1xf32>
    %c0_42 = arith.constant 0 : index
    %c0_43 = arith.constant 0 : index
    %83 = vector.load %arg14[%c0_42, %c0_43] : memref<1x128xf32, #tpu.memory_space<vmem>>, vector<1x128xf32>
    %84 = vector.broadcast %83 : vector<1x128xf32> to vector<256x128xf32>
    %85 = arith.mulf %69, %84 : vector<256x128xf32>
    %cst_44 = arith.constant dense<0.000000e+00> : vector<256xf32>
    %86 = vector.multi_reduction <add>, %85, %cst_44 [1] : vector<256x128xf32> to vector<256xf32>
    %87 = vector.shape_cast %86 : vector<256xf32> to vector<256x1xf32>
    %c0_45 = arith.constant 0 : index
    %c0_46 = arith.constant 0 : index
    %88 = vector.load %arg15[%c0_45, %c0_46] : memref<1x1xf32, #tpu.memory_space<vmem>>, vector<1x1xf32>
    %89 = vector.broadcast %88 : vector<1x1xf32> to vector<256x1xf32>
    %90 = arith.addf %87, %89 : vector<256x1xf32>
    %91 = arith.negf %90 : vector<256x1xf32>
    %92 = math.exp %91 : vector<256x1xf32>
    %cst_47 = arith.constant 1.000000e+00 : f32
    %93 = vector.broadcast %cst_47 : f32 to vector<256x1xf32>
    %94 = arith.addf %93, %92 : vector<256x1xf32>
    %95 = arith.divf %93, %94 : vector<256x1xf32>
    %cst_48 = arith.constant 1.000000e+01 : f32
    %96 = vector.broadcast %cst_48 : f32 to vector<256x1xf32>
    %97 = arith.mulf %95, %96 : vector<256x1xf32>
    %98 = vector.broadcast %82 : vector<256x1xf32> to vector<256x128xf32>
    %99 = arith.mulf %67, %98 : vector<256x128xf32>
    %100 = arith.mulf %99, %99 : vector<256x128xf32>
    %cst_49 = arith.constant dense<0.000000e+00> : vector<256xf32>
    %101 = vector.multi_reduction <add>, %100, %cst_49 [1] : vector<256x128xf32> to vector<256xf32>
    %102 = vector.shape_cast %101 : vector<256xf32> to vector<256x1xf32>
    %cst_50 = arith.constant 1.000000e-16 : f32
    %103 = vector.broadcast %cst_50 : f32 to vector<256x1xf32>
    %104 = arith.addf %102, %103 : vector<256x1xf32>
    %105 = math.rsqrt %104 : vector<256x1xf32>
    %106 = arith.mulf %97, %105 : vector<256x1xf32>
    %cst_51 = arith.constant 1.000000e+00 : f32
    %107 = vector.broadcast %cst_51 : f32 to vector<256x1xf32>
    %108 = arith.minimumf %106, %107 : vector<256x1xf32>
    %109 = vector.broadcast %108 : vector<256x1xf32> to vector<256x128xf32>
    %110 = arith.mulf %99, %109 : vector<256x128xf32>
    %c0_52 = arith.constant 0 : index
    %c0_53 = arith.constant 0 : index
    %111 = vector.load %arg16[%c0_52, %c0_53] : memref<256x128xf32, #tpu.memory_space<vmem>>, vector<256x128xf32>
    tpu.vector_store %arg16[%c0_52, %c0_53], %110 {strides = array<i32>} : memref<256x128xf32, #tpu.memory_space<vmem>>, vector<256x128xf32>,
    return
  }
  func.func @transform_0(%arg0: i32) -> (i32, i32) {
    %c0_i32 = arith.constant 0 : i32
    %c0_i32_0 = arith.constant 0 : i32
    return %arg0, %c0_i32 : i32, i32
  }
  func.func @transform_1(%arg0: i32) -> (i32, i32) {
    %c0_i32 = arith.constant 0 : i32
    %c0_i32_0 = arith.constant 0 : i32
    %c0_i32_1 = arith.constant 0 : i32
    return %c0_i32, %c0_i32_0 : i32, i32
  }
  func.func @transform_2(%arg0: i32) -> (i32, i32) {
    %c0_i32 = arith.constant 0 : i32
    %c0_i32_0 = arith.constant 0 : i32
    %c0_i32_1 = arith.constant 0 : i32
    return %c0_i32, %c0_i32_0 : i32, i32
  }
  func.func @transform_3(%arg0: i32) -> (i32, i32) {
    %c0_i32 = arith.constant 0 : i32
    %c0_i32_0 = arith.constant 0 : i32
    %c0_i32_1 = arith.constant 0 : i32
    return %c0_i32, %c0_i32_0 : i32, i32
  }
  func.func @transform_4(%arg0: i32) -> (i32, i32) {
    %c0_i32 = arith.constant 0 : i32
    %c0_i32_0 = arith.constant 0 : i32
    %c0_i32_1 = arith.constant 0 : i32
    return %c0_i32, %c0_i32_0 : i32, i32
  }
  func.func @transform_5(%arg0: i32) -> (i32, i32) {
    %c0_i32 = arith.constant 0 : i32
    %c0_i32_0 = arith.constant 0 : i32
    %c0_i32_1 = arith.constant 0 : i32
    return %c0_i32, %c0_i32_0 : i32, i32
  }
  func.func @transform_6(%arg0: i32) -> (i32, i32) {
    %c0_i32 = arith.constant 0 : i32
    %c0_i32_0 = arith.constant 0 : i32
    %c0_i32_1 = arith.constant 0 : i32
    return %c0_i32, %c0_i32_0 : i32, i32
  }
  func.func @transform_7(%arg0: i32) -> (i32, i32) {
    %c0_i32 = arith.constant 0 : i32
    %c0_i32_0 = arith.constant 0 : i32
    %c0_i32_1 = arith.constant 0 : i32
    return %c0_i32, %c0_i32_0 : i32, i32
  }
  func.func @transform_8(%arg0: i32) -> (i32, i32) {
    %c0_i32 = arith.constant 0 : i32
    %c0_i32_0 = arith.constant 0 : i32
    %c0_i32_1 = arith.constant 0 : i32
    return %c0_i32, %c0_i32_0 : i32, i32
  }
  func.func @transform_9(%arg0: i32) -> (i32, i32) {
    %c0_i32 = arith.constant 0 : i32
    %c0_i32_0 = arith.constant 0 : i32
    %c0_i32_1 = arith.constant 0 : i32
    return %c0_i32, %c0_i32_0 : i32, i32
  }
  func.func @transform_10(%arg0: i32) -> (i32, i32) {
    %c0_i32 = arith.constant 0 : i32
    %c0_i32_0 = arith.constant 0 : i32
    %c0_i32_1 = arith.constant 0 : i32
    return %c0_i32, %c0_i32_0 : i32, i32
  }
  func.func @transform_11(%arg0: i32) -> (i32, i32) {
    %c0_i32 = arith.constant 0 : i32
    %c0_i32_0 = arith.constant 0 : i32
    %c0_i32_1 = arith.constant 0 : i32
    return %c0_i32, %c0_i32_0 : i32, i32
  }
  func.func @transform_12(%arg0: i32) -> (i32, i32) {
    %c0_i32 = arith.constant 0 : i32
    %c0_i32_0 = arith.constant 0 : i32
    %c0_i32_1 = arith.constant 0 : i32
    return %c0_i32, %c0_i32_0 : i32, i32
  }
  func.func @transform_13(%arg0: i32) -> (i32, i32) {
    %c0_i32 = arith.constant 0 : i32
    %c0_i32_0 = arith.constant 0 : i32
    %c0_i32_1 = arith.constant 0 : i32
    return %c0_i32, %c0_i32_0 : i32, i32
  }
  func.func @transform_14(%arg0: i32) -> (i32, i32) {
    %c0_i32 = arith.constant 0 : i32
    %c0_i32_0 = arith.constant 0 : i32
    %c0_i32_1 = arith.constant 0 : i32
    return %c0_i32, %c0_i32_0 : i32, i32
  }
  func.func @transform_15(%arg0: i32) -> (i32, i32) {
    %c0_i32 = arith.constant 0 : i32
    %c0_i32_0 = arith.constant 0 : i32
    return %arg0, %c0_i32 : i32, i32
  }
}

</mosaic_0001>

<bundles_post_ra>
// kernel: gradient_processor.1
= control target key start
LH: loop header
LB: loop body
LE: loop exit
PB: predicated region body
PF: predicated region fallthrough
CT: control target
= control target key end

     0   :  { %s7013_s0 = inlined_call_operand.hbm [shape: f32[512,128], index: 0, kind: input, shape index: {}]   ;;  %s7014_s1 = inlined_call_operand.hbm [shape: bf16[128,128], index: 1, kind: input, shape index: {}]   ;;  %s7015_s2 = inlined_call_operand.vmem [shape: f32[1,128], index: 2, kind: input, shape index: {}]   ;;  %s7016_s3 = inlined_call_operand.vmem [shape: f32[1,64], index: 3, kind: input, shape index: {}]   ;;  %s7017_s4 = inlined_call_operand.vmem [shape: f32[1,64], index: 4, kind: input, shape index: {}]   ;;  %s7018_s5 = inlined_call_operand.vmem [shape: bf16[64,64], index: 5, kind: input, shape index: {}]   ;;  %s7019_s6 = inlined_call_operand.vmem [shape: f32[1,64], index: 6, kind: input, shape index: {}]   ;;  %s7020_s7 = inlined_call_operand.vmem [shape: f32[1,64], index: 7, kind: input, shape index: {}]   ;;  %s7021_s8 = inlined_call_operand.vmem [shape: f32[1,64], index: 8, kind: input, shape index: {}]   ;;  %s7022_s9 = inlined_call_operand.hbm [shape: bf16[64,128], index: 9, kind: input, shape index: {}]   ;;  %s7023_s10 = inlined_call_operand.vmem [shape: f32[1,128], index: 10, kind: input, shape index: {}]   ;;  %s7024_s11 = inlined_call_operand.vmem [shape: f32[1,128], index: 11, kind: input, shape index: {}]   ;;  %s7025_s12 = inlined_call_operand.<no memory space> [shape: f32[1,1], index: 12, kind: input, shape index: {}]   ;;  %s7026_s13 = inlined_call_operand.vmem [shape: f32[1,128], index: 13, kind: input, shape index: {}]   ;;  %s7027_s15 = inlined_call_operand.hbm [shape: f32[512,128], index: 15, kind: output, shape index: {}]   ;;  %s7028_s14 = inlined_call_operand.<no memory space> [shape: f32[1,1], index: 14, kind: input, shape index: {}]  }
   0x1   :  { %7131 = sst [smem:[#allocation48_spill]] %s7021_s8  ;;  %v20_v0 = vstv %s7025_s12  ;;  %v22_v1 = vstv %s7028_s14 }
   0x2   :  { %7132 = sst [smem:[#allocation49_spill]] %s7023_s10  ;;  %21 = vst [vmem:[#allocation2] sm:$0x1] %v20_v0  ;;  %23 = vst [vmem:[#allocation3] sm:$0x1] %v22_v1 }
   0x3   :  { %7133 = sst [smem:[#allocation50_spill]] %s7027_s15 }
   0x4   :  { %24 = vsyncpa [#allocation5], 0 }
   0x5   :  { %26 = vsyncpa [#allocation5 + $0x1], 0 }
   0x6   :  { %27 = vsyncpa [#allocation8], 0 }
   0x7   :  { %28 = vsyncpa [#allocation6], 0 }
   0x8   :  { %30 = vsyncpa [#allocation6 + $0x1], 0  ;;  %s5028_s22 = smov 0   ;;  %s5030_s23 = smov 0  }
   0x9   :  { %s5032_s24 = smov 0   ;;  %s5034_s25 = smov 0  }
   0xa LB: > { %7134 = sst [smem:[#allocation14_spill]] %s4917_s22  ;;  %s5049_s12 = sadd.s32 4294967295, %s4929_s25   ;;  %s4929_s25 = sphi %s5034_s25, %s7279_s25   ;;  %s4925_s24 = sphi %s5032_s24, %s7278_s24   ;;  %s4921_s23 = sphi %s5030_s23, %s7277_s23   ;;  %s4917_s22 = sphi %s5028_s22, %s7276_s22  }
   0xb   : > { %s3889_s14 = sadd.s32 4294967294, %s4929_s25   ;;  %p56_p0 = scmp.ne.s32.totalorder %s4921_s23, %s4917_s22 }
   0xc   : > { %p7031_p1 = scmp.eq.s32.totalorder %s5049_s12, 0  ;;  %p380_p3 = scmp.eq.s32.totalorder %s3889_s14, 1 }
   0xd   : > { %p3890_p5 = scmp.ge.s32.totalorder %s4929_s25, 1  ;;  %p387_p7 = scmp.lt.s32.totalorder %s4929_s25, 3 }
   0xe   : > { %p5058_p4 = por %p7031_p1, %p56_p0  ;;  %p5063_p6 = por %p380_p3, %p56_p0 }
   0xf   : > { %p5068_p8 = pnand %p3890_p5, %p387_p7  ;;  %s4931_s29 = smov [#allocation7]  }
  0x10   : > { %s7135_s26 = scalar_select %p5058_p4, 1, 0 }
  0x11   : > { %s7136_s27 = scalar_select %p5063_p6, 1, 0 }
  0x12   : > { %s399_s30 = sshll.u32 %s4931_s29, 4  ;;  %p4244_p9 = pneg %p5068_p8  ;;  %s5072_s30 = int_to_ptr.vmem [resolvable:$true] %s399_s30 }
  0x13   : > { %7137 = sst [smem:[#allocation15_spill]] %s7136_s27  ;;  %s4932_s17 = smov [#allocation9]  }
  0x14   : > { %p5079_p11 = pnand %p4244_p9, %p7031_p1  ;;  %s433_s18 = sshll.u32 %s4932_s17, 4  ;;  %s5083_s18 = int_to_ptr.vmem [resolvable:$true] %s433_s18 }
  0x15   : > { %s4773_s21 = scalar_lea.hbm %s7014_s1, 1024 }
  0x16   : > { %p4774_p12 = scmp.ne.s32.totalorder %s7014_s1, %s4773_s21  ;;  %p4775_p13 = pneg %p5079_p11 }
  0x17   : > { %p4780_p5 = scmp.lt.u32.totalorder %s4773_s21, %s7014_s1 }
  0x18   : > { %p4776_p0 = pnand %p4775_p13, %p4774_p12 }
  0x1a   : > { %p4777_p3 = pneg %p4776_p0 }
  0x1c   : > { %p4782_p7 = pnand %p4780_p5, %p4777_p3 }
  0x1e   : > { %4785 = shalt.err (!%p4782_p7)
}
  0x1f   : > { %s4786_s17 = scalar_lea.vmem %s5072_s30, 1024  ;;  %p4794_p2 = scmp.lt.s32.totalorder %s5072_s30, %s5072_s30 }
  0x20   : > { %p4787_p9 = scmp.ne.s32.totalorder %s5072_s30, %s4786_s17  ;;  %p4795_p12 = scmp.lt.s32.totalorder %s4786_s17, %s4786_s17 }
  0x22   : > { %p4789_p10 = pnand %p4787_p9, %p4775_p13  ;;  %p4796_p0 = por %p4795_p12, %p4794_p2 }
  0x24   : > { %p4790_p1 = pneg %p4789_p10 }
  0x26   : > { %p4797_p6 = pnand %p4796_p0, %p4790_p1 }
  0x28   : > { %4800 = shalt.err (!%p4797_p6)
}
  0x29   : > { %s4933_s22 = smov 64   ;;  %s4934_s27 = smov 4  }
  0x2a   : > { %4247 = dma.hbm_to_vmem [thread:$0]  (!%p5079_p11), %s7014_s1, 1024, %s5072_s30, [#allocation8], %s4933_s22, %s4933_s22, %s4934_s27  }
  0x2b   : > { %s4801_s29 = scalar_lea.hbm %s7022_s9, 512 }
  0x2c   : > { %p4802_p2 = scmp.ne.s32.totalorder %s7022_s9, %s4801_s29  ;;  %p4808_p10 = scmp.lt.u32.totalorder %s4801_s29, %s7022_s9 }
  0x2e   : > { %p4804_p1 = pnand %p4802_p2, %p4775_p13 }
  0x30   : > { %p4805_p6 = pneg %p4804_p1 }
  0x32   : > { %p4810_p3 = pnand %p4808_p10, %p4805_p6 }
  0x34   : > { %4813 = shalt.err (!%p4810_p3)
}
  0x35   : > { %s4814_s30 = scalar_lea.vmem %s5083_s18, 512  ;;  %p4822_p12 = scmp.lt.s32.totalorder %s5083_s18, %s5083_s18 }
  0x36   : > { %p4815_p5 = scmp.ne.s32.totalorder %s5083_s18, %s4814_s30  ;;  %p4823_p0 = scmp.lt.s32.totalorder %s4814_s30, %s4814_s30 }
  0x38   : > { %p4817_p7 = pnand %p4815_p5, %p4775_p13  ;;  %p4824_p2 = por %p4823_p0, %p4822_p12 }
  0x3a   : > { %p4818_p9 = pneg %p4817_p7 }
  0x3c   : > { %p4825_p1 = pnand %p4824_p2, %p4818_p9 }
  0x3e   : > { %4828 = shalt.err (!%p4825_p1)
}
  0x3f   : > { %4250 = dma.hbm_to_vmem [thread:$0]  (!%p5079_p11), %s7022_s9, 512, %s5083_s18, [#allocation8], %s4933_s22, %s4933_s22, %s4934_s27  }
  0x40   : > { %s5138_s15 = sadd.s32 1, %s4929_s25   ;;  %s43_s16 = sadd.s32 1, %s4925_s24 }
  0x41   : > { %s40_s19 = ssub.s32 %s4929_s25, %s5138_s15  ;;  %p50_p13 = scmp.ne.s32.totalorder %s4925_s24, %s4921_s23 }
  0x42   : > { %p41_p6 = scmp.eq.s32.totalorder %s40_s19, 0  ;;  %p51_p10 = scmp.eq.s32.totalorder %s4929_s25, 0 }
  0x43   : > { %p7140_p3 = scmp.eq.s32.totalorder %s5049_s12, 1  ;;  %p4261_p7 = scmp.lt.s32.totalorder %s4929_s25, 2 }
  0x44   : > { %s5154_s21 = scalar_select %p41_p6, %s4925_s24, %s43_s16  }
  0x45   : > { %p5148_p5 = por %p7140_p3, %p50_p13  ;;  %p52_p9 = por %p51_p10, %p50_p13 }
  0x46   : > { %s462_s14 = sand.u32 1, %s4925_s24   ;;  %s4030_s18 = sshll.u32 %s4929_s25, 12 }
  0x47   : > { %s7141_s20 = scalar_select %p5148_p5, 1, 0 }
  0x48   : > { %s3894_s29 = sshll.u32 %s462_s14, 8  ;;  %s5161_s17 = scalar_lea.hbm %s7013_s0, %s4030_s18 }
  0x49   : > { %s466_s30 = scalar_lea.vmem [#allocation4], %s3894_s29  ;;  %p5165_p11 = pnand %p4261_p7, %p52_p9 }
  0x4a   : > { %s473_s8 = sshll.u32 %s466_s30, 4  ;;  %s5169_s16 = scalar_lea.sflag [#allocation5], %s462_s14  ;;  %s5163_s8 = int_to_ptr.vmem [resolvable:$true] %s473_s8 }
  0x4b   : > { %s4829_s19 = scalar_lea.hbm %s5161_s17, 4096  ;;  %p4831_p0 = pneg %p5165_p11 }
  0x4c   : > { %p4830_p12 = scmp.ne.s32.totalorder %s5161_s17, %s4829_s19  ;;  %s4834_s22 = scalar_lea.hbm %s7013_s0, 8192 }
  0x4d   : > { %p4835_p13 = scmp.lt.u32.totalorder %s5161_s17, %s7013_s0  ;;  %p4836_p6 = scmp.lt.u32.totalorder %s4834_s22, %s4829_s19 }
  0x4e   : > { %p4832_p2 = pnand %p4831_p0, %p4830_p12  ;;  %p4838_p3 = scmp.lt.u32.totalorder %s4829_s19, %s5161_s17 }
  0x4f   : > { %p4837_p10 = por %p4836_p6, %p4835_p13 }
  0x50   : > { %p4833_p1 = pneg %p4832_p2 }
  0x51   : > { %p4839_p7 = por %p4838_p3, %p4837_p10 }
  0x53   : > { %p4840_p9 = pnand %p4839_p7, %p4833_p1 }
  0x55   : > { %4843 = shalt.err (!%p4840_p9)
}
  0x56   : > { %s4844_s14 = scalar_lea.vmem %s5163_s8, 4096  ;;  %s4935_s29 = smov [#allocation4]  }
  0x57   : > { %p4845_p12 = scmp.ne.s32.totalorder %s5163_s8, %s4844_s14  ;;  %s4849_s18 = sshll.u32 %s4935_s29, 4  ;;  %s4850_s18 = int_to_ptr.vmem [resolvable:$false] %s4849_s18 }
  0x58   : > { %s4851_s27 = scalar_lea.vmem %s4850_s18, 8192  ;;  %p4852_p4 = scmp.lt.s32.totalorder %s5163_s8, %s4850_s18 }
  0x59   : > { %p4847_p2 = pnand %p4845_p12, %p4831_p0  ;;  %p4853_p13 = scmp.lt.s32.totalorder %s4851_s27, %s4844_s14 }
  0x5b   : > { %p4848_p5 = pneg %p4847_p2  ;;  %p4854_p6 = por %p4853_p13, %p4852_p4 }
  0x5d   : > { %p4855_p10 = pnand %p4854_p6, %p4848_p5 }
  0x5f   : > { %4858 = shalt.err (!%p4855_p10)
}
  0x60   : > { %s4936_s19 = smov 128   ;;  %s4937_s22 = smov 8  }
  0x61   : > { %4254 = dma.hbm_to_vmem [thread:$0]  (!%p5165_p11), %s5161_s17, 4096, %s5163_s8, %s5169_s16, %s4936_s19, %s4936_s19, %s4937_s22  }
  0x62   : > { %485 = sbr.rel (%p5068_p8) target bundleno = 1816 (0x718), region = 80 }
  0x69   : > { %s5200_s30 = sand.u32 1, %s4921_s23   ;;  %p7143_p4 = scmp.ne.s32.totalorder %s7135_s26, 0 }
  0x6a   : > { %s3898_s14 = sshll.u32 %s5200_s30, 8  ;;  %s488_s29 = scalar_lea.sflag [#allocation5], %s5200_s30 }
  0x6b   : > { %s5206_s18 = scalar_lea.vmem [#allocation4], %s3898_s14 }
  0x6c   : > { %4904 = dma.done.wait (%p7143_p4), %s488_s29, 4096  }
  0x6d   : > { %4906 = vsyncadd (%p7143_p4), %s488_s29, 4294963200  ;;  %p7144_p5 = scmp.eq.s32.totalorder %s5049_s12, 0 }
  0x6f   : > { %4908 = dma.done.wait (%p7144_p5), [#allocation8], 1536   ;;  %p7145_p8 = pmov %p7144_p5 }
  0x70   : > { %v4308_v2 = vld [vmem:[#allocation7] sm:$0xff]   ;;  %v4309_v3 = vld [vmem:[#allocation7 + $0x8] sm:$0xff]   ;;  %v4310_v4 = vld [vmem:[#allocation7 + $0x10] sm:$0xff]   ;;  %vm831_vm0 = vcmask 523264   ;;  %s7220_s10 = sld [smem:[#allocation48_spill]]  ;;  %s7243_s19 = sld [smem:[#allocation49_spill]] }
  0x71   : > { %4910 = vsyncadd (%p7145_p8), [#allocation8], 4294965760  ;;  %4096 = vmatprep.subr.bf16.mxu0 %v4308_v2  ;;  %v4311_v5 = vld [vmem:[#allocation7 + $0x18] sm:$0xff]   ;;  %v549_v6 = vld [vmem:[%s5206_s18] sm:$0xff]  ;;  %s6898_s22 = scalar_lea.vmem [#allocation10], %s3898_s14  ;;  %s4031_s14 = sshll.u32 %s5049_s12, 12 }
  0x72   : > { %4097 = vmatpush3.bf16.msra.mxu0 %v4308_v2  ;;  %v550_v7 = vld [vmem:[%s5206_s18 + $0x8] sm:$0xff]  ;;  %v4312_v9 = vld [vmem:[#allocation7 + $0x20] sm:$0xff]   ;;  %v4314_v11 = vld [vmem:[#allocation7 + $0x30] sm:$0xff]   ;;  %s3797_s29 = sshll.u32 %s6898_s22, 4  ;;  %s7270_s28 = sld [smem:[#allocation50_spill]]  ;;  %s6966_s29 = int_to_ptr.vmem [resolvable:$true] %s3797_s29 }
  0x73   : > { %4098 = vmatprep.subr.bf16.mxu0 %v4309_v3  ;;  %v581_v8 = vpack.c.bf16 %v550_v7, %v549_v6  ;;  %v4313_v10 = vld [vmem:[#allocation7 + $0x28] sm:$0xff]   ;;  %v4315_v12 = vld [vmem:[#allocation7 + $0x38] sm:$0xff]   ;;  %v551_v13 = vld [vmem:[%s5206_s18 + $0x10] sm:$0xff]  ;;  %s3784_s12 = scalar_lea.sflag [#allocation6], %s5200_s30  ;;  %s4859_s8 = scalar_lea.vmem %s6966_s29, 4096 }
  0x74   : > { %v552_v14 = vld [vmem:[%s5206_s18 + $0x18] sm:$0xff]  ;;  %v553_v15 = vld [vmem:[%s5206_s18 + $0x20] sm:$0xff]  ;;  %v554_v16 = vld [vmem:[%s5206_s18 + $0x28] sm:$0xff]  ;;  %p4860_p11 = scmp.ne.s32.totalorder %s6966_s29, %s4859_s8  ;;  %p7271_p0 = scmp.ne.s32.totalorder %s7141_s20, 0 }
  0x75   : > { %4112 = vmatprep.mubr.bf16.mxu0 %v581_v8  ;;  %v582_v17 = vpack.c.bf16 %v552_v14, %v551_v13  ;;  %v583_v18 = vpack.c.bf16 %v554_v16, %v553_v15  ;;  %v555_v19 = vld [vmem:[%s5206_s18 + $0x30] sm:$0xff]  ;;  %v556_v20 = vld [vmem:[%s5206_s18 + $0x38] sm:$0xff]  ;;  %v557_v21 = vld [vmem:[%s5206_s18 + $0x40] sm:$0xff] }
  0x76   : > { %4099 = vmatpush3.bf16.msra.mxu0 %v4309_v3  ;;  %v558_v22 = vld [vmem:[%s5206_s18 + $0x48] sm:$0xff]  ;;  %v584_v23 = vpack.c.bf16 %v556_v20, %v555_v19  ;;  %v559_v25 = vld [vmem:[%s5206_s18 + $0x50] sm:$0xff]  ;;  %v560_v26 = vld [vmem:[%s5206_s18 + $0x58] sm:$0xff]  ;;  %p4861_p1 = pnand %p4860_p11, %p7271_p0 }
  0x77   : > { %4100 = vmatprep.subr.bf16.mxu0 %v4310_v4  ;;  %v585_v24 = vpack.c.bf16 %v558_v22, %v557_v21  ;;  %v561_v27 = vld [vmem:[%s5206_s18 + $0x60] sm:$0xff]  ;;  %v562_v28 = vld [vmem:[%s5206_s18 + $0x68] sm:$0xff]  ;;  %v586_v29 = vpack.c.bf16 %v560_v26, %v559_v25  ;;  %v563_v31 = vld [vmem:[%s5206_s18 + $0x70] sm:$0xff] }
  0x78   : > { %v587_v30 = vpack.c.bf16 %v562_v28, %v561_v27  ;;  %v564_v32 = vld [vmem:[%s5206_s18 + $0x78] sm:$0xff]  ;;  %v565_v33 = vld [vmem:[%s5206_s18 + $0x80] sm:$0xff]  ;;  %v566_v34 = vld [vmem:[%s5206_s18 + $0x88] sm:$0xff]  ;;  %s6964_s17 = scalar_lea.hbm %s7270_s28, %s4031_s14  ;;  %p4862_p3 = pneg %p4861_p1 }
  0x79   : > { %v588_v35 = vpack.c.bf16 %v564_v32, %v563_v31  ;;  %v589_v36 = vpack.c.bf16 %v566_v34, %v565_v33  ;;  %v567_v37 = vld [vmem:[%s5206_s18 + $0x90] sm:$0xff]  ;;  %v568_v38 = vld [vmem:[%s5206_s18 + $0x98] sm:$0xff]  ;;  %v569_v39 = vld [vmem:[%s5206_s18 + $0xa0] sm:$0xff] }
  0x7a   : > { %4101 = vmatpush3.bf16.msra.mxu0 %v4310_v4  ;;  %v570_v40 = vld [vmem:[%s5206_s18 + $0xa8] sm:$0xff]  ;;  %v590_v41 = vpack.c.bf16 %v568_v38, %v567_v37  ;;  %v571_v43 = vld [vmem:[%s5206_s18 + $0xb0] sm:$0xff]  ;;  %v572_v44 = vld [vmem:[%s5206_s18 + $0xb8] sm:$0xff] }
  0x7b   : > { %4102 = vmatprep.subr.bf16.mxu0 %v4311_v5  ;;  %v591_v42 = vpack.c.bf16 %v570_v40, %v569_v39  ;;  %v573_v45 = vld [vmem:[%s5206_s18 + $0xc0] sm:$0xff]  ;;  %v574_v46 = vld [vmem:[%s5206_s18 + $0xc8] sm:$0xff]  ;;  %v592_v47 = vpack.c.bf16 %v572_v44, %v571_v43  ;;  %v575_v49 = vld [vmem:[%s5206_s18 + $0xd0] sm:$0xff] }
  0x7c   : > { %v593_v48 = vpack.c.bf16 %v574_v46, %v573_v45  ;;  %v576_v50 = vld [vmem:[%s5206_s18 + $0xd8] sm:$0xff]  ;;  %v577_v51 = vld [vmem:[%s5206_s18 + $0xe0] sm:$0xff]  ;;  %v578_v52 = vld [vmem:[%s5206_s18 + $0xe8] sm:$0xff] }
  0x7d   : > { %v594_v53 = vpack.c.bf16 %v576_v50, %v575_v49  ;;  %v595_v54 = vpack.c.bf16 %v578_v52, %v577_v51  ;;  %v579_v55 = vld [vmem:[%s5206_s18 + $0xf0] sm:$0xff]  ;;  %v580_v56 = vld [vmem:[%s5206_s18 + $0xf8] sm:$0xff] }
  0x7e   : > { %4103 = vmatpush3.bf16.msra.mxu0 %v4311_v5  ;;  %v596_v57 = vpack.c.bf16 %v580_v56, %v579_v55  ;;  %v5251_v58 = vld [vmem:[%s7015_s2] ss:$0 sm:$0xff] }
  0x7f   : > { %4104 = vmatprep.subr.bf16.mxu0 %v4312_v9 }
  0x82   : > { %4105 = vmatpush3.bf16.msra.mxu0 %v4312_v9 }
  0x83   : > { %4106 = vmatprep.subr.bf16.mxu0 %v4313_v10 }
  0x86   : > { %4107 = vmatpush3.bf16.msra.mxu0 %v4313_v10 }
  0x87   : > { %4108 = vmatprep.subr.bf16.mxu0 %v4314_v11 }
  0x8a   : > { %4109 = vmatpush3.bf16.msra.mxu0 %v4314_v11 }
  0x8b   : > { %4110 = vmatprep.subr.bf16.mxu0 %v4315_v12 }
  0x8e   : > { %4111 = vmatpush3.bf16.msra.mxu0 %v4315_v12 }
  0x91   : > { %4113 = vmatmul.mubr.bf16.vlgmr.msra.gmra.mrb[0].mxu0 %v582_v17 }
  0x92   : > { %4116 = vmatprep.mubr.bf16.mxu0 %v583_v18 }
  0x99   : > { %4117 = vmatmul.mubr.bf16.gmra.mrb[4].mxu0 %v584_v23 }
  0x9a   : > { %4120 = vmatprep.mubr.bf16.mxu0 %v585_v24 }
  0xa1   : > { %4121 = vmatmul.mubr.bf16.gmra.mrb[8].mxu0 %v586_v29 }
  0xa2   : > { %4124 = vmatprep.mubr.bf16.mxu0 %v587_v30 }
  0xa9   : > { %4125 = vmatmul.mubr.bf16.gmra.mrb[12].mxu0 %v588_v35 }
  0xaa   : > { %4128 = vmatprep.mubr.bf16.mxu0 %v589_v36 }
  0xb1   : > { %4129 = vmatmul.mubr.bf16.gmra.mrb[16].mxu0 %v590_v41 }
  0xb2   : > { %4132 = vmatprep.mubr.bf16.mxu0 %v591_v42 }
  0xb9   : > { %4133 = vmatmul.mubr.bf16.gmra.mrb[20].mxu0 %v592_v47 }
  0xba   : > { %4136 = vmatprep.mubr.bf16.mxu0 %v593_v48 }
  0xc1   : > { %4137 = vmatmul.mubr.bf16.gmra.mrb[24].mxu0 %v594_v53 }
  0xc2   : > { %4140 = vmatprep.mubr.bf16.mxu0 %v595_v54 }
  0xc9   : > { %4141 = vmatmul.mubr.bf16.gmra.mrb[28].mxu0 %v596_v57 }
 0x164   : > { %v4114_v59 = vpop.f32.mrb[0].mxu0 }
 0x165   : > { %v5254_v60 = vadd.f32 %v4114_v59, %v5251_v58  ;;  %v702_v61 = vpop.f32.mrb[1].mxu0 }
 0x166   : > { %v5257_v62 = vadd.f32 %v5251_v58, %v702_v61  ;;  %v4115_v63 = vpop.f32.mrb[2].mxu0 }
 0x167   : > { %v5260_v0 = vadd.f32 %v4115_v63, %v5251_v58  ;;  %v705_v1 = vpop.f32.mrb[3].mxu0  ;;  %v838_v2 = vsel %vm831_vm0, %v5254_v60, 0.0 }
 0x168   : > { %v5265_v3 = vadd.f32 %v5251_v58, %v705_v1  ;;  %839 = vadd.xlane.f32.xlu1 %v838_v2  ;;  %v832_v4 = vsel %vm831_vm0, %v5257_v62, 0.0 }
 0x169   : > { %833 = vadd.xlane.f32.xlu0 %v832_v4  ;;  %v841_v5 = vsel %vm831_vm0, %v5260_v0, 0.0 }
 0x16a   : > { %v835_v7 = vsel %vm831_vm0, %v5265_v3, 0.0 }
 0x16c   : > { %842 = vadd.xlane.f32.xlu1 %v841_v5  ;;  %v4118_v6 = vpop.f32.mrb[4].mxu0 }
 0x16d   : > { %v718_v8 = vpop.f32.mrb[5].mxu0  ;;  %836 = vadd.xlane.f32.xlu0 %v835_v7  ;;  %v5277_v12 = vadd.f32 %v4118_v6, %v5251_v58 }
 0x16e   : > { %v5274_v9 = vadd.f32 %v5251_v58, %v718_v8  ;;  %v4119_v10 = vpop.f32.mrb[6].mxu0 }
 0x16f   : > { %v721_v11 = vpop.f32.mrb[7].mxu0  ;;  %v5285_v15 = vadd.f32 %v4119_v10, %v5251_v58  ;;  %v850_v18 = vsel %vm831_vm0, %v5277_v12, 0.0 }
 0x170   : > { %v5280_v13 = vadd.f32 %v5251_v58, %v721_v11  ;;  %v844_v14 = vsel %vm831_vm0, %v5274_v9, 0.0 }
 0x171   : > { %845 = vadd.xlane.f32.xlu0 %v844_v14  ;;  %v853_v22 = vsel %vm831_vm0, %v5285_v15, 0.0 }
 0x172   : > { %v847_v16 = vsel %vm831_vm0, %v5280_v13, 0.0 }
 0x173   : > { %848 = vadd.xlane.f32.xlu1 %v847_v16 }
 0x174   : > { %v4122_v17 = vpop.f32.mrb[8].mxu0 }
 0x175   : > { %v734_v19 = vpop.f32.mrb[9].mxu0  ;;  %851 = vadd.xlane.f32.xlu0 %v850_v18  ;;  %v5297_v24 = vadd.f32 %v4122_v17, %v5251_v58 }
 0x176   : > { %v5292_v20 = vadd.f32 %v5251_v58, %v734_v19  ;;  %v4123_v21 = vpop.f32.mrb[10].mxu0 }
 0x177   : > { %v737_v23 = vpop.f32.mrb[11].mxu0  ;;  %854 = vadd.xlane.f32.xlu1 %v853_v22  ;;  %v5305_v27 = vadd.f32 %v4123_v21, %v5251_v58  ;;  %v862_v30 = vsel %vm831_vm0, %v5297_v24, 0.0 }
 0x178   : > { %v5300_v25 = vadd.f32 %v5251_v58, %v737_v23  ;;  %v856_v26 = vsel %vm831_vm0, %v5292_v20, 0.0 }
 0x179   : > { %857 = vadd.xlane.f32.xlu0 %v856_v26  ;;  %7146 = vst [vmem:[#allocation16_spill] sm:$0xff] %v5305_v27  ;;  %v865_v34 = vsel %vm831_vm0, %v5305_v27, 0.0 }
 0x17a   : > { %v859_v28 = vsel %vm831_vm0, %v5300_v25, 0.0 }
 0x17b   : > { %860 = vadd.xlane.f32.xlu1 %v859_v28 }
 0x17c   : > { %v4126_v29 = vpop.f32.mrb[12].mxu0 }
 0x17d   : > { %v750_v31 = vpop.f32.mrb[13].mxu0  ;;  %863 = vadd.xlane.f32.xlu0 %v862_v30  ;;  %v5317_v36 = vadd.f32 %v4126_v29, %v5251_v58 }
 0x17e   : > { %v5312_v32 = vadd.f32 %v5251_v58, %v750_v31  ;;  %v4127_v33 = vpop.f32.mrb[14].mxu0 }
 0x17f   : > { %v753_v35 = vpop.f32.mrb[15].mxu0  ;;  %866 = vadd.xlane.f32.xlu1 %v865_v34  ;;  %7148 = vst [vmem:[#allocation18_spill] sm:$0xff] %v5317_v36  ;;  %v5325_v39 = vadd.f32 %v4127_v33, %v5251_v58  ;;  %v874_v42 = vsel %vm831_vm0, %v5317_v36, 0.0 }
 0x180   : > { %7147 = vst [vmem:[#allocation17_spill] sm:$0xff] %v5312_v32  ;;  %v5320_v37 = vadd.f32 %v5251_v58, %v753_v35  ;;  %v868_v38 = vsel %vm831_vm0, %v5312_v32, 0.0 }
 0x181   : > { %869 = vadd.xlane.f32.xlu0 %v868_v38  ;;  %7150 = vst [vmem:[#allocation20_spill] sm:$0xff] %v5325_v39  ;;  %v877_v46 = vsel %vm831_vm0, %v5325_v39, 0.0 }
 0x182   : > { %7149 = vst [vmem:[#allocation19_spill] sm:$0xff] %v5320_v37  ;;  %v871_v40 = vsel %vm831_vm0, %v5320_v37, 0.0 }
 0x183   : > { %872 = vadd.xlane.f32.xlu1 %v871_v40 }
 0x184   : > { %v4130_v41 = vpop.f32.mrb[16].mxu0 }
 0x185   : > { %v766_v43 = vpop.f32.mrb[17].mxu0  ;;  %875 = vadd.xlane.f32.xlu0 %v874_v42  ;;  %v5337_v48 = vadd.f32 %v4130_v41, %v5251_v58 }
 0x186   : > { %v5332_v44 = vadd.f32 %v5251_v58, %v766_v43  ;;  %v4131_v45 = vpop.f32.mrb[18].mxu0  ;;  %v3991_v43 = vld [vmem:[%s7026_s13] ss:$0 sm:$0xff] }
 0x187   : > { %v769_v47 = vpop.f32.mrb[19].mxu0  ;;  %878 = vadd.xlane.f32.xlu1 %v877_v46  ;;  %7152 = vst [vmem:[#allocation22_spill] sm:$0xff] %v5337_v48  ;;  %v5345_v51 = vadd.f32 %v4131_v45, %v5251_v58  ;;  %v886_v54 = vsel %vm831_vm0, %v5337_v48, 0.0 }
 0x188   : > { %7151 = vst [vmem:[#allocation21_spill] sm:$0xff] %v5332_v44  ;;  %v5340_v49 = vadd.f32 %v5251_v58, %v769_v47  ;;  %v880_v50 = vsel %vm831_vm0, %v5332_v44, 0.0  ;;  %v4316_v47 = vld [vmem:[%s7018_s5] sm:$0xff]  }
 0x189   : > { %881 = vadd.xlane.f32.xlu0 %v880_v50  ;;  %7154 = vst [vmem:[#allocation24_spill] sm:$0xff] %v5345_v51  ;;  %v889_v59 = vsel %vm831_vm0, %v5345_v51, 0.0  ;;  %v4317_v50 = vld [vmem:[%s7018_s5 + $0x8] sm:$0xff]   ;;  %4144 = vmatprep.subr.bf16.mxu0 %v4316_v47 }
 0x18a   : > { %7153 = vst [vmem:[#allocation23_spill] sm:$0xff] %v5340_v49  ;;  %v883_v52 = vsel %vm831_vm0, %v5340_v49, 0.0  ;;  %4224 = vmatprep.subr.bf16.mxu1 %v4316_v47  ;;  %4145 = vmatpush3.bf16.msra.mxu0 %v4316_v47 }
 0x18b   : > { %884 = vadd.xlane.f32.xlu1 %v883_v52  ;;  %4228 = vmatpush3.bf16.msra.mxu1 %v4316_v47 }
 0x18c   : > { %v4134_v53 = vpop.f32.mrb[20].mxu0  ;;  %4146 = vmatprep.subr.bf16.mxu0 %v4317_v50  ;;  %4225 = vmatprep.subr.bf16.mxu1 %v4317_v50 }
 0x18d   : > { %v782_v55 = vpop.f32.mrb[21].mxu0  ;;  %887 = vadd.xlane.f32.xlu0 %v886_v54  ;;  %v5357_v63 = vadd.f32 %v4134_v53, %v5251_v58 }
 0x18e   : > { %v5352_v56 = vadd.f32 %v5251_v58, %v782_v55  ;;  %v4135_v57 = vpop.f32.mrb[22].mxu0  ;;  %4147 = vmatpush3.bf16.msra.mxu0 %v4317_v50 }
 0x18f   : > { %v785_v61 = vpop.f32.mrb[23].mxu0  ;;  %890 = vadd.xlane.f32.xlu1 %v889_v59  ;;  %7156 = vst [vmem:[#allocation26_spill] sm:$0xff] %v5357_v63  ;;  %v5365_v4 = vadd.f32 %v4135_v57, %v5251_v58  ;;  %v898_v7 = vsel %vm831_vm0, %v5357_v63, 0.0  ;;  %4229 = vmatpush3.bf16.msra.mxu1 %v4317_v50 }
 0x190   : > { %7155 = vst [vmem:[#allocation25_spill] sm:$0xff] %v5352_v56  ;;  %v5360_v1 = vadd.f32 %v5251_v58, %v785_v61  ;;  %v892_v2 = vsel %vm831_vm0, %v5352_v56, 0.0 }
 0x191   : > { %893 = vadd.xlane.f32.xlu0 %v892_v2  ;;  %7158 = vst [vmem:[#allocation28_spill] sm:$0xff] %v5365_v4  ;;  %v901_v14 = vsel %vm831_vm0, %v5365_v4, 0.0 }
 0x192   : > { %7157 = vst [vmem:[#allocation27_spill] sm:$0xff] %v5360_v1  ;;  %v895_v5 = vsel %vm831_vm0, %v5360_v1, 0.0 }
 0x193   : > { %896 = vadd.xlane.f32.xlu1 %v895_v5 }
 0x194   : > { %v4138_v6 = vpop.f32.mrb[24].mxu0 }
 0x195   : > { %v798_v8 = vpop.f32.mrb[25].mxu0  ;;  %899 = vadd.xlane.f32.xlu0 %v898_v7  ;;  %v5377_v17 = vadd.f32 %v4138_v6, %v5251_v58 }
 0x196   : > { %v5372_v10 = vadd.f32 %v5251_v58, %v798_v8  ;;  %v4139_v11 = vpop.f32.mrb[26].mxu0 }
 0x197   : > { %v801_v16 = vpop.f32.mrb[27].mxu0  ;;  %902 = vadd.xlane.f32.xlu1 %v901_v14  ;;  %7160 = vst [vmem:[#allocation30_spill] sm:$0xff] %v5377_v17  ;;  %v5385_v21 = vadd.f32 %v4139_v11, %v5251_v58  ;;  %v910_v26 = vsel %vm831_vm0, %v5377_v17, 0.0 }
 0x198   : > { %7159 = vst [vmem:[#allocation29_spill] sm:$0xff] %v5372_v10  ;;  %v5380_v18 = vadd.f32 %v5251_v58, %v801_v16  ;;  %v904_v19 = vsel %vm831_vm0, %v5372_v10, 0.0 }
 0x199   : > { %905 = vadd.xlane.f32.xlu0 %v904_v19  ;;  %7162 = vst [vmem:[#allocation32_spill] sm:$0xff] %v5385_v21  ;;  %v913_v31 = vsel %vm831_vm0, %v5385_v21, 0.0 }
 0x19a   : > { %7161 = vst [vmem:[#allocation31_spill] sm:$0xff] %v5380_v18  ;;  %v907_v22 = vsel %vm831_vm0, %v5380_v18, 0.0 }
 0x19b   : > { %908 = vadd.xlane.f32.xlu1 %v907_v22 }
 0x19c   : > { %v4142_v23 = vpop.f32.mrb[28].mxu0 }
 0x19d   : > { %v814_v28 = vpop.f32.mrb[29].mxu0  ;;  %911 = vadd.xlane.f32.xlu0 %v910_v26  ;;  %v5400_v35 = vadd.f32 %v4142_v23, %v5251_v58 }
 0x19e   : > { %v5392_v29 = vadd.f32 %v5251_v58, %v814_v28  ;;  %v4143_v30 = vpop.f32.mrb[30].mxu0 }
 0x19f   : > { %v5397_v33 = vadd.f32 %v4143_v30, %v5251_v58  ;;  %v817_v34 = vpop.f32.mrb[31].mxu0  ;;  %914 = vadd.xlane.f32.xlu1 %v913_v31  ;;  %7165 = vst [vmem:[#allocation35_spill] sm:$0xff] %v5400_v35 }
 0x1a0   : > { %7163 = vst [vmem:[#allocation33_spill] sm:$0xff] %v5392_v29  ;;  %v5403_v38 = vadd.f32 %v5251_v58, %v817_v34  ;;  %v916_v40 = vsel %vm831_vm0, %v5392_v29, 0.0  ;;  %v922_v58 = vsel %vm831_vm0, %v5400_v35, 0.0 }
 0x1a1   : > { %7164 = vst [vmem:[#allocation34_spill] sm:$0xff] %v5397_v33  ;;  %v7035_v41 = vmax.f32 %v5397_v33, 0.0  ;;  %917 = vadd.xlane.f32.xlu0 %v916_v40  ;;  %v925_v46 = vsel %vm831_vm0, %v5397_v33, 0.0 }
 0x1a2   : > { %7166 = vst [vmem:[#allocation36_spill] sm:$0xff] %v5403_v38  ;;  %v919_v42 = vsel %vm831_vm0, %v5403_v38, 0.0 }
 0x1a3   : > { %920 = vadd.xlane.f32.xlu1 %v919_v42  ;;  %v5415_v45 = vmul.f32 %v3991_v43, %v7035_v41 }
 0x1a5   : > { %7167 = vst [vmem:[#allocation37_spill] sm:$0xff] %v5415_v45  ;;  %923 = vadd.xlane.f32.xlu0 %v922_v58 }
 0x1a7   : > { %926 = vadd.xlane.f32.xlu1 %v925_v46 }
 0x1f5   : > { %v840_v52 = vpop.xlane.xlu1 %839 }
 0x1f6   : > { %v931_v53 = vmul.f32 0.015625, %v840_v52  ;;  %v834_v54 = vpop.xlane.xlu0 %833 }
 0x1f7   : > { %v929_v55 = vmul.f32 0.015625, %v834_v54 }
 0x1f8   : > { %v5428_v57 = vsub.f32 %v5254_v60, %v931_v53 }
 0x1f9   : > { %v5431_v59 = vsub.f32 %v5257_v62, %v929_v55  ;;  %v843_v61 = vpop.xlane.xlu1 %842 }
 0x1fa   : > { %v932_v2 = vmul.f32 0.015625, %v843_v61  ;;  %v837_v5 = vpop.xlane.xlu0 %836  ;;  %v995_v16 = vmul.f32 %v5428_v57, %v5428_v57 }
 0x1fb   : > { %v930_v6 = vmul.f32 0.015625, %v837_v5  ;;  %v993_v7 = vmul.f32 %v5431_v59, %v5431_v59 }
 0x1fc   : > { %v5436_v8 = vsub.f32 %v5260_v0, %v932_v2  ;;  %v1031_v34 = vsel %vm831_vm0, %v995_v16, 0.0 }
 0x1fd   : > { %v5439_v11 = vsub.f32 %v5265_v3, %v930_v6  ;;  %v1025_v14 = vsel %vm831_vm0, %v993_v7, 0.0 }
 0x1fe   : > { %1026 = vadd.xlane.f32.xlu0 %v1025_v14  ;;  %v846_v19 = vpop.xlane.xlu0 %845  ;;  %v996_v28 = vmul.f32 %v5436_v8, %v5436_v8 }
 0x1ff   : > { %v933_v22 = vmul.f32 0.015625, %v846_v19  ;;  %v994_v23 = vmul.f32 %v5439_v11, %v5439_v11 }
 0x200   : > { %v849_v26 = vpop.xlane.xlu1 %848  ;;  %v1034_v50 = vsel %vm831_vm0, %v996_v28, 0.0 }
 0x201   : > { %v5449_v30 = vsub.f32 %v5274_v9, %v933_v22  ;;  %v934_v31 = vmul.f32 0.015625, %v849_v26  ;;  %v1028_v40 = vsel %vm831_vm0, %v994_v23, 0.0 }
 0x202   : > { %1032 = vadd.xlane.f32.xlu0 %v1031_v34  ;;  %1029 = vadd.xlane.f32.xlu1 %v1028_v40  ;;  %v852_v42 = vpop.xlane.xlu0 %851 }
 0x203   : > { %v5454_v43 = vsub.f32 %v5280_v13, %v934_v31  ;;  %v935_v58 = vmul.f32 0.015625, %v852_v42  ;;  %v997_v46 = vmul.f32 %v5449_v30, %v5449_v30 }
 0x204   : > { %v855_v47 = vpop.xlane.xlu1 %854 }
 0x205   : > { %v5460_v52 = vsub.f32 %v5277_v12, %v935_v58  ;;  %v936_v53 = vmul.f32 0.015625, %v855_v47  ;;  %v1037_v54 = vsel %vm831_vm0, %v997_v46, 0.0  ;;  %v998_v55 = vmul.f32 %v5454_v43, %v5454_v43 }
 0x206   : > { %1035 = vadd.xlane.f32.xlu1 %v1034_v50  ;;  %1038 = vadd.xlane.f32.xlu0 %v1037_v54  ;;  %v858_v61 = vpop.xlane.xlu0 %857 }
 0x207   : > { %v5466_v2 = vsub.f32 %v5285_v15, %v936_v53  ;;  %v937_v5 = vmul.f32 0.015625, %v858_v61  ;;  %v999_v6 = vmul.f32 %v5460_v52, %v5460_v52  ;;  %v1040_v14 = vsel %vm831_vm0, %v998_v55, 0.0 }
 0x208   : > { %v861_v7 = vpop.xlane.xlu1 %860 }
 0x209   : > { %v5472_v16 = vsub.f32 %v5292_v20, %v937_v5  ;;  %v938_v19 = vmul.f32 0.015625, %v861_v7  ;;  %v1043_v22 = vsel %vm831_vm0, %v999_v6, 0.0  ;;  %v1000_v23 = vmul.f32 %v5466_v2, %v5466_v2 }
 0x20a   : > { %1041 = vadd.xlane.f32.xlu1 %v1040_v14  ;;  %1044 = vadd.xlane.f32.xlu0 %v1043_v22  ;;  %v864_v26 = vpop.xlane.xlu0 %863 }
 0x20b   : > { %v5478_v28 = vsub.f32 %v5300_v25, %v938_v19  ;;  %v939_v31 = vmul.f32 0.015625, %v864_v26  ;;  %v1001_v34 = vmul.f32 %v5472_v16, %v5472_v16  ;;  %v1046_v42 = vsel %vm831_vm0, %v1000_v23, 0.0 }
 0x20c   : > { %v867_v40 = vpop.xlane.xlu1 %866 }
 0x20d   : > { %v5484_v58 = vsub.f32 %v5297_v24, %v939_v31  ;;  %v940_v46 = vmul.f32 0.015625, %v867_v40  ;;  %v1049_v47 = vsel %vm831_vm0, %v1001_v34, 0.0  ;;  %v1002_v50 = vmul.f32 %v5478_v28, %v5478_v28 }
 0x20e   : > { %1047 = vadd.xlane.f32.xlu1 %v1046_v42  ;;  %1050 = vadd.xlane.f32.xlu0 %v1049_v47  ;;  %v870_v53 = vpop.xlane.xlu0 %869 }
 0x20f   : > { %v5490_v54 = vsub.f32 %v5305_v27, %v940_v46  ;;  %v941_v55 = vmul.f32 0.015625, %v870_v53  ;;  %v1003_v61 = vmul.f32 %v5484_v58, %v5484_v58  ;;  %v1052_v6 = vsel %vm831_vm0, %v1002_v50, 0.0 }
 0x210   : > { %v873_v5 = vpop.xlane.xlu1 %872 }
 0x211   : > { %v5496_v7 = vsub.f32 %v5312_v32, %v941_v55  ;;  %v942_v14 = vmul.f32 0.015625, %v873_v5  ;;  %v1055_v19 = vsel %vm831_vm0, %v1003_v61, 0.0  ;;  %v1004_v22 = vmul.f32 %v5490_v54, %v5490_v54 }
 0x212   : > { %1053 = vadd.xlane.f32.xlu1 %v1052_v6  ;;  %1056 = vadd.xlane.f32.xlu0 %v1055_v19  ;;  %v876_v23 = vpop.xlane.xlu0 %875 }
 0x213   : > { %v5502_v26 = vsub.f32 %v5320_v37, %v942_v14  ;;  %v943_v31 = vmul.f32 0.015625, %v876_v23  ;;  %v1005_v34 = vmul.f32 %v5496_v7, %v5496_v7  ;;  %v1058_v42 = vsel %vm831_vm0, %v1004_v22, 0.0 }
 0x214   : > { %v879_v40 = vpop.xlane.xlu1 %878 }
 0x215   : > { %v5508_v46 = vsub.f32 %v5317_v36, %v943_v31  ;;  %v944_v47 = vmul.f32 0.015625, %v879_v40  ;;  %v1061_v50 = vsel %vm831_vm0, %v1005_v34, 0.0  ;;  %v1006_v53 = vmul.f32 %v5502_v26, %v5502_v26 }
 0x216   : > { %1059 = vadd.xlane.f32.xlu1 %v1058_v42  ;;  %1062 = vadd.xlane.f32.xlu0 %v1061_v50  ;;  %v882_v55 = vpop.xlane.xlu0 %881 }
 0x217   : > { %v5514_v61 = vsub.f32 %v5325_v39, %v944_v47  ;;  %v945_v5 = vmul.f32 0.015625, %v882_v55  ;;  %v1007_v6 = vmul.f32 %v5508_v46, %v5508_v46  ;;  %v1064_v19 = vsel %vm831_vm0, %v1006_v53, 0.0  ;;  %v4318_v53 = vld [vmem:[%s7018_s5 + $0x10] sm:$0xff]  }
 0x218   : > { %v885_v14 = vpop.xlane.xlu1 %884  ;;  %4148 = vmatprep.subr.bf16.mxu0 %v4318_v53  ;;  %4226 = vmatprep.subr.bf16.mxu1 %v4318_v53 }
 0x219   : > { %v5520_v22 = vsub.f32 %v5332_v44, %v945_v5  ;;  %v946_v23 = vmul.f32 0.015625, %v885_v14  ;;  %v1067_v31 = vsel %vm831_vm0, %v1007_v6, 0.0  ;;  %v1008_v34 = vmul.f32 %v5514_v61, %v5514_v61  ;;  %4149 = vmatpush3.bf16.msra.mxu0 %v4318_v53  ;;  %4230 = vmatpush3.bf16.msra.mxu1 %v4318_v53 }
 0x21a   : > { %1065 = vadd.xlane.f32.xlu1 %v1064_v19  ;;  %1068 = vadd.xlane.f32.xlu0 %v1067_v31  ;;  %v888_v40 = vpop.xlane.xlu0 %887 }
 0x21b   : > { %v5526_v42 = vsub.f32 %v5340_v49, %v946_v23  ;;  %v947_v47 = vmul.f32 0.015625, %v888_v40  ;;  %v1009_v50 = vmul.f32 %v5520_v22, %v5520_v22  ;;  %v1070_v5 = vsel %vm831_vm0, %v1008_v34, 0.0 }
 0x21c   : > { %v891_v55 = vpop.xlane.xlu1 %890 }
 0x21d   : > { %v5535_v6 = vsub.f32 %v5337_v48, %v947_v47  ;;  %v948_v14 = vmul.f32 0.015625, %v891_v55  ;;  %v1073_v19 = vsel %vm831_vm0, %v1009_v50, 0.0  ;;  %v1010_v23 = vmul.f32 %v5526_v42, %v5526_v42 }
 0x21e   : > { %1071 = vadd.xlane.f32.xlu1 %v1070_v5  ;;  %1074 = vadd.xlane.f32.xlu0 %v1073_v19  ;;  %v894_v31 = vpop.xlane.xlu0 %893 }
 0x21f   : > { %v5541_v40 = vsub.f32 %v5345_v51, %v948_v14  ;;  %v949_v41 = vmul.f32 0.015625, %v894_v31  ;;  %v1011_v34 = vmul.f32 %v5535_v6, %v5535_v6  ;;  %v1076_v50 = vsel %vm831_vm0, %v1010_v23, 0.0 }
 0x220   : > { %v897_v47 = vpop.xlane.xlu1 %896 }
 0x221   : > { %v5547_v55 = vsub.f32 %v5352_v56, %v949_v41  ;;  %v950_v45 = vmul.f32 0.015625, %v897_v47  ;;  %v1079_v5 = vsel %vm831_vm0, %v1011_v34, 0.0  ;;  %v1012_v19 = vmul.f32 %v5541_v40, %v5541_v40 }
 0x222   : > { %1077 = vadd.xlane.f32.xlu1 %v1076_v50  ;;  %1080 = vadd.xlane.f32.xlu0 %v1079_v5  ;;  %v900_v14 = vpop.xlane.xlu0 %899 }
 0x223   : > { %v5553_v31 = vsub.f32 %v5360_v1, %v950_v45  ;;  %v951_v51 = vmul.f32 0.015625, %v900_v14  ;;  %v1013_v53 = vmul.f32 %v5547_v55, %v5547_v55  ;;  %v1082_v41 = vsel %vm831_vm0, %v1012_v19, 0.0 }
 0x224   : > { %v903_v23 = vpop.xlane.xlu1 %902 }
 0x225   : > { %v5559_v47 = vsub.f32 %v5357_v63, %v951_v51  ;;  %v952_v34 = vmul.f32 0.015625, %v903_v23  ;;  %v1085_v56 = vsel %vm831_vm0, %v1013_v53, 0.0  ;;  %v1014_v50 = vmul.f32 %v5553_v31, %v5553_v31  ;;  %v4319_v53 = vld [vmem:[%s7018_s5 + $0x18] sm:$0xff]  }
 0x226   : > { %1083 = vadd.xlane.f32.xlu1 %v1082_v41  ;;  %1086 = vadd.xlane.f32.xlu0 %v1085_v56  ;;  %v906_v45 = vpop.xlane.xlu0 %905 }
 0x227   : > { %v5565_v5 = vsub.f32 %v5365_v4, %v952_v34  ;;  %v953_v14 = vmul.f32 0.015625, %v906_v45  ;;  %v1015_v1 = vmul.f32 %v5559_v47, %v5559_v47  ;;  %v1088_v51 = vsel %vm831_vm0, %v1014_v50, 0.0  ;;  %4150 = vmatprep.subr.bf16.mxu0 %v4319_v53  ;;  %4227 = vmatprep.subr.bf16.mxu1 %v4319_v53 }
 0x228   : > { %v909_v19 = vpop.xlane.xlu1 %908  ;;  %4151 = vmatpush3.bf16.msra.mxu0 %v4319_v53  ;;  %4231 = vmatpush3.bf16.msra.mxu1 %v4319_v53 }
 0x229   : > { %v5574_v23 = vsub.f32 %v5372_v10, %v953_v14  ;;  %v954_v41 = vmul.f32 0.015625, %v909_v19  ;;  %v1091_v56 = vsel %vm831_vm0, %v1015_v1, 0.0  ;;  %v1016_v34 = vmul.f32 %v5565_v5, %v5565_v5 }
 0x22a   : > { %1089 = vadd.xlane.f32.xlu1 %v1088_v51  ;;  %1092 = vadd.xlane.f32.xlu0 %v1091_v56  ;;  %v912_v45 = vpop.xlane.xlu0 %911 }
 0x22b   : > { %v5580_v4 = vsub.f32 %v5380_v18, %v954_v41  ;;  %v955_v50 = vmul.f32 0.015625, %v912_v45  ;;  %v1017_v63 = vmul.f32 %v5574_v23, %v5574_v23  ;;  %v1094_v19 = vsel %vm831_vm0, %v1016_v34, 0.0 }
 0x22c   : > { %v915_v14 = vpop.xlane.xlu1 %914 }
 0x22d   : > { %v5586_v1 = vsub.f32 %v5377_v17, %v955_v50  ;;  %v956_v51 = vmul.f32 0.015625, %v915_v14  ;;  %v1097_v56 = vsel %vm831_vm0, %v1017_v63, 0.0  ;;  %v1018_v41 = vmul.f32 %v5580_v4, %v5580_v4 }
 0x22e   : > { %1095 = vadd.xlane.f32.xlu1 %v1094_v19  ;;  %1098 = vadd.xlane.f32.xlu0 %v1097_v56  ;;  %v918_v45 = vpop.xlane.xlu0 %917 }
 0x22f   : > { %v5592_v18 = vsub.f32 %v5385_v21, %v956_v51  ;;  %v957_v10 = vmul.f32 0.015625, %v918_v45  ;;  %v1019_v34 = vmul.f32 %v5586_v1, %v5586_v1  ;;  %v1100_v50 = vsel %vm831_vm0, %v1018_v41, 0.0 }
 0x230   : > { %v921_v53 = vpop.xlane.xlu1 %920 }
 0x231   : > { %v5598_v14 = vsub.f32 %v5392_v29, %v957_v10  ;;  %v958_v63 = vmul.f32 0.015625, %v921_v53  ;;  %v1103_v17 = vsel %vm831_vm0, %v1019_v34, 0.0  ;;  %v1020_v19 = vmul.f32 %v5592_v18, %v5592_v18 }
 0x232   : > { %1101 = vadd.xlane.f32.xlu1 %v1100_v50  ;;  %1104 = vadd.xlane.f32.xlu0 %v1103_v17  ;;  %v924_v51 = vpop.xlane.xlu0 %923 }
 0x233   : > { %v5604_v56 = vsub.f32 %v5403_v38, %v958_v63  ;;  %v959_v45 = vmul.f32 0.015625, %v924_v51  ;;  %v1021_v21 = vmul.f32 %v5598_v14, %v5598_v14  ;;  %v1106_v10 = vsel %vm831_vm0, %v1020_v19, 0.0 }
 0x234   : > { %v927_v41 = vpop.xlane.xlu1 %926 }
 0x235   : > { %v5610_v53 = vsub.f32 %v5400_v35, %v959_v45  ;;  %v960_v34 = vmul.f32 0.015625, %v927_v41  ;;  %v1109_v29 = vsel %vm831_vm0, %v1021_v21, 0.0  ;;  %v1022_v17 = vmul.f32 %v5604_v56, %v5604_v56 }
 0x236   : > { %1107 = vadd.xlane.f32.xlu1 %v1106_v10  ;;  %1110 = vadd.xlane.f32.xlu0 %v1109_v29 }
 0x237   : > { %v5616_v50 = vsub.f32 %v5397_v33, %v960_v34  ;;  %v1023_v63 = vmul.f32 %v5610_v53, %v5610_v53  ;;  %v1112_v51 = vsel %vm831_vm0, %v1022_v17, 0.0 }
 0x239   : > { %v1115_v19 = vsel %vm831_vm0, %v1023_v63, 0.0  ;;  %v1024_v45 = vmul.f32 %v5616_v50, %v5616_v50 }
 0x23a   : > { %1113 = vadd.xlane.f32.xlu1 %v1112_v51  ;;  %1116 = vadd.xlane.f32.xlu0 %v1115_v19 }
 0x23b   : > { %v1118_v21 = vsel %vm831_vm0, %v1024_v45, 0.0 }
 0x23e   : > { %1119 = vadd.xlane.f32.xlu1 %v1118_v21 }
 0x28b   : > { %v1027_v41 = vpop.xlane.xlu0 %1026 }
 0x28c   : > { %v1121_v29 = vmul.f32 0.015625, %v1027_v41 }
 0x28e   : > { %v1153_v10 = vadd.f32 1e-05, %v1121_v29 }
 0x28f   : > { %v1030_v34 = vpop.xlane.xlu1 %1029  ;;  %v1033_v33 = vpop.xlane.xlu0 %1032 }
 0x290   : > { %4324 = vrsqrt.f32 %v1153_v10  ;;  %v1122_v38 = vmul.f32 0.015625, %v1030_v34  ;;  %v1123_v35 = vmul.f32 0.015625, %v1033_v33  ;;  %v5628_v33 = vld [vmem:[%s7016_s3] ss:$0 sm:$0xff] }
 0x292   : > { %v1154_v49 = vadd.f32 1e-05, %v1122_v38  ;;  %v1155_v17 = vadd.f32 1e-05, %v1123_v35 }
 0x293   : > { %v1036_v48 = vpop.xlane.xlu1 %1035  ;;  %v1039_v63 = vpop.xlane.xlu0 %1038 }
 0x294   : > { %4326 = vrsqrt.f32 %v1154_v49  ;;  %v1124_v39 = vmul.f32 0.015625, %v1036_v48  ;;  %v1125_v44 = vmul.f32 0.015625, %v1039_v63 }
 0x295   : > { %4328 = vrsqrt.f32 %v1155_v17 }
 0x296   : > { %v1156_v51 = vadd.f32 1e-05, %v1124_v39  ;;  %v1157_v19 = vadd.f32 1e-05, %v1125_v44  ;;  %v5634_v39 = vld [vmem:[%s7017_s4] ss:$0 sm:$0xff] }
 0x297   : > { %v1042_v45 = vpop.xlane.xlu1 %1041  ;;  %v1045_v21 = vpop.xlane.xlu0 %1044 }
 0x298   : > { %4330 = vrsqrt.f32 %v1156_v51  ;;  %v1126_v41 = vmul.f32 0.015625, %v1042_v45  ;;  %v1127_v29 = vmul.f32 0.015625, %v1045_v21 }
 0x299   : > { %4332 = vrsqrt.f32 %v1157_v19 }
 0x29a   : > { %v4325_v37 = vpop.eup %4324  ;;  %v1158_v35 = vadd.f32 1e-05, %v1126_v41  ;;  %v1159_v38 = vadd.f32 1e-05, %v1127_v29 }
 0x29b   : > { %v1217_v48 = vmul.f32 %v4325_v37, %v5431_v59  ;;  %v1048_v49 = vpop.xlane.xlu1 %1047  ;;  %v1051_v10 = vpop.xlane.xlu0 %1050 }
 0x29c   : > { %4334 = vrsqrt.f32 %v1158_v35  ;;  %v1128_v44 = vmul.f32 0.015625, %v1048_v49  ;;  %v1129_v34 = vmul.f32 0.015625, %v1051_v10 }
 0x29d   : > { %4336 = vrsqrt.f32 %v1159_v38  ;;  %v1255_v17 = vmul.f32 %v5628_v33, %v1217_v48 }
 0x29e   : > { %v4327_v63 = vpop.eup %4326  ;;  %v1160_v51 = vadd.f32 1e-05, %v1128_v44  ;;  %v1161_v19 = vadd.f32 1e-05, %v1129_v34 }
 0x29f   : > { %v4329_v45 = vpop.eup %4328  ;;  %v1218_v21 = vmul.f32 %v4327_v63, %v5439_v11  ;;  %v1054_v37 = vpop.xlane.xlu1 %1053  ;;  %v1293_v41 = vadd.f32 %v5634_v39, %v1255_v17 }
 0x2a0   : > { %v1057_v59 = vpop.xlane.xlu0 %1056  ;;  %v1219_v29 = vmul.f32 %v4329_v45, %v5428_v57  ;;  %4338 = vrsqrt.f32 %v1160_v51  ;;  %v1130_v36 = vmul.f32 0.015625, %v1054_v37 }
 0x2a1   : > { %v1131_v35 = vmul.f32 0.015625, %v1057_v59  ;;  %4340 = vrsqrt.f32 %v1161_v19  ;;  %v1256_v38 = vmul.f32 %v5628_v33, %v1218_v21  ;;  %v1325_v32 = vmax.f32 %v1293_v41, 0.0 }
 0x2a2   : > { %v4331_v49 = vpop.eup %4330  ;;  %v1257_v48 = vmul.f32 %v5628_v33, %v1219_v29  ;;  %v1162_v10 = vadd.f32 1e-05, %v1130_v36 }
 0x2a3   : > { %v1163_v44 = vadd.f32 1e-05, %v1131_v35  ;;  %v4333_v34 = vpop.eup %4332  ;;  %v1220_v11 = vmul.f32 %v4331_v49, %v5436_v8  ;;  %v1060_v63 = vpop.xlane.xlu1 %1059  ;;  %v1294_v17 = vadd.f32 %v5634_v39, %v1256_v38 }
 0x2a4   : > { %v1063_v27 = vpop.xlane.xlu0 %1062  ;;  %v1295_v57 = vadd.f32 %v5634_v39, %v1257_v48  ;;  %v1221_v51 = vmul.f32 %v4333_v34, %v5449_v30  ;;  %4342 = vrsqrt.f32 %v1162_v10  ;;  %v1132_v19 = vmul.f32 0.015625, %v1060_v63 }
 0x2a5   : > { %v1258_v45 = vmul.f32 %v5628_v33, %v1220_v11  ;;  %4344 = vrsqrt.f32 %v1163_v44  ;;  %v1133_v21 = vmul.f32 0.015625, %v1063_v27  ;;  %v1326_v36 = vmax.f32 %v1294_v17, 0.0 }
 0x2a6   : > { %v4335_v37 = vpop.eup %4334  ;;  %v1327_v59 = vmax.f32 %v1295_v57, 0.0  ;;  %v1164_v29 = vadd.f32 1e-05, %v1132_v19  ;;  %v1259_v8 = vmul.f32 %v5628_v33, %v1221_v51 }
 0x2a7   : > { %v4337_v35 = vpop.eup %4336  ;;  %v1296_v38 = vadd.f32 %v5634_v39, %v1258_v45  ;;  %v1222_v41 = vmul.f32 %v4335_v37, %v5454_v43  ;;  %v1165_v49 = vadd.f32 1e-05, %v1133_v21  ;;  %v1066_v48 = vpop.xlane.xlu1 %1065  ;;  %v1357_v10 = vpack.c.bf16 %v1326_v36, %v1325_v32 }
 0x2a8   : > { %v1069_v30 = vpop.xlane.xlu0 %1068  ;;  %v1223_v34 = vmul.f32 %v4337_v35, %v5460_v52  ;;  %4346 = vrsqrt.f32 %v1164_v29  ;;  %v1134_v44 = vmul.f32 0.015625, %v1066_v48  ;;  %v1297_v17 = vadd.f32 %v5634_v39, %v1259_v8 }
 0x2a9   : > { %v1135_v27 = vmul.f32 0.015625, %v1069_v30  ;;  %v1328_v11 = vmax.f32 %v1296_v38, 0.0  ;;  %4348 = vrsqrt.f32 %v1165_v49  ;;  %4152 = vmatprep.mubr.msk.bf16.mxu0 %vm831_vm0, %v1357_v10  ;;  %v1260_v63 = vmul.f32 %v5628_v33, %v1222_v41 }
 0x2aa   : > { %v4339_v57 = vpop.eup %4338  ;;  %v1166_v51 = vadd.f32 1e-05, %v1134_v44  ;;  %v1261_v19 = vmul.f32 %v5628_v33, %v1223_v34  ;;  %v1329_v29 = vmax.f32 %v1297_v17, 0.0 }
 0x2ab   : > { %v1167_v43 = vadd.f32 1e-05, %v1135_v27  ;;  %v4341_v45 = vpop.eup %4340  ;;  %v1224_v32 = vmul.f32 %v4339_v57, %v5466_v2  ;;  %v1072_v52 = vpop.xlane.xlu1 %1071  ;;  %v1358_v36 = vpack.c.bf16 %v1328_v11, %v1327_v59  ;;  %v1298_v37 = vadd.f32 %v5634_v39, %v1260_v63 }
 0x2ac   : > { %v1075_v21 = vpop.xlane.xlu0 %1074  ;;  %v1225_v35 = vmul.f32 %v4341_v45, %v5472_v16  ;;  %4350 = vrsqrt.f32 %v1166_v51  ;;  %v1136_v38 = vmul.f32 0.015625, %v1072_v52  ;;  %v1299_v48 = vadd.f32 %v5634_v39, %v1261_v19 }
 0x2ad   : > { %v1137_v41 = vmul.f32 0.015625, %v1075_v21  ;;  %4352 = vrsqrt.f32 %v1167_v43  ;;  %4153 = vmatmul.mubr.msk.bf16.vlgmr.msra.gmra.mrb[32].mxu0 %vm831_vm0, %v1358_v36  ;;  %v1330_v8 = vmax.f32 %v1298_v37, 0.0  ;;  %v1262_v49 = vmul.f32 %v5628_v33, %v1224_v32 }
 0x2ae   : > { %v4343_v2 = vpop.eup %4342  ;;  %v1168_v30 = vadd.f32 1e-05, %v1136_v38  ;;  %v1263_v59 = vmul.f32 %v5628_v33, %v1225_v35  ;;  %v1331_v17 = vmax.f32 %v1299_v48, 0.0 }
 0x2af   : > { %v1169_v10 = vadd.f32 1e-05, %v1137_v41  ;;  %v4345_v34 = vpop.eup %4344  ;;  %v1226_v44 = vmul.f32 %v4343_v2, %v5478_v28  ;;  %v1078_v16 = vpop.xlane.xlu1 %1077  ;;  %v1359_v11 = vpack.c.bf16 %v1330_v8, %v1329_v29  ;;  %v1300_v63 = vadd.f32 %v5634_v39, %v1262_v49 }
 0x2b0   : > { %v1081_v27 = vpop.xlane.xlu0 %1080  ;;  %v1227_v57 = vmul.f32 %v4345_v34, %v5484_v58  ;;  %4354 = vrsqrt.f32 %v1168_v30  ;;  %v1138_v51 = vmul.f32 0.015625, %v1078_v16  ;;  %v1301_v32 = vadd.f32 %v5634_v39, %v1263_v59 }
 0x2b1   : > { %v1139_v43 = vmul.f32 0.015625, %v1081_v27  ;;  %4356 = vrsqrt.f32 %v1169_v10  ;;  %4156 = vmatprep.mubr.msk.bf16.mxu0 %vm831_vm0, %v1359_v11  ;;  %v1332_v19 = vmax.f32 %v1300_v63, 0.0  ;;  %v1264_v45 = vmul.f32 %v5628_v33, %v1226_v44 }
 0x2b2   : > { %v4347_v28 = vpop.eup %4346  ;;  %v1170_v52 = vadd.f32 1e-05, %v1138_v51  ;;  %v1265_v36 = vmul.f32 %v5628_v33, %v1227_v57  ;;  %v1333_v8 = vmax.f32 %v1301_v32, 0.0 }
 0x2b3   : > { %v1171_v21 = vadd.f32 1e-05, %v1139_v43  ;;  %v4349_v37 = vpop.eup %4348  ;;  %v1228_v29 = vmul.f32 %v4347_v28, %v5490_v54  ;;  %v1084_v58 = vpop.xlane.xlu1 %1083  ;;  %v1360_v38 = vpack.c.bf16 %v1332_v19, %v1331_v17  ;;  %v1302_v41 = vadd.f32 %v5634_v39, %v1264_v45 }
 0x2b4   : > { %v1087_v35 = vpop.xlane.xlu0 %1086  ;;  %4358 = vrsqrt.f32 %v1170_v52  ;;  %v1140_v49 = vmul.f32 0.015625, %v1084_v58  ;;  %v1303_v2 = vadd.f32 %v5634_v39, %v1265_v36  ;;  %v1229_v59 = vmul.f32 %v4349_v37, %v5496_v7 }
 0x2b5   : > { %v1141_v48 = vmul.f32 0.015625, %v1087_v35  ;;  %4360 = vrsqrt.f32 %v1171_v21  ;;  %4157 = vmatmul.mubr.msk.bf16.gmra.mrb[36].mxu0 %vm831_vm0, %v1360_v38  ;;  %v1334_v30 = vmax.f32 %v1302_v41, 0.0  ;;  %v1266_v10 = vmul.f32 %v5628_v33, %v1228_v29 }
 0x2b6   : > { %v4351_v54 = vpop.eup %4350  ;;  %v1172_v34 = vadd.f32 1e-05, %v1140_v49  ;;  %v1335_v16 = vmax.f32 %v1303_v2, 0.0  ;;  %v1267_v43 = vmul.f32 %v5628_v33, %v1229_v59 }
 0x2b7   : > { %v1173_v44 = vadd.f32 1e-05, %v1141_v48  ;;  %v4353_v27 = vpop.eup %4352  ;;  %v1090_v11 = vpop.xlane.xlu1 %1089  ;;  %v1361_v17 = vpack.c.bf16 %v1334_v30, %v1333_v8  ;;  %v1304_v57 = vadd.f32 %v5634_v39, %v1266_v10  ;;  %v1230_v51 = vmul.f32 %v4351_v54, %v5502_v26 }
 0x2b8   : > { %v1093_v63 = vpop.xlane.xlu0 %1092  ;;  %v1231_v19 = vmul.f32 %v4353_v27, %v5508_v46  ;;  %4362 = vrsqrt.f32 %v1172_v34  ;;  %v1142_v45 = vmul.f32 0.015625, %v1090_v11  ;;  %v1305_v52 = vadd.f32 %v5634_v39, %v1267_v43 }
 0x2b9   : > { %v1143_v32 = vmul.f32 0.015625, %v1093_v63  ;;  %4364 = vrsqrt.f32 %v1173_v44  ;;  %4160 = vmatprep.mubr.msk.bf16.mxu0 %vm831_vm0, %v1361_v17  ;;  %v1336_v7 = vmax.f32 %v1304_v57, 0.0  ;;  %v1268_v28 = vmul.f32 %v5628_v33, %v1230_v51 }
 0x2ba   : > { %v4355_v21 = vpop.eup %4354  ;;  %v1174_v36 = vadd.f32 1e-05, %v1142_v45  ;;  %v1269_v26 = vmul.f32 %v5628_v33, %v1231_v19  ;;  %v1337_v8 = vmax.f32 %v1305_v52, 0.0 }
 0x2bb   : > { %v1175_v37 = vadd.f32 1e-05, %v1143_v32  ;;  %v4357_v29 = vpop.eup %4356  ;;  %v1232_v58 = vmul.f32 %v4355_v21, %v5514_v61  ;;  %v1096_v46 = vpop.xlane.xlu1 %1095  ;;  %v1362_v38 = vpack.c.bf16 %v1336_v7, %v1335_v16  ;;  %v1306_v41 = vadd.f32 %v5634_v39, %v1268_v28 }
 0x2bc   : > { %v1099_v35 = vpop.xlane.xlu0 %1098  ;;  %v1233_v49 = vmul.f32 %v4357_v29, %v5520_v22  ;;  %4366 = vrsqrt.f32 %v1174_v36  ;;  %v1144_v48 = vmul.f32 0.015625, %v1096_v46  ;;  %v1307_v59 = vadd.f32 %v5634_v39, %v1269_v26 }
 0x2bd   : > { %v1145_v2 = vmul.f32 0.015625, %v1099_v35  ;;  %4368 = vrsqrt.f32 %v1175_v37  ;;  %4161 = vmatmul.mubr.msk.bf16.gmra.mrb[40].mxu0 %vm831_vm0, %v1362_v38  ;;  %v1338_v30 = vmax.f32 %v1306_v41, 0.0  ;;  %v1270_v10 = vmul.f32 %v5628_v33, %v1232_v58 }
 0x2be   : > { %v4359_v61 = vpop.eup %4358  ;;  %v1176_v54 = vadd.f32 1e-05, %v1144_v48  ;;  %v1271_v44 = vmul.f32 %v5628_v33, %v1233_v49  ;;  %v1339_v57 = vmax.f32 %v1307_v59, 0.0 }
 0x2bf   : > { %v1177_v34 = vadd.f32 1e-05, %v1145_v2  ;;  %v4361_v16 = vpop.eup %4360  ;;  %v1234_v27 = vmul.f32 %v4359_v61, %v5526_v42  ;;  %v1102_v22 = vpop.xlane.xlu1 %1101  ;;  %v1363_v63 = vpack.c.bf16 %v1338_v30, %v1337_v8  ;;  %v1308_v17 = vadd.f32 %v5634_v39, %v1270_v10 }
 0x2c0   : > { %v1105_v11 = vpop.xlane.xlu0 %1104  ;;  %v1235_v51 = vmul.f32 %v4361_v16, %v5535_v6  ;;  %4370 = vrsqrt.f32 %v1176_v54  ;;  %v1146_v43 = vmul.f32 0.015625, %v1102_v22  ;;  %v1309_v7 = vadd.f32 %v5634_v39, %v1271_v44 }
 0x2c1   : > { %v1147_v19 = vmul.f32 0.015625, %v1105_v11  ;;  %4372 = vrsqrt.f32 %v1177_v34  ;;  %4164 = vmatprep.mubr.msk.bf16.mxu1 %vm831_vm0, %v1363_v63  ;;  %v1340_v45 = vmax.f32 %v1308_v17, 0.0  ;;  %v1272_v32 = vmul.f32 %v5628_v33, %v1234_v27 }
 0x2c2   : > { %v4363_v42 = vpop.eup %4362  ;;  %v1178_v28 = vadd.f32 1e-05, %v1146_v43  ;;  %v1273_v21 = vmul.f32 %v5628_v33, %v1235_v51  ;;  %v1341_v46 = vmax.f32 %v1309_v7, 0.0 }
 0x2c3   : > { %v1179_v52 = vadd.f32 1e-05, %v1147_v19  ;;  %v4365_v36 = vpop.eup %4364  ;;  %v1236_v37 = vmul.f32 %v4363_v42, %v5541_v40  ;;  %v1108_v6 = vpop.xlane.xlu1 %1107  ;;  %v1364_v29 = vpack.c.bf16 %v1340_v45, %v1339_v57  ;;  %v1310_v58 = vadd.f32 %v5634_v39, %v1272_v32 }
 0x2c4   : > { %v1111_v26 = vpop.xlane.xlu0 %1110  ;;  %v1237_v35 = vmul.f32 %v4365_v36, %v5547_v55  ;;  %4374 = vrsqrt.f32 %v1178_v28  ;;  %v1148_v38 = vmul.f32 0.015625, %v1108_v6  ;;  %v1311_v48 = vadd.f32 %v5634_v39, %v1273_v21 }
 0x2c5   : > { %v1149_v41 = vmul.f32 0.015625, %v1111_v26  ;;  %4376 = vrsqrt.f32 %v1179_v52  ;;  %4165 = vmatmul.mubr.msk.bf16.vlgmr.msra.gmra.mrb[0].mxu1 %vm831_vm0, %v1364_v29  ;;  %v1342_v8 = vmax.f32 %v1310_v58, 0.0  ;;  %v1274_v49 = vmul.f32 %v5628_v33, %v1236_v37 }
 0x2c6   : > { %v4367_v40 = vpop.eup %4366  ;;  %v1180_v2 = vadd.f32 1e-05, %v1148_v38  ;;  %v1275_v10 = vmul.f32 %v5628_v33, %v1237_v35  ;;  %v1343_v16 = vmax.f32 %v1311_v48, 0.0 }
 0x2c7   : > { %v1181_v30 = vadd.f32 1e-05, %v1149_v41  ;;  %v4369_v59 = vpop.eup %4368  ;;  %v1238_v61 = vmul.f32 %v4367_v40, %v5553_v31  ;;  %v1114_v55 = vpop.xlane.xlu1 %1113  ;;  %v1365_v34 = vpack.c.bf16 %v1342_v8, %v1341_v46  ;;  %v1312_v44 = vadd.f32 %v5634_v39, %v1274_v49 }
 0x2c8   : > { %v1117_v54 = vpop.xlane.xlu0 %1116  ;;  %v1239_v27 = vmul.f32 %v4369_v59, %v5559_v47  ;;  %4378 = vrsqrt.f32 %v1180_v2  ;;  %v1150_v22 = vmul.f32 0.015625, %v1114_v55  ;;  %v1313_v57 = vadd.f32 %v5634_v39, %v1275_v10 }
 0x2c9   : > { %v1151_v11 = vmul.f32 0.015625, %v1117_v54  ;;  %4380 = vrsqrt.f32 %v1181_v30  ;;  %4168 = vmatprep.mubr.msk.bf16.mxu1 %vm831_vm0, %v1365_v34  ;;  %v1344_v63 = vmax.f32 %v1312_v44, 0.0  ;;  %v1276_v17 = vmul.f32 %v5628_v33, %v1238_v61 }
 0x2ca   : > { %v4371_v31 = vpop.eup %4370  ;;  %v1182_v51 = vadd.f32 1e-05, %v1150_v22  ;;  %v1277_v19 = vmul.f32 %v5628_v33, %v1239_v27  ;;  %v1345_v21 = vmax.f32 %v1313_v57, 0.0 }
 0x2cb   : > { %v1183_v43 = vadd.f32 1e-05, %v1151_v11  ;;  %v4373_v45 = vpop.eup %4372  ;;  %v1240_v32 = vmul.f32 %v4371_v31, %v5565_v5  ;;  %v1120_v47 = vpop.xlane.xlu1 %1119  ;;  %v1366_v7 = vpack.c.bf16 %v1344_v63, %v1343_v16  ;;  %v1314_v42 = vadd.f32 %v5634_v39, %v1276_v17 }
 0x2cc   : > { %v1241_v28 = vmul.f32 %v4373_v45, %v5574_v23  ;;  %4382 = vrsqrt.f32 %v1182_v51  ;;  %v1152_v52 = vmul.f32 0.015625, %v1120_v47  ;;  %v1315_v6 = vadd.f32 %v5634_v39, %v1277_v19 }
 0x2cd   : > { %4384 = vrsqrt.f32 %v1183_v43  ;;  %4169 = vmatmul.mubr.msk.bf16.gmra.mrb[4].mxu1 %vm831_vm0, %v1366_v7  ;;  %v1346_v36 = vmax.f32 %v1314_v42, 0.0  ;;  %v1278_v37 = vmul.f32 %v5628_v33, %v1240_v32 }
 0x2ce   : > { %v4375_v26 = vpop.eup %4374  ;;  %v1184_v29 = vadd.f32 1e-05, %v1152_v52  ;;  %v1279_v5 = vmul.f32 %v5628_v33, %v1241_v28  ;;  %v1347_v41 = vmax.f32 %v1315_v6, 0.0 }
 0x2cf   : > { %v4377_v58 = vpop.eup %4376  ;;  %v1242_v46 = vmul.f32 %v4375_v26, %v5580_v4  ;;  %v1367_v35 = vpack.c.bf16 %v1346_v36, %v1345_v21  ;;  %v1316_v23 = vadd.f32 %v5634_v39, %v1278_v37 }
 0x2d0   : > { %v1243_v38 = vmul.f32 %v4377_v58, %v5586_v1  ;;  %4386 = vrsqrt.f32 %v1184_v29  ;;  %v1317_v48 = vadd.f32 %v5634_v39, %v1279_v5 }
 0x2d1   : > { %4172 = vmatprep.mubr.msk.bf16.mxu1 %vm831_vm0, %v1367_v35  ;;  %v1348_v8 = vmax.f32 %v1316_v23, 0.0  ;;  %v1280_v49 = vmul.f32 %v5628_v33, %v1242_v46 }
 0x2d2   : > { %v4379_v40 = vpop.eup %4378  ;;  %v1281_v2 = vmul.f32 %v5628_v33, %v1243_v38  ;;  %v1349_v61 = vmax.f32 %v1317_v48, 0.0 }
 0x2d3   : > { %v4381_v30 = vpop.eup %4380  ;;  %v1244_v4 = vmul.f32 %v4379_v40, %v5592_v18  ;;  %v1368_v10 = vpack.c.bf16 %v1348_v8, %v1347_v41  ;;  %v1318_v59 = vadd.f32 %v5634_v39, %v1280_v49 }
 0x2d4   : > { %v1245_v1 = vmul.f32 %v4381_v30, %v5598_v14  ;;  %v1319_v34 = vadd.f32 %v5634_v39, %v1281_v2 }
 0x2d5   : > { %4173 = vmatmul.mubr.msk.bf16.gmra.mrb[8].mxu1 %vm831_vm0, %v1368_v10  ;;  %v1350_v55 = vmax.f32 %v1318_v59, 0.0  ;;  %v1282_v54 = vmul.f32 %v5628_v33, %v1244_v4 }
 0x2d6   : > { %v4383_v44 = vpop.eup %4382  ;;  %v1283_v16 = vmul.f32 %v5628_v33, %v1245_v1  ;;  %v1351_v14 = vmax.f32 %v1319_v34, 0.0 }
 0x2d7   : > { %v4385_v27 = vpop.eup %4384  ;;  %v1246_v22 = vmul.f32 %v4383_v44, %v5604_v56  ;;  %v1369_v18 = vpack.c.bf16 %v1350_v55, %v1349_v61  ;;  %v1320_v11 = vadd.f32 %v5634_v39, %v1282_v54 }
 0x2d8   : > { %v1247_v63 = vmul.f32 %v4385_v27, %v5610_v53  ;;  %v1321_v31 = vadd.f32 %v5634_v39, %v1283_v16 }
 0x2d9   : > { %4176 = vmatprep.mubr.msk.bf16.mxu1 %vm831_vm0, %v1369_v18  ;;  %v1352_v17 = vmax.f32 %v1320_v11, 0.0  ;;  %v1284_v57 = vmul.f32 %v5628_v33, %v1246_v22 }
 0x2da   : > { %v4387_v51 = vpop.eup %4386  ;;  %v1285_v43 = vmul.f32 %v5628_v33, %v1247_v63  ;;  %v1353_v32 = vmax.f32 %v1321_v31, 0.0 }
 0x2db   : > { %v1248_v19 = vmul.f32 %v4387_v51, %v5616_v50  ;;  %v1370_v45 = vpack.c.bf16 %v1352_v17, %v1351_v14  ;;  %v1322_v56 = vadd.f32 %v5634_v39, %v1284_v57  ;;  %v5750_v50 = vld [vmem:[%s7019_s6] ss:$0 sm:$0xff] }
 0x2dc   : > { %v1323_v7 = vadd.f32 %v5634_v39, %v1285_v43 }
 0x2dd   : > { %4177 = vmatmul.mubr.msk.bf16.gmra.mrb[12].mxu1 %vm831_vm0, %v1370_v45  ;;  %v1354_v53 = vmax.f32 %v1322_v56, 0.0  ;;  %v1286_v47 = vmul.f32 %v5628_v33, %v1248_v19 }
 0x2de   : > { %v1355_v52 = vmax.f32 %v1323_v7, 0.0 }
 0x2df   : > { %v1371_v42 = vpack.c.bf16 %v1354_v53, %v1353_v32  ;;  %v1324_v28 = vadd.f32 %v5634_v39, %v1286_v47 }
 0x2e1   : > { %4180 = vmatprep.mubr.msk.bf16.mxu1 %vm831_vm0, %v1371_v42  ;;  %v1356_v21 = vmax.f32 %v1324_v28, 0.0 }
 0x2e3   : > { %v1372_v36 = vpack.c.bf16 %v1356_v21, %v1355_v52 }
 0x2e5   : > { %4181 = vmatmul.mubr.msk.bf16.gmra.mrb[16].mxu1 %vm831_vm0, %v1372_v36 }
 0x380   : > { %v4154_v37 = vpop.f32.mrb[32].mxu0 }
 0x381   : > { %v1494_v6 = vpop.f32.mrb[33].mxu0  ;;  %v5756_v39 = vadd.f32 %v4154_v37, %v5750_v50 }
 0x382   : > { %v5753_v33 = vadd.f32 %v5750_v50, %v1494_v6  ;;  %v4155_v26 = vpop.f32.mrb[34].mxu0 }
 0x383   : > { %v1497_v29 = vpop.f32.mrb[35].mxu0  ;;  %v5764_v46 = vadd.f32 %v4155_v26, %v5750_v50  ;;  %v1629_v38 = vsel %vm831_vm0, %v5756_v39, 0.0 }
 0x384   : > { %v5759_v5 = vadd.f32 %v5750_v50, %v1497_v29  ;;  %v1623_v58 = vsel %vm831_vm0, %v5753_v33, 0.0 }
 0x385   : > { %1624 = vadd.xlane.f32.xlu0 %v1623_v58  ;;  %v1632_v48 = vsel %vm831_vm0, %v5764_v46, 0.0 }
 0x386   : > { %v1626_v35 = vsel %vm831_vm0, %v5759_v5, 0.0 }
 0x387   : > { %1627 = vadd.xlane.f32.xlu1 %v1626_v35 }
 0x388   : > { %v4158_v23 = vpop.f32.mrb[36].mxu0 }
 0x389   : > { %1630 = vadd.xlane.f32.xlu0 %v1629_v38  ;;  %v1510_v41 = vpop.f32.mrb[37].mxu0  ;;  %v5776_v2 = vadd.f32 %v4158_v23, %v5750_v50 }
 0x38a   : > { %v5771_v8 = vadd.f32 %v5750_v50, %v1510_v41  ;;  %v4159_v49 = vpop.f32.mrb[38].mxu0 }
 0x38b   : > { %1633 = vadd.xlane.f32.xlu1 %v1632_v48  ;;  %v1513_v40 = vpop.f32.mrb[39].mxu0  ;;  %v5784_v10 = vadd.f32 %v4159_v49, %v5750_v50  ;;  %v1641_v61 = vsel %vm831_vm0, %v5776_v2, 0.0 }
 0x38c   : > { %v5779_v30 = vadd.f32 %v5750_v50, %v1513_v40  ;;  %v1635_v4 = vsel %vm831_vm0, %v5771_v8, 0.0 }
 0x38d   : > { %1636 = vadd.xlane.f32.xlu0 %v1635_v4  ;;  %v1644_v44 = vsel %vm831_vm0, %v5784_v10, 0.0 }
 0x38e   : > { %v1638_v59 = vsel %vm831_vm0, %v5779_v30, 0.0 }
 0x38f   : > { %1639 = vadd.xlane.f32.xlu1 %v1638_v59 }
 0x390   : > { %v4162_v1 = vpop.f32.mrb[40].mxu0 }
 0x391   : > { %1642 = vadd.xlane.f32.xlu0 %v1641_v61  ;;  %v1526_v55 = vpop.f32.mrb[41].mxu0  ;;  %v5796_v27 = vadd.f32 %v4162_v1, %v5750_v50 }
 0x392   : > { %v5791_v54 = vadd.f32 %v5750_v50, %v1526_v55  ;;  %v4163_v34 = vpop.f32.mrb[42].mxu0 }
 0x393   : > { %1645 = vadd.xlane.f32.xlu1 %v1644_v44  ;;  %v1529_v16 = vpop.f32.mrb[43].mxu0  ;;  %v5804_v11 = vadd.f32 %v4163_v34, %v5750_v50  ;;  %v1653_v17 = vsel %vm831_vm0, %v5796_v27, 0.0 }
 0x394   : > { %v5799_v22 = vadd.f32 %v5750_v50, %v1529_v16  ;;  %v1647_v18 = vsel %vm831_vm0, %v5791_v54, 0.0 }
 0x395   : > { %1648 = vadd.xlane.f32.xlu0 %v1647_v18  ;;  %v1656_v43 = vsel %vm831_vm0, %v5804_v11, 0.0 }
 0x396   : > { %v1650_v63 = vsel %vm831_vm0, %v5799_v22, 0.0 }
 0x397   : > { %1651 = vadd.xlane.f32.xlu1 %v1650_v63 }
 0x398   : > { %v4166_v14 = vpop.f32.mrb[0].mxu1 }
 0x399   : > { %1654 = vadd.xlane.f32.xlu0 %v1653_v17  ;;  %v1542_v57 = vpop.f32.mrb[1].mxu1  ;;  %v5816_v45 = vadd.f32 %v4166_v14, %v5750_v50 }
 0x39a   : > { %v5811_v31 = vadd.f32 %v5750_v50, %v1542_v57  ;;  %v4167_v51 = vpop.f32.mrb[2].mxu1 }
 0x39b   : > { %1657 = vadd.xlane.f32.xlu1 %v1656_v43  ;;  %v1545_v19 = vpop.f32.mrb[3].mxu1  ;;  %v5824_v53 = vadd.f32 %v4167_v51, %v5750_v50  ;;  %v1665_v42 = vsel %vm831_vm0, %v5816_v45, 0.0 }
 0x39c   : > { %v5819_v56 = vadd.f32 %v5750_v50, %v1545_v19  ;;  %v1659_v32 = vsel %vm831_vm0, %v5811_v31, 0.0 }
 0x39d   : > { %1660 = vadd.xlane.f32.xlu0 %v1659_v32  ;;  %v1668_v36 = vsel %vm831_vm0, %v5824_v53, 0.0 }
 0x39e   : > { %v1662_v47 = vsel %vm831_vm0, %v5819_v56, 0.0 }
 0x39f   : > { %1663 = vadd.xlane.f32.xlu1 %v1662_v47 }
 0x3a0   : > { %v4170_v7 = vpop.f32.mrb[4].mxu1 }
 0x3a1   : > { %1666 = vadd.xlane.f32.xlu0 %v1665_v42  ;;  %v1558_v28 = vpop.f32.mrb[5].mxu1  ;;  %v5836_v6 = vadd.f32 %v4170_v7, %v5750_v50 }
 0x3a2   : > { %v5831_v52 = vadd.f32 %v5750_v50, %v1558_v28  ;;  %v4171_v21 = vpop.f32.mrb[6].mxu1 }
 0x3a3   : > { %1669 = vadd.xlane.f32.xlu1 %v1668_v36  ;;  %v1561_v37 = vpop.f32.mrb[7].mxu1  ;;  %v5844_v58 = vadd.f32 %v4171_v21, %v5750_v50  ;;  %v1677_v38 = vsel %vm831_vm0, %v5836_v6, 0.0 }
 0x3a4   : > { %v5839_v26 = vadd.f32 %v5750_v50, %v1561_v37  ;;  %v1671_v29 = vsel %vm831_vm0, %v5831_v52, 0.0 }
 0x3a5   : > { %1672 = vadd.xlane.f32.xlu0 %v1671_v29  ;;  %v1680_v40 = vsel %vm831_vm0, %v5844_v58, 0.0 }
 0x3a6   : > { %v1674_v35 = vsel %vm831_vm0, %v5839_v26, 0.0 }
 0x3a7   : > { %1675 = vadd.xlane.f32.xlu1 %v1674_v35 }
 0x3a8   : > { %v4174_v23 = vpop.f32.mrb[8].mxu1 }
 0x3a9   : > { %1678 = vadd.xlane.f32.xlu0 %v1677_v38  ;;  %v1574_v41 = vpop.f32.mrb[9].mxu1  ;;  %v5856_v59 = vadd.f32 %v4174_v23, %v5750_v50 }
 0x3aa   : > { %v5851_v49 = vadd.f32 %v5750_v50, %v1574_v41  ;;  %v4175_v48 = vpop.f32.mrb[10].mxu1 }
 0x3ab   : > { %1681 = vadd.xlane.f32.xlu1 %v1680_v40  ;;  %v1577_v4 = vpop.f32.mrb[11].mxu1  ;;  %v5864_v55 = vadd.f32 %v4175_v48, %v5750_v50  ;;  %v1689_v16 = vsel %vm831_vm0, %v5856_v59, 0.0 }
 0x3ac   : > { %v5859_v1 = vadd.f32 %v5750_v50, %v1577_v4  ;;  %v1683_v61 = vsel %vm831_vm0, %v5851_v49, 0.0 }
 0x3ad   : > { %1684 = vadd.xlane.f32.xlu0 %v1683_v61  ;;  %v1692_v17 = vsel %vm831_vm0, %v5864_v55, 0.0 }
 0x3ae   : > { %v1686_v34 = vsel %vm831_vm0, %v5859_v1, 0.0 }
 0x3af   : > { %1687 = vadd.xlane.f32.xlu1 %v1686_v34 }
 0x3b0   : > { %v4178_v44 = vpop.f32.mrb[12].mxu1 }
 0x3b1   : > { %1690 = vadd.xlane.f32.xlu0 %v1689_v16  ;;  %v1590_v18 = vpop.f32.mrb[13].mxu1  ;;  %v5876_v51 = vadd.f32 %v4178_v44, %v5750_v50 }
 0x3b2   : > { %v5871_v63 = vadd.f32 %v5750_v50, %v1590_v18  ;;  %v4179_v14 = vpop.f32.mrb[14].mxu1 }
 0x3b3   : > { %1693 = vadd.xlane.f32.xlu1 %v1692_v17  ;;  %v1593_v57 = vpop.f32.mrb[15].mxu1  ;;  %v5884_v32 = vadd.f32 %v4179_v14, %v5750_v50  ;;  %v1701_v42 = vsel %vm831_vm0, %v5876_v51, 0.0 }
 0x3b4   : > { %v5879_v43 = vadd.f32 %v5750_v50, %v1593_v57  ;;  %v1695_v19 = vsel %vm831_vm0, %v5871_v63, 0.0 }
 0x3b5   : > { %1696 = vadd.xlane.f32.xlu0 %v1695_v19  ;;  %v1704_v37 = vsel %vm831_vm0, %v5884_v32, 0.0 }
 0x3b6   : > { %v1698_v47 = vsel %vm831_vm0, %v5879_v43, 0.0 }
 0x3b7   : > { %1699 = vadd.xlane.f32.xlu1 %v1698_v47 }
 0x3b8   : > { %v4182_v7 = vpop.f32.mrb[16].mxu1 }
 0x3b9   : > { %1702 = vadd.xlane.f32.xlu0 %v1701_v42  ;;  %v1606_v28 = vpop.f32.mrb[17].mxu1  ;;  %v5896_v35 = vadd.f32 %v4182_v7, %v5750_v50 }
 0x3ba   : > { %v5891_v21 = vadd.f32 %v5750_v50, %v1606_v28  ;;  %v4183_v36 = vpop.f32.mrb[18].mxu1 }
 0x3bb   : > { %1705 = vadd.xlane.f32.xlu1 %v1704_v37  ;;  %v1609_v29 = vpop.f32.mrb[19].mxu1  ;;  %v5904_v41 = vadd.f32 %v4183_v36, %v5750_v50  ;;  %v1713_v40 = vsel %vm831_vm0, %v5896_v35, 0.0 }
 0x3bc   : > { %v5899_v23 = vadd.f32 %v5750_v50, %v1609_v29  ;;  %v1707_v38 = vsel %vm831_vm0, %v5891_v21, 0.0 }
 0x3bd   : > { %1708 = vadd.xlane.f32.xlu0 %v1707_v38  ;;  %v1716_v4 = vsel %vm831_vm0, %v5904_v41, 0.0 }
 0x3be   : > { %v1710_v48 = vsel %vm831_vm0, %v5899_v23, 0.0 }
 0x3bf   : > { %1711 = vadd.xlane.f32.xlu1 %v1710_v48 }
 0x3c1   : > { %1714 = vadd.xlane.f32.xlu0 %v1713_v40 }
 0x3c3   : > { %1717 = vadd.xlane.f32.xlu1 %v1716_v4 }
 0x412   : > { %v1625_v61 = vpop.xlane.xlu0 %1624 }
 0x413   : > { %v1719_v34 = vmul.f32 0.015625, %v1625_v61 }
 0x414   : > { %v1628_v44 = vpop.xlane.xlu1 %1627 }
 0x415   : > { %v5913_v16 = vsub.f32 %v5753_v33, %v1719_v34  ;;  %v1720_v50 = vmul.f32 0.015625, %v1628_v44 }
 0x416   : > { %v1631_v18 = vpop.xlane.xlu0 %1630 }
 0x417   : > { %v1721_v14 = vmul.f32 0.015625, %v1631_v18  ;;  %v1783_v17 = vmul.f32 %v5913_v16, %v5913_v16  ;;  %v5922_v42 = vsub.f32 %v5759_v5, %v1720_v50 }
 0x418   : > { %v1634_v57 = vpop.xlane.xlu1 %1633 }
 0x419   : > { %v5918_v19 = vsub.f32 %v5756_v39, %v1721_v14  ;;  %v1722_v47 = vmul.f32 0.015625, %v1634_v57  ;;  %v1815_v7 = vsel %vm831_vm0, %v1783_v17, 0.0  ;;  %v1784_v40 = vmul.f32 %v5922_v42, %v5922_v42  ;;  %v4320_v57 = vld [vmem:[#allocation9] sm:$0xff]  }
 0x41a   : > { %1816 = vadd.xlane.f32.xlu0 %v1815_v7  ;;  %v1637_v28 = vpop.xlane.xlu0 %1636  ;;  %4184 = vmatprep.subr.bf16.mxu1 %v4320_v57 }
 0x41b   : > { %v5925_v33 = vsub.f32 %v5764_v46, %v1722_v47  ;;  %v1723_v36 = vmul.f32 0.015625, %v1637_v28  ;;  %v1785_v37 = vmul.f32 %v5918_v19, %v5918_v19  ;;  %v1818_v17 = vsel %vm831_vm0, %v1784_v40, 0.0  ;;  %4185 = vmatpush3.bf16.msra.mxu1 %v4320_v57 }
 0x41c   : > { %v1640_v29 = vpop.xlane.xlu1 %1639 }
 0x41d   : > { %v5930_v38 = vsub.f32 %v5771_v8, %v1723_v36  ;;  %v1821_v39 = vsel %vm831_vm0, %v1785_v37, 0.0  ;;  %v1786_v48 = vmul.f32 %v5925_v33, %v5925_v33  ;;  %v1724_v46 = vmul.f32 0.015625, %v1640_v29 }
 0x41e   : > { %1822 = vadd.xlane.f32.xlu0 %v1821_v39  ;;  %v1643_v5 = vpop.xlane.xlu0 %1642 }
 0x41f   : > { %v1725_v4 = vmul.f32 0.015625, %v1643_v5  ;;  %v1824_v61 = vsel %vm831_vm0, %v1786_v48, 0.0  ;;  %v1787_v34 = vmul.f32 %v5930_v38, %v5930_v38  ;;  %v5946_v47 = vsub.f32 %v5779_v30, %v1724_v46 }
 0x420   : > { %v1646_v44 = vpop.xlane.xlu1 %1645  ;;  %1825 = vadd.xlane.f32.xlu1 %v1824_v61 }
 0x421   : > { %v5941_v8 = vsub.f32 %v5776_v2, %v1725_v4  ;;  %v1726_v50 = vmul.f32 0.015625, %v1646_v44  ;;  %v1827_v18 = vsel %vm831_vm0, %v1787_v34, 0.0  ;;  %v1788_v46 = vmul.f32 %v5946_v47, %v5946_v47 }
 0x422   : > { %1828 = vadd.xlane.f32.xlu0 %v1827_v18  ;;  %v1649_v14 = vpop.xlane.xlu0 %1648 }
 0x423   : > { %v5949_v7 = vsub.f32 %v5784_v10, %v1726_v50  ;;  %v1727_v28 = vmul.f32 0.015625, %v1649_v14  ;;  %v1789_v36 = vmul.f32 %v5941_v8, %v5941_v8 }
 0x424   : > { %v1652_v2 = vpop.xlane.xlu1 %1651  ;;  %1819 = vadd.xlane.f32.xlu1 %v1818_v17  ;;  %v1830_v17 = vsel %vm831_vm0, %v1788_v46, 0.0 }
 0x425   : > { %v5954_v37 = vsub.f32 %v5791_v54, %v1727_v28  ;;  %v1833_v29 = vsel %vm831_vm0, %v1789_v36, 0.0  ;;  %v1790_v39 = vmul.f32 %v5949_v7, %v5949_v7  ;;  %v1728_v30 = vmul.f32 0.015625, %v1652_v2 }
 0x426   : > { %1834 = vadd.xlane.f32.xlu0 %v1833_v29  ;;  %v1655_v10 = vpop.xlane.xlu0 %1654 }
 0x427   : > { %v1729_v48 = vmul.f32 0.015625, %v1655_v10  ;;  %v1836_v5 = vsel %vm831_vm0, %v1790_v39, 0.0  ;;  %v1791_v40 = vmul.f32 %v5954_v37, %v5954_v37  ;;  %v5969_v44 = vsub.f32 %v5799_v22, %v1728_v30 }
 0x428   : > { %v1658_v54 = vpop.xlane.xlu1 %1657  ;;  %1837 = vadd.xlane.f32.xlu1 %v1836_v5 }
 0x429   : > { %v5965_v4 = vsub.f32 %v5796_v27, %v1729_v48  ;;  %v1730_v61 = vmul.f32 0.015625, %v1658_v54  ;;  %v1839_v34 = vsel %vm831_vm0, %v1791_v40, 0.0 }
 0x42a   : > { %1840 = vadd.xlane.f32.xlu0 %v1839_v34  ;;  %v1661_v50 = vpop.xlane.xlu0 %1660 }
 0x42b   : > { %v5972_v18 = vsub.f32 %v5804_v11, %v1730_v61  ;;  %v1731_v14 = vmul.f32 0.015625, %v1661_v50  ;;  %v1793_v57 = vmul.f32 %v5965_v4, %v5965_v4  ;;  %v1792_v11 = vmul.f32 %v5969_v44, %v5969_v44 }
 0x42c   : > { %v1664_v28 = vpop.xlane.xlu1 %1663  ;;  %1831 = vadd.xlane.f32.xlu1 %v1830_v17 }
 0x42d   : > { %v5978_v27 = vsub.f32 %v5811_v31, %v1731_v14  ;;  %v1845_v36 = vsel %vm831_vm0, %v1793_v57, 0.0  ;;  %v1794_v22 = vmul.f32 %v5972_v18, %v5972_v18  ;;  %v1732_v29 = vmul.f32 0.015625, %v1664_v28 }
 0x42e   : > { %1846 = vadd.xlane.f32.xlu0 %v1845_v36  ;;  %v1667_v2 = vpop.xlane.xlu0 %1666  ;;  %v1842_v54 = vsel %vm831_vm0, %v1792_v11, 0.0 }
 0x42f   : > { %v1733_v39 = vmul.f32 0.015625, %v1667_v2  ;;  %v1848_v30 = vsel %vm831_vm0, %v1794_v22, 0.0  ;;  %v1795_v10 = vmul.f32 %v5978_v27, %v5978_v27  ;;  %v5994_v61 = vsub.f32 %v5819_v56, %v1732_v29 }
 0x430   : > { %v1670_v48 = vpop.xlane.xlu1 %1669  ;;  %1849 = vadd.xlane.f32.xlu1 %v1848_v30 }
 0x431   : > { %v5989_v31 = vsub.f32 %v5816_v45, %v1733_v39  ;;  %v1734_v5 = vmul.f32 0.015625, %v1670_v48  ;;  %v1851_v40 = vsel %vm831_vm0, %v1795_v10, 0.0  ;;  %v1796_v11 = vmul.f32 %v5994_v61, %v5994_v61 }
 0x432   : > { %1852 = vadd.xlane.f32.xlu0 %v1851_v40  ;;  %v1673_v46 = vpop.xlane.xlu0 %1672 }
 0x433   : > { %v5997_v34 = vsub.f32 %v5824_v53, %v1734_v5  ;;  %v1735_v50 = vmul.f32 0.015625, %v1673_v46  ;;  %v1797_v14 = vmul.f32 %v5989_v31, %v5989_v31  ;;  %v1854_v46 = vsel %vm831_vm0, %v1796_v11, 0.0 }
 0x434   : > { %v1676_v17 = vpop.xlane.xlu1 %1675  ;;  %1843 = vadd.xlane.f32.xlu1 %v1842_v54 }
 0x435   : > { %v6002_v45 = vsub.f32 %v5831_v52, %v1735_v50  ;;  %v1857_v57 = vsel %vm831_vm0, %v1797_v14, 0.0  ;;  %v1798_v28 = vmul.f32 %v5997_v34, %v5997_v34  ;;  %v1736_v36 = vmul.f32 0.015625, %v1676_v17 }
 0x436   : > { %1858 = vadd.xlane.f32.xlu0 %v1857_v57  ;;  %v1679_v56 = vpop.xlane.xlu0 %1678 }
 0x437   : > { %v1737_v22 = vmul.f32 0.015625, %v1679_v56  ;;  %v1860_v53 = vsel %vm831_vm0, %v1798_v28, 0.0  ;;  %v1799_v2 = vmul.f32 %v6002_v45, %v6002_v45  ;;  %v6017_v10 = vsub.f32 %v5839_v26, %v1736_v36 }
 0x438   : > { %v1682_v29 = vpop.xlane.xlu1 %1681  ;;  %1861 = vadd.xlane.f32.xlu1 %v1860_v53 }
 0x439   : > { %v6013_v52 = vsub.f32 %v5836_v6, %v1737_v22  ;;  %v1738_v39 = vmul.f32 0.015625, %v1682_v29  ;;  %v1863_v30 = vsel %vm831_vm0, %v1799_v2, 0.0 }
 0x43a   : > { %1864 = vadd.xlane.f32.xlu0 %v1863_v30  ;;  %v1685_v48 = vpop.xlane.xlu0 %1684 }
 0x43b   : > { %v6020_v5 = vsub.f32 %v5844_v58, %v1738_v39  ;;  %v1739_v40 = vmul.f32 0.015625, %v1685_v48  ;;  %v1801_v54 = vmul.f32 %v6013_v52, %v6013_v52  ;;  %v1800_v58 = vmul.f32 %v6017_v10, %v6017_v10 }
 0x43c   : > { %v1688_v50 = vpop.xlane.xlu1 %1687  ;;  %1855 = vadd.xlane.f32.xlu1 %v1854_v46 }
 0x43d   : > { %v6026_v6 = vsub.f32 %v5851_v49, %v1739_v40  ;;  %v1869_v14 = vsel %vm831_vm0, %v1801_v54, 0.0  ;;  %v1802_v26 = vmul.f32 %v6020_v5, %v6020_v5  ;;  %v1740_v57 = vmul.f32 0.015625, %v1688_v50  ;;  %v4321_v49 = vld [vmem:[#allocation9 + $0x8] sm:$0xff]   ;;  %v4322_v54 = vld [vmem:[#allocation9 + $0x10] sm:$0xff]  }
 0x43e   : > { %1870 = vadd.xlane.f32.xlu0 %v1869_v14  ;;  %v1691_v17 = vpop.xlane.xlu0 %1690  ;;  %v1866_v39 = vsel %vm831_vm0, %v1800_v58, 0.0  ;;  %4186 = vmatprep.subr.bf16.mxu1 %v4321_v49 }
 0x43f   : > { %v1741_v28 = vmul.f32 0.015625, %v1691_v17  ;;  %v1872_v36 = vsel %vm831_vm0, %v1802_v26, 0.0  ;;  %v1803_v56 = vmul.f32 %v6026_v6, %v6026_v6  ;;  %v6042_v30 = vsub.f32 %v5859_v1, %v1740_v57  ;;  %4187 = vmatpush3.bf16.msra.mxu1 %v4321_v49 }
 0x440   : > { %v1694_v22 = vpop.xlane.xlu1 %1693  ;;  %1873 = vadd.xlane.f32.xlu1 %v1872_v36  ;;  %4188 = vmatprep.subr.bf16.mxu1 %v4322_v54  ;;  %v4323_v36 = vld [vmem:[#allocation9 + $0x18] sm:$0xff]  }
 0x441   : > { %v6037_v53 = vsub.f32 %v5856_v59, %v1741_v28  ;;  %v1742_v2 = vmul.f32 0.015625, %v1694_v22  ;;  %v1875_v11 = vsel %vm831_vm0, %v1803_v56, 0.0  ;;  %7168 = vst [vmem:[#allocation38_spill] sm:$0xff] %v6042_v30  ;;  %v1804_v28 = vmul.f32 %v6042_v30, %v6042_v30  ;;  %v7196_v30 = vld [vmem:[#allocation35_spill] sm:$0xff] }
 0x442   : > { %1876 = vadd.xlane.f32.xlu0 %v1875_v11  ;;  %v1697_v29 = vpop.xlane.xlu0 %1696 }
 0x443   : > { %v6045_v48 = vsub.f32 %v5864_v55, %v1742_v2  ;;  %v1743_v40 = vmul.f32 0.015625, %v1697_v29  ;;  %v1805_v46 = vmul.f32 %v6037_v53, %v6037_v53  ;;  %4189 = vmatpush3.bf16.msra.mxu1 %v4322_v54 }
 0x444   : > { %v1700_v59 = vpop.xlane.xlu1 %1699  ;;  %1867 = vadd.xlane.f32.xlu1 %v1866_v39  ;;  %4190 = vmatprep.subr.bf16.mxu1 %v4323_v36 }
 0x445   : > { %7169 = vst [vmem:[#allocation39_spill] sm:$0xff] %v6045_v48  ;;  %v6050_v50 = vsub.f32 %v5871_v63, %v1743_v40  ;;  %v1881_v14 = vsel %vm831_vm0, %v1805_v46, 0.0  ;;  %v1806_v1 = vmul.f32 %v6045_v48, %v6045_v48  ;;  %v1744_v26 = vmul.f32 0.015625, %v1700_v59 }
 0x446   : > { %1882 = vadd.xlane.f32.xlu0 %v1881_v14  ;;  %v1703_v55 = vpop.xlane.xlu0 %1702  ;;  %v1878_v40 = vsel %vm831_vm0, %v1804_v28, 0.0 }
 0x447   : > { %7170 = vst [vmem:[#allocation40_spill] sm:$0xff] %v6050_v50  ;;  %v1745_v17 = vmul.f32 0.015625, %v1703_v55  ;;  %v1884_v58 = vsel %vm831_vm0, %v1806_v1, 0.0  ;;  %v1807_v57 = vmul.f32 %v6050_v50, %v6050_v50  ;;  %v6065_v2 = vsub.f32 %v5879_v43, %v1744_v26  ;;  %4191 = vmatpush3.bf16.msra.mxu1 %v4323_v36  ;;  %v7197_v50 = vld [vmem:[#allocation36_spill] sm:$0xff] }
 0x448   : > { %v1706_v63 = vpop.xlane.xlu1 %1705  ;;  %1885 = vadd.xlane.f32.xlu1 %v1884_v58 }
 0x449   : > { %v6061_v56 = vsub.f32 %v5876_v51, %v1745_v17  ;;  %v1746_v22 = vmul.f32 0.015625, %v1706_v63  ;;  %v1887_v49 = vsel %vm831_vm0, %v1807_v57, 0.0  ;;  %7172 = vst [vmem:[#allocation42_spill] sm:$0xff] %v6065_v2  ;;  %v1808_v14 = vmul.f32 %v6065_v2, %v6065_v2 }
 0x44a   : > { %1888 = vadd.xlane.f32.xlu0 %v1887_v49  ;;  %v1709_v11 = vpop.xlane.xlu0 %1708 }
 0x44b   : > { %7171 = vst [vmem:[#allocation41_spill] sm:$0xff] %v6061_v56  ;;  %v6068_v29 = vsub.f32 %v5884_v32, %v1746_v22  ;;  %v1747_v39 = vmul.f32 0.015625, %v1709_v11  ;;  %v1809_v46 = vmul.f32 %v6061_v56, %v6061_v56  ;;  %v1890_v22 = vsel %vm831_vm0, %v1808_v14, 0.0  ;;  %v7195_v56 = vld [vmem:[#allocation32_spill] sm:$0xff] }
 0x44c   : > { %1879 = vadd.xlane.f32.xlu1 %v1878_v40  ;;  %v1712_v51 = vpop.xlane.xlu1 %1711  ;;  %v7092_v11 = vmax.f32 %v5257_v62, 0.0 }
 0x44d   : > { %7173 = vst [vmem:[#allocation43_spill] sm:$0xff] %v6068_v29  ;;  %v6074_v59 = vsub.f32 %v5891_v21, %v1747_v39  ;;  %v1893_v43 = vsel %vm831_vm0, %v1809_v46, 0.0  ;;  %v1810_v54 = vmul.f32 %v6068_v29, %v6068_v29  ;;  %v1748_v1 = vmul.f32 0.015625, %v1712_v51 }
 0x44e   : > { %1894 = vadd.xlane.f32.xlu0 %v1893_v43  ;;  %v1715_v32 = vpop.xlane.xlu0 %1714  ;;  %v7090_v46 = vmax.f32 %v5254_v60, 0.0  ;;  %v7088_v43 = vmax.f32 %v5265_v3, 0.0 }
 0x44f   : > { %7174 = vst [vmem:[#allocation44_spill] sm:$0xff] %v6074_v59  ;;  %v1749_v26 = vmul.f32 0.015625, %v1715_v32  ;;  %v1896_v55 = vsel %vm831_vm0, %v1810_v54, 0.0  ;;  %v1811_v17 = vmul.f32 %v6074_v59, %v6074_v59  ;;  %v6089_v63 = vsub.f32 %v5899_v23, %v1748_v1  ;;  %v6104_v23 = vld [vmem:[%s7024_s11] ss:$0 sm:$0xff] }
 0x450   : > { %1897 = vadd.xlane.f32.xlu1 %v1896_v55  ;;  %v1718_v21 = vpop.xlane.xlu1 %1717  ;;  %v2450_v51 = vmul.f32 %v6104_v23, %v7092_v11  ;;  %v7086_v32 = vmax.f32 %v5274_v9, 0.0  ;;  %v2452_v14 = vmul.f32 %v6104_v23, %v7090_v46  ;;  %v7084_v1 = vmax.f32 %v5260_v0, 0.0  ;;  %v7187_v46 = vld [vmem:[#allocation24_spill] sm:$0xff]  ;;  %v7188_v11 = vld [vmem:[#allocation26_spill] sm:$0xff] }
 0x451   : > { %v6085_v58 = vsub.f32 %v5896_v35, %v1749_v26  ;;  %v1750_v57 = vmul.f32 0.015625, %v1718_v21  ;;  %v1899_v28 = vsel %vm831_vm0, %v1811_v17, 0.0  ;;  %7176 = vst [vmem:[#allocation46_spill] sm:$0xff] %v6089_v63  ;;  %v1812_v40 = vmul.f32 %v6089_v63, %v6089_v63  ;;  %v7189_v63 = vld [vmem:[#allocation27_spill] sm:$0xff] }
 0x452   : > { %1900 = vadd.xlane.f32.xlu0 %v1899_v28  ;;  %v2451_v26 = vmul.f32 %v6104_v23, %v7088_v43  ;;  %v7082_v55 = vmax.f32 %v5277_v12, 0.0  ;;  %v2454_v17 = vmul.f32 %v6104_v23, %v7086_v32  ;;  %v7080_v21 = vmax.f32 %v5280_v13, 0.0  ;;  %v7185_v32 = vld [vmem:[#allocation23_spill] sm:$0xff]  ;;  %v7186_v43 = vld [vmem:[#allocation25_spill] sm:$0xff] }
 0x453   : > { %7175 = vst [vmem:[#allocation45_spill] sm:$0xff] %v6085_v58  ;;  %v6092_v36 = vsub.f32 %v5904_v41, %v1750_v57  ;;  %v1813_v49 = vmul.f32 %v6085_v58, %v6085_v58  ;;  %v1902_v54 = vsel %vm831_vm0, %v1812_v40, 0.0  ;;  %v2453_v57 = vmul.f32 %v6104_v23, %v7084_v1  ;;  %v7184_v1 = vld [vmem:[#allocation22_spill] sm:$0xff] }
 0x454   : > { %1891 = vadd.xlane.f32.xlu1 %v1890_v22  ;;  %v7078_v28 = vmax.f32 %v5292_v20, 0.0  ;;  %v2456_v22 = vmul.f32 %v6104_v23, %v7082_v55  ;;  %v7081_v40 = vmax.f32 %v5300_v25, 0.0  ;;  %v7183_v55 = vld [vmem:[#allocation20_spill] sm:$0xff]  ;;  %v4938_v58 = vmov 0  }
 0x455   : > { %7177 = vst [vmem:[#allocation47_spill] sm:$0xff] %v6092_v36  ;;  %v1905_v35 = vsel %vm831_vm0, %v1813_v49, 0.0  ;;  %v1814_v39 = vmul.f32 %v6092_v36, %v6092_v36  ;;  %v7077_v49 = vmax.f32 %v5285_v15, 0.0  ;;  %v7190_v36 = vld [vmem:[#allocation29_spill] sm:$0xff]  ;;  %4306 = vset.pattern.permute.xlu0 %v4938_v58  ;;  %4307 = vset.pattern.permute.xlu1 %v4938_v58 }
 0x456   : > { %1906 = vadd.xlane.f32.xlu0 %v1905_v35  ;;  %v2455_v35 = vmul.f32 %v6104_v23, %v7080_v21  ;;  %v7182_v21 = vld [vmem:[#allocation21_spill] sm:$0xff] }
 0x457   : > { %v1908_v41 = vsel %vm831_vm0, %v1814_v39, 0.0  ;;  %v7079_v39 = vmax.f32 %v5297_v24, 0.0 }
 0x458   : > { %1909 = vadd.xlane.f32.xlu1 %v1908_v41  ;;  %v2458_v41 = vmul.f32 %v6104_v23, %v7078_v28  ;;  %v7181_v28 = vld [vmem:[#allocation19_spill] sm:$0xff] }
 0x45a   : > { %2482 = vadd.xlane.f32.xlu0 %v2450_v51  ;;  %v2457_v51 = vmul.f32 %v6104_v23, %v7077_v49 }
 0x45c   : > { %1903 = vadd.xlane.f32.xlu1 %v1902_v54  ;;  %v7178_v54 = vld [vmem:[#allocation17_spill] sm:$0xff] }
 0x45e   : > { %2486 = vadd.xlane.f32.xlu0 %v2452_v14  ;;  %v7083_v14 = vmax.f32 %v7178_v54, 0.0 }
 0x460   : > { %2484 = vadd.xlane.f32.xlu1 %v2451_v26  ;;  %v2460_v26 = vmul.f32 %v6104_v23, %v7079_v39  ;;  %v2462_v49 = vmul.f32 %v6104_v23, %v7083_v14 }
 0x462   : > { %2490 = vadd.xlane.f32.xlu0 %v2454_v17  ;;  %v7179_v17 = vld [vmem:[#allocation16_spill] sm:$0xff] }
 0x464   : > { %2488 = vadd.xlane.f32.xlu1 %v2453_v57  ;;  %v7085_v57 = vmax.f32 %v7179_v17, 0.0 }
 0x466   : > { %2494 = vadd.xlane.f32.xlu0 %v2456_v22  ;;  %v2459_v22 = vmul.f32 %v6104_v23, %v7081_v40  ;;  %v2461_v39 = vmul.f32 %v6104_v23, %v7085_v57 }
 0x468   : > { %2492 = vadd.xlane.f32.xlu1 %v2455_v35  ;;  %v7180_v35 = vld [vmem:[#allocation18_spill] sm:$0xff] }
 0x46a   : > { %2498 = vadd.xlane.f32.xlu0 %v2458_v41  ;;  %v7087_v41 = vmax.f32 %v7180_v35, 0.0 }
 0x46c   : > { %2496 = vadd.xlane.f32.xlu1 %v2457_v51  ;;  %v7089_v51 = vmax.f32 %v7181_v28, 0.0  ;;  %v2464_v40 = vmul.f32 %v6104_v23, %v7087_v41 }
 0x46e   : > { %2502 = vadd.xlane.f32.xlu0 %v2460_v26  ;;  %v7091_v26 = vmax.f32 %v7182_v21, 0.0  ;;  %v2463_v14 = vmul.f32 %v6104_v23, %v7089_v51 }
 0x470   : > { %2500 = vadd.xlane.f32.xlu1 %v2459_v22  ;;  %v7093_v22 = vmax.f32 %v7183_v55, 0.0  ;;  %v2466_v57 = vmul.f32 %v6104_v23, %v7091_v26 }
 0x472   : > { %2506 = vadd.xlane.f32.xlu0 %v2462_v49  ;;  %v7095_v49 = vmax.f32 %v7184_v1, 0.0  ;;  %v2465_v41 = vmul.f32 %v6104_v23, %v7093_v22 }
 0x474   : > { %2504 = vadd.xlane.f32.xlu1 %v2461_v39  ;;  %v7097_v39 = vmax.f32 %v7185_v32, 0.0  ;;  %v2468_v51 = vmul.f32 %v6104_v23, %v7095_v49 }
 0x476   : > { %2510 = vadd.xlane.f32.xlu0 %v2464_v40  ;;  %v7100_v40 = vmax.f32 %v7186_v43, 0.0  ;;  %v2467_v26 = vmul.f32 %v6104_v23, %v7097_v39 }
 0x478   : > { %2508 = vadd.xlane.f32.xlu1 %v2463_v14  ;;  %v7102_v14 = vmax.f32 %v7187_v46, 0.0  ;;  %v2470_v22 = vmul.f32 %v6104_v23, %v7100_v40  ;;  %v7192_v40 = vld [vmem:[#allocation30_spill] sm:$0xff] }
 0x479   : > { %v7111_v2 = vmax.f32 %v7192_v40, 0.0 }
 0x47a   : > { %2514 = vadd.xlane.f32.xlu0 %v2466_v57  ;;  %v7104_v57 = vmax.f32 %v7188_v11, 0.0  ;;  %v2469_v49 = vmul.f32 %v6104_v23, %v7102_v14  ;;  %v7193_v14 = vld [vmem:[#allocation31_spill] sm:$0xff] }
 0x47b   : > { %v7113_v29 = vmax.f32 %v7193_v14, 0.0 }
 0x47c   : > { %2512 = vadd.xlane.f32.xlu1 %v2465_v41  ;;  %v7105_v41 = vmax.f32 %v7189_v63, 0.0  ;;  %v2472_v39 = vmul.f32 %v6104_v23, %v7104_v57  ;;  %v7194_v57 = vld [vmem:[#allocation33_spill] sm:$0xff] }
 0x47e   : > { %2518 = vadd.xlane.f32.xlu0 %v2468_v51  ;;  %v7107_v51 = vmax.f32 %v7190_v36, 0.0 }
 0x480   : > { %2516 = vadd.xlane.f32.xlu1 %v2467_v26  ;;  %v7191_v26 = vld [vmem:[#allocation28_spill] sm:$0xff] }
 0x481   : > { %v7109_v59 = vmax.f32 %v7191_v26, 0.0 }
 0x482   : > { %2522 = vadd.xlane.f32.xlu0 %v2470_v22  ;;  %v2471_v22 = vmul.f32 %v6104_v23, %v7105_v41  ;;  %v2476_v41 = vmul.f32 %v6104_v23, %v7111_v2 }
 0x483   : > { %v2473_v58 = vmul.f32 %v6104_v23, %v7109_v59 }
 0x484   : > { %2520 = vadd.xlane.f32.xlu1 %v2469_v49  ;;  %v2474_v49 = vmul.f32 %v6104_v23, %v7107_v51  ;;  %v2475_v51 = vmul.f32 %v6104_v23, %v7113_v29 }
 0x486   : > { %2526 = vadd.xlane.f32.xlu0 %v2472_v39  ;;  %v7112_v39 = vmax.f32 %v7194_v57, 0.0 }
 0x488   : > { %2524 = vadd.xlane.f32.xlu1 %v2471_v22  ;;  %v7114_v22 = vmax.f32 %v7195_v56, 0.0  ;;  %v2478_v59 = vmul.f32 %v6104_v23, %v7112_v39  ;;  %v6236_v39 = vld [vmem:[%s7026_s13] ss:$0 sm:$0xff] }
 0x48a   : > { %2530 = vadd.xlane.f32.xlu0 %v2474_v49  ;;  %v7115_v49 = vmax.f32 %v7196_v30, 0.0  ;;  %v2477_v2 = vmul.f32 %v6104_v23, %v7114_v22 }
 0x48c   : > { %2528 = vadd.xlane.f32.xlu1 %v2473_v58  ;;  %v7116_v58 = vmax.f32 %v7197_v50, 0.0 }
 0x48e   : > { %2534 = vadd.xlane.f32.xlu0 %v2476_v41  ;;  %v2480_v41 = vmul.f32 %v6104_v23, %v7115_v49 }
 0x490   : > { %2532 = vadd.xlane.f32.xlu1 %v2475_v51  ;;  %v2479_v51 = vmul.f32 %v6104_v23, %v7116_v58 }
 0x492   : > { %2538 = vadd.xlane.f32.xlu0 %v2478_v59  ;;  %v7198_v59 = vmax.f32 %v5257_v62, 0.0  ;;  %v7203_v62 = vmax.f32 %v5274_v9, 0.0  ;;  %v7207_v9 = vmax.f32 %v5292_v20, 0.0  ;;  %v7210_v20 = vmax.f32 %v5300_v25, 0.0 }
 0x494   : > { %2536 = vadd.xlane.f32.xlu1 %v2477_v2  ;;  %v2784_v29 = vmul.f32 %v6236_v39, %v7198_v59  ;;  %v7199_v2 = vld [vmem:[#allocation34_spill] sm:$0xff]  ;;  %v2788_v59 = vmul.f32 %v6236_v39, %v7203_v62 }
 0x495   : > { %v7200_v22 = vmax.f32 %v7199_v2, 0.0  ;;  %v2792_v2 = vmul.f32 %v6236_v39, %v7207_v9 }
 0x496   : > { %2542 = vadd.xlane.f32.xlu0 %v2480_v41  ;;  %v7201_v41 = vmax.f32 %v5254_v60, 0.0  ;;  %v7205_v60 = vmax.f32 %v5277_v12, 0.0 }
 0x497   : > { %v2481_v49 = vmul.f32 %v6104_v23, %v7200_v22 }
 0x498   : > { %2540 = vadd.xlane.f32.xlu1 %v2479_v51  ;;  %v2786_v58 = vmul.f32 %v6236_v39, %v7201_v41  ;;  %v7202_v51 = vmax.f32 %v5265_v3, 0.0  ;;  %v2790_v22 = vmul.f32 %v6236_v39, %v7205_v60  ;;  %v7206_v3 = vmax.f32 %v5280_v13, 0.0 }
 0x499   : > { %v7208_v41 = vmax.f32 %v5285_v15, 0.0  ;;  %v7209_v13 = vmax.f32 %v5297_v24, 0.0 }
 0x49a   : > { %2816 = vadd.xlane.f32.xlu0 %v2784_v29  ;;  %v2785_v48 = vmul.f32 %v6236_v39, %v7202_v51  ;;  %v7204_v29 = vmax.f32 %v5260_v0, 0.0 }
 0x49b   : > { %v2791_v12 = vmul.f32 %v6236_v39, %v7208_v41 }
 0x49c   : > { %2544 = vadd.xlane.f32.xlu1 %v2481_v49  ;;  %v2787_v23 = vmul.f32 %v6236_v39, %v7204_v29  ;;  %v2789_v49 = vmul.f32 %v6236_v39, %v7206_v3 }
 0x49e   : > { %2820 = vadd.xlane.f32.xlu0 %v2786_v58 }
 0x4a0   : > { %2818 = vadd.xlane.f32.xlu1 %v2785_v48 }
 0x4a2   : > { %2824 = vadd.xlane.f32.xlu0 %v2788_v59  ;;  %v2794_v59 = vmul.f32 %v6236_v39, %v7209_v13 }
 0x4a4   : > { %2822 = vadd.xlane.f32.xlu1 %v2787_v23 }
 0x4a6   : > { %2828 = vadd.xlane.f32.xlu0 %v2790_v22  ;;  %v2793_v22 = vmul.f32 %v6236_v39, %v7210_v20 }
 0x4a7   : > { %v1817_v48 = vpop.xlane.xlu0 %1816 }
 0x4a8   : > { %v1911_v58 = vmul.f32 0.015625, %v1817_v48  ;;  %2826 = vadd.xlane.f32.xlu1 %v2789_v49  ;;  %v7211_v48 = vmax.f32 %v7178_v54, 0.0 }
 0x4aa   : > { %v1943_v0 = vadd.f32 1e-05, %v1911_v58  ;;  %2832 = vadd.xlane.f32.xlu0 %v2792_v2  ;;  %v2796_v58 = vmul.f32 %v6236_v39, %v7211_v48 }
 0x4ab   : > { %v1823_v51 = vpop.xlane.xlu0 %1822 }
 0x4ac   : > { %4388 = vrsqrt.f32 %v1943_v0  ;;  %v1913_v62 = vmul.f32 0.015625, %v1823_v51  ;;  %2830 = vadd.xlane.f32.xlu1 %v2791_v12  ;;  %v7212_v0 = vmax.f32 %v7179_v17, 0.0 }
 0x4ad   : > { %v1826_v29 = vpop.xlane.xlu1 %1825 }
 0x4ae   : > { %v1945_v23 = vadd.f32 1e-05, %v1913_v62  ;;  %v1914_v60 = vmul.f32 0.015625, %v1826_v29  ;;  %2836 = vadd.xlane.f32.xlu0 %v2794_v59  ;;  %v2795_v25 = vmul.f32 %v6236_v39, %v7212_v0  ;;  %v7213_v62 = vmax.f32 %v7180_v35, 0.0 }
 0x4af   : > { %v1829_v3 = vpop.xlane.xlu0 %1828 }
 0x4b0   : > { %4390 = vrsqrt.f32 %v1945_v23  ;;  %v1946_v15 = vadd.f32 1e-05, %v1914_v60  ;;  %v1915_v49 = vmul.f32 0.015625, %v1829_v3  ;;  %2834 = vadd.xlane.f32.xlu1 %v2793_v22  ;;  %v2798_v54 = vmul.f32 %v6236_v39, %v7213_v62 }
 0x4b1   : > { %v1820_v24 = vpop.xlane.xlu1 %1819  ;;  %v7214_v60 = vmax.f32 %v7181_v28, 0.0 }
 0x4b2   : > { %4392 = vrsqrt.f32 %v1946_v15  ;;  %v1947_v9 = vadd.f32 1e-05, %v1915_v49  ;;  %v1912_v2 = vmul.f32 0.015625, %v1820_v24  ;;  %2840 = vadd.xlane.f32.xlu0 %v2796_v58  ;;  %v7215_v15 = vmax.f32 %v7182_v21, 0.0  ;;  %v6293_v24 = vld [vmem:[%s7020_s7] ss:$0 sm:$0xff] }
 0x4b3   : > { %v1835_v41 = vpop.xlane.xlu0 %1834  ;;  %v2797_v17 = vmul.f32 %v6236_v39, %v7214_v60 }
 0x4b4   : > { %4394 = vrsqrt.f32 %v1947_v9  ;;  %v1944_v12 = vadd.f32 1e-05, %v1912_v2  ;;  %v1917_v51 = vmul.f32 0.015625, %v1835_v41  ;;  %2838 = vadd.xlane.f32.xlu1 %v2795_v25  ;;  %v2800_v35 = vmul.f32 %v6236_v39, %v7215_v15 }
 0x4b5   : > { %v1838_v13 = vpop.xlane.xlu1 %1837  ;;  %v7216_v2 = vmax.f32 %v7183_v55, 0.0  ;;  %v7222_v15 = vmax.f32 %v7186_v43, 0.0 }
 0x4b6   : > { %v4389_v59 = vpop.eup %4388  ;;  %4396 = vrsqrt.f32 %v1944_v12  ;;  %v1949_v29 = vadd.f32 1e-05, %v1917_v51  ;;  %v1918_v23 = vmul.f32 0.015625, %v1838_v13  ;;  %2844 = vadd.xlane.f32.xlu0 %v2798_v54  ;;  %v7217_v51 = vmax.f32 %v7184_v1, 0.0  ;;  %v6313_v1 = vld [vmem:[%s7220_s10] ss:$0 sm:$0xff] }
 0x4b7   : > { %v1841_v20 = vpop.xlane.xlu0 %1840  ;;  %v2007_v49 = vmul.f32 %v4389_v59, %v5913_v16  ;;  %v2799_v0 = vmul.f32 %v6236_v39, %v7216_v2  ;;  %v7218_v59 = vmax.f32 %v7185_v32, 0.0  ;;  %v7221_v32 = vmax.f32 %v7188_v11, 0.0  ;;  %s4939_s10 = smov [#allocation10]  }
 0x4b8   : > { %4398 = vrsqrt.f32 %v1949_v29  ;;  %v1950_v22 = vadd.f32 1e-05, %v1918_v23  ;;  %v1919_v3 = vmul.f32 0.015625, %v1841_v20  ;;  %2842 = vadd.xlane.f32.xlu1 %v2797_v17  ;;  %v2802_v62 = vmul.f32 %v6236_v39, %v7217_v51  ;;  %s4863_s16 = sshll.u32 %s4939_s10, 4  ;;  %s4864_s16 = int_to_ptr.vmem [resolvable:$false] %s4863_s16 }
 0x4b9   : > { %v1832_v48 = vpop.xlane.xlu1 %1831  ;;  %v2801_v55 = vmul.f32 %v6236_v39, %v7218_v59  ;;  %v7219_v29 = vmax.f32 %v7187_v46, 0.0  ;;  %v2045_v23 = vmul.f32 %v6293_v24, %v2007_v49  ;;  %v2806_v20 = vmul.f32 %v6236_v39, %v7221_v32  ;;  %s4865_s27 = scalar_lea.vmem %s4864_s16, 8192  ;;  %p4866_p7 = scmp.lt.s32.totalorder %s6966_s29, %s4864_s16 }
 0x4ba   : > { %v4391_v58 = vpop.eup %4390  ;;  %4400 = vrsqrt.f32 %v1950_v22  ;;  %v1951_v28 = vadd.f32 1e-05, %v1919_v3  ;;  %v1916_v9 = vmul.f32 0.015625, %v1832_v48  ;;  %2848 = vadd.xlane.f32.xlu0 %v2800_v35  ;;  %v2804_v35 = vmul.f32 %v6236_v39, %v7222_v15  ;;  %p4867_p9 = scmp.lt.s32.totalorder %s4865_s27, %s4859_s8 }
 0x4bb   : > { %v2009_v21 = vmul.f32 %v4391_v58, %v5918_v19  ;;  %v1847_v25 = vpop.xlane.xlu0 %1846  ;;  %v2803_v19 = vmul.f32 %v6236_v39, %v7219_v29  ;;  %v7223_v49 = vmax.f32 %v7191_v26, 0.0  ;;  %v7225_v26 = vmax.f32 %v7192_v40, 0.0 }
 0x4bc   : > { %v4393_v41 = vpop.eup %4392  ;;  %4402 = vrsqrt.f32 %v1951_v28  ;;  %v1948_v16 = vadd.f32 1e-05, %v1916_v9  ;;  %v1921_v12 = vmul.f32 0.015625, %v1847_v25  ;;  %2846 = vadd.xlane.f32.xlu1 %v2799_v0  ;;  %v7224_v9 = vmax.f32 %v7189_v63, 0.0  ;;  %p4868_p12 = por %p4867_p9, %p4866_p7 }
 0x4bd   : > { %v2010_v54 = vmul.f32 %v4393_v41, %v5925_v33  ;;  %v1850_v13 = vpop.xlane.xlu1 %1849  ;;  %v2047_v46 = vmul.f32 %v6293_v24, %v2009_v21  ;;  %v6326_v48 = vmul.f32 %v6236_v39, %v7223_v49  ;;  %v2083_v25 = vadd.f32 %v6313_v1, %v2045_v23 }
 0x4be   : > { %v4395_v60 = vpop.eup %4394  ;;  %4404 = vrsqrt.f32 %v1948_v16  ;;  %v1953_v17 = vadd.f32 1e-05, %v1921_v12  ;;  %v1922_v33 = vmul.f32 0.015625, %v1850_v13  ;;  %2852 = vadd.xlane.f32.xlu0 %v2802_v62  ;;  %v2805_v2 = vmul.f32 %v6236_v39, %v7224_v9  ;;  %p4869_p2 = pnand %p4868_p12, %p4862_p3 }
 0x4bf   : > { %v2048_v22 = vmul.f32 %v6293_v24, %v2010_v54  ;;  %v1853_v3 = vpop.xlane.xlu0 %1852  ;;  %v2011_v0 = vmul.f32 %v4395_v60, %v5930_v38  ;;  %v6337_v41 = vmul.f32 %v6236_v39, %v7225_v26  ;;  %v2085_v62 = vadd.f32 %v6313_v1, %v2047_v46 }
 0x4c0   : > { %v4397_v58 = vpop.eup %4396  ;;  %4406 = vrsqrt.f32 %v1953_v17  ;;  %v1954_v28 = vadd.f32 1e-05, %v1922_v33  ;;  %v1923_v11 = vmul.f32 0.015625, %v1853_v3  ;;  %2850 = vadd.xlane.f32.xlu1 %v2801_v55  ;;  %v7226_v54 = vmax.f32 %v7190_v36, 0.0 }
 0x4c1   : > { %v2008_v43 = vmul.f32 %v4397_v58, %v5922_v42  ;;  %v1844_v21 = vpop.xlane.xlu1 %1843  ;;  %v2086_v12 = vadd.f32 %v6313_v1, %v2048_v22  ;;  %v7227_v23 = vmax.f32 %v7195_v56, 0.0  ;;  %v2115_v36 = vmax.f32 %v2083_v25, 0.0 }
 0x4c2   : > { %v4399_v16 = vpop.eup %4398  ;;  %4408 = vrsqrt.f32 %v1954_v28  ;;  %v1955_v51 = vadd.f32 1e-05, %v1923_v11  ;;  %v1920_v63 = vmul.f32 0.015625, %v1844_v21  ;;  %2856 = vadd.xlane.f32.xlu0 %v2804_v35  ;;  %v2808_v13 = vmul.f32 %v6236_v39, %v7226_v54 }
 0x4c3   : > { %v2013_v38 = vmul.f32 %v4399_v16, %v5941_v8  ;;  %v1859_v42 = vpop.xlane.xlu0 %1858  ;;  %v2046_v40 = vmul.f32 %v6293_v24, %v2008_v43  ;;  %v6349_v60 = vmul.f32 %v6236_v39, %v7227_v23  ;;  %v2049_v32 = vmul.f32 %v6293_v24, %v2011_v0 }
 0x4c4   : > { %v4401_v59 = vpop.eup %4400  ;;  %4410 = vrsqrt.f32 %v1955_v51  ;;  %v1952_v55 = vadd.f32 1e-05, %v1920_v63  ;;  %v1925_v29 = vmul.f32 0.015625, %v1859_v42  ;;  %2854 = vadd.xlane.f32.xlu1 %v2803_v19  ;;  %v2118_v22 = vmax.f32 %v2086_v12, 0.0 }
 0x4c5   : > { %v2014_v17 = vmul.f32 %v4401_v59, %v5949_v7  ;;  %v1862_v8 = vpop.xlane.xlu1 %1861  ;;  %v2084_v33 = vadd.f32 %v6313_v1, %v2046_v40  ;;  %v2117_v19 = vmax.f32 %v2085_v62, 0.0  ;;  %v2051_v49 = vmul.f32 %v6293_v24, %v2013_v38 }
 0x4c6   : > { %v4403_v46 = vpop.eup %4402  ;;  %4412 = vrsqrt.f32 %v1952_v55  ;;  %v1957_v3 = vadd.f32 1e-05, %v1925_v29  ;;  %v1926_v15 = vmul.f32 0.015625, %v1862_v8  ;;  %2860 = vadd.xlane.f32.xlu0 %v2806_v20  ;;  %v2087_v20 = vadd.f32 %v6313_v1, %v2049_v32 }
 0x4c7   : > { %v1865_v35 = vpop.xlane.xlu0 %1864  ;;  %v2116_v56 = vmax.f32 %v2084_v33, 0.0  ;;  %v2052_v58 = vmul.f32 %v6293_v24, %v2014_v17  ;;  %v2015_v28 = vmul.f32 %v4403_v46, %v5954_v37  ;;  %v2148_v51 = vpack.c.bf16 %v2118_v22, %v2117_v19 }
 0x4c8   : > { %v4405_v7 = vpop.eup %4404  ;;  %4414 = vrsqrt.f32 %v1957_v3  ;;  %v1958_v11 = vadd.f32 1e-05, %v1926_v15  ;;  %v1927_v9 = vmul.f32 0.015625, %v1865_v35  ;;  %2858 = vadd.xlane.f32.xlu1 %v2805_v2  ;;  %v7228_v2 = vmax.f32 %v7193_v14, 0.0 }
 0x4c9   : > { %v2012_v0 = vmul.f32 %v4405_v7, %v5946_v47  ;;  %v1856_v43 = vpop.xlane.xlu1 %1855  ;;  %v2147_v21 = vpack.c.bf16 %v2116_v56, %v2115_v36  ;;  %v2090_v25 = vadd.f32 %v6313_v1, %v2052_v58  ;;  %v2089_v38 = vadd.f32 %v6313_v1, %v2051_v49 }
 0x4ca   : > { %v4407_v26 = vpop.eup %4406  ;;  %4416 = vrsqrt.f32 %v1958_v11  ;;  %v1959_v16 = vadd.f32 1e-05, %v1927_v9  ;;  %v1924_v12 = vmul.f32 0.015625, %v1856_v43  ;;  %2864 = vadd.xlane.f32.xlu0 %v2808_v13  ;;  %v2809_v47 = vmul.f32 %v6236_v39, %v7228_v2 }
 0x4cb   : > { %v2017_v37 = vmul.f32 %v4407_v26, %v5965_v4  ;;  %4192 = vmatprep.mubr.msk.bf16.mxu1 %vm831_vm0, %v2147_v21  ;;  %v1871_v63 = vpop.xlane.xlu0 %1870  ;;  %v2050_v62 = vmul.f32 %v6293_v24, %v2012_v0  ;;  %v2053_v4 = vmul.f32 %v6293_v24, %v2015_v28  ;;  %v7229_v14 = vmax.f32 %v7194_v57, 0.0 }
 0x4cc   : > { %v4409_v42 = vpop.eup %4408  ;;  %4418 = vrsqrt.f32 %v1959_v16  ;;  %v1956_v54 = vadd.f32 1e-05, %v1924_v12  ;;  %v1929_v40 = vmul.f32 0.015625, %v1871_v63  ;;  %2862 = vadd.xlane.f32.xlu1 %v6326_v48  ;;  %4193 = vmatmul.mubr.msk.bf16.vlgmr.msra.gmra.mrb[20].mxu1 %vm831_vm0, %v2148_v51  ;;  %v2122_v23 = vmax.f32 %v2090_v25, 0.0 }
 0x4cd   : > { %v2018_v13 = vmul.f32 %v4409_v42, %v5972_v18  ;;  %v1874_v59 = vpop.xlane.xlu1 %1873  ;;  %v2812_v55 = vmul.f32 %v6236_v39, %v7229_v14  ;;  %v2088_v29 = vadd.f32 %v6313_v1, %v2050_v62  ;;  %v2119_v48 = vmax.f32 %v2087_v20, 0.0 }
 0x4ce   : > { %v4411_v17 = vpop.eup %4410  ;;  %4420 = vrsqrt.f32 %v1956_v54  ;;  %v1961_v8 = vadd.f32 1e-05, %v1929_v40  ;;  %v1930_v33 = vmul.f32 0.015625, %v1874_v59  ;;  %2868 = vadd.xlane.f32.xlu0 %v6337_v41  ;;  %v2121_v46 = vmax.f32 %v2089_v38, 0.0 }
 0x4cf   : > { %v1877_v36 = vpop.xlane.xlu0 %1876  ;;  %v2120_v32 = vmax.f32 %v2088_v29, 0.0  ;;  %v2055_v18 = vmul.f32 %v6293_v24, %v2017_v37  ;;  %v2056_v22 = vmul.f32 %v6293_v24, %v2018_v13  ;;  %v2091_v19 = vadd.f32 %v6313_v1, %v2053_v4 }
 0x4d0   : > { %v4413_v57 = vpop.eup %4412  ;;  %4422 = vrsqrt.f32 %v1961_v8  ;;  %v1962_v3 = vadd.f32 1e-05, %v1930_v33  ;;  %v1931_v15 = vmul.f32 0.015625, %v1877_v36  ;;  %2866 = vadd.xlane.f32.xlu1 %v2809_v47  ;;  %v2019_v35 = vmul.f32 %v4411_v17, %v5978_v27 }
 0x4d1   : > { %v2016_v56 = vmul.f32 %v4413_v57, %v5969_v44  ;;  %v1868_v41 = vpop.xlane.xlu1 %1867  ;;  %v2149_v49 = vpack.c.bf16 %v2120_v32, %v2119_v48  ;;  %v2150_v58 = vpack.c.bf16 %v2122_v23, %v2121_v46  ;;  %v2094_v9 = vadd.f32 %v6313_v1, %v2056_v22 }
 0x4d2   : > { %v4415_v7 = vpop.eup %4414  ;;  %4424 = vrsqrt.f32 %v1962_v3  ;;  %v1963_v28 = vadd.f32 1e-05, %v1931_v15  ;;  %v1928_v11 = vmul.f32 0.015625, %v1868_v41  ;;  %2872 = vadd.xlane.f32.xlu0 %v2812_v55  ;;  %v7230_v21 = vmax.f32 %v7196_v30, 0.0  ;;  %v7232_v3 = vld [vmem:[#allocation37_spill] sm:$0xff] }
 0x4d3   : > { %v2021_v0 = vmul.f32 %v4415_v7, %v5989_v31  ;;  %4196 = vmatprep.mubr.msk.bf16.mxu1 %vm831_vm0, %v2149_v49  ;;  %v1883_v43 = vpop.xlane.xlu0 %1882  ;;  %v2054_v44 = vmul.f32 %v6293_v24, %v2016_v56  ;;  %v2093_v20 = vadd.f32 %v6313_v1, %v2055_v18  ;;  %v7231_v31 = vmax.f32 %v7197_v50, 0.0 }
 0x4d4   : > { %v2814_v27 = vmul.f32 %v6236_v39, %v7230_v21  ;;  %v4417_v25 = vpop.eup %4416  ;;  %v1960_v26 = vadd.f32 1e-05, %v1928_v11  ;;  %v1933_v16 = vmul.f32 0.015625, %v1883_v43  ;;  %2870 = vadd.xlane.f32.xlu1 %v6349_v60  ;;  %4197 = vmatmul.mubr.msk.bf16.gmra.mrb[24].mxu1 %vm831_vm0, %v2150_v58  ;;  %v2123_v51 = vmax.f32 %v2091_v19, 0.0 }
 0x4d5   : > { %v2813_v12 = vmul.f32 %v6236_v39, %v7231_v31  ;;  %v2022_v30 = vmul.f32 %v4417_v25, %v5997_v34  ;;  %4426 = vrsqrt.f32 %v1963_v28  ;;  %v1886_v37 = vpop.xlane.xlu1 %1885  ;;  %v2092_v63 = vadd.f32 %v6313_v1, %v2054_v44 }
 0x4d6   : > { %v2057_v2 = vmul.f32 %v6293_v24, %v2019_v35  ;;  %v4419_v47 = vpop.eup %4418  ;;  %4428 = vrsqrt.f32 %v1960_v26  ;;  %v1965_v62 = vadd.f32 1e-05, %v1933_v16  ;;  %v1934_v38 = vmul.f32 0.015625, %v1886_v37  ;;  %2876 = vadd.xlane.f32.xlu0 %v2814_v27 }
 0x4d7   : > { %v2126_v60 = vmax.f32 %v2094_v9, 0.0  ;;  %v1889_v42 = vpop.xlane.xlu0 %1888  ;;  %v2124_v54 = vmax.f32 %v2092_v63, 0.0  ;;  %v2125_v50 = vmax.f32 %v2093_v20, 0.0  ;;  %v2059_v39 = vmul.f32 %v6293_v24, %v2021_v0 }
 0x4d8   : > { %v2060_v40 = vmul.f32 %v6293_v24, %v2022_v30  ;;  %v4421_v34 = vpop.eup %4420  ;;  %v2023_v4 = vmul.f32 %v4419_v47, %v6002_v45  ;;  %4430 = vrsqrt.f32 %v1965_v62  ;;  %v1966_v13 = vadd.f32 1e-05, %v1934_v38  ;;  %2874 = vadd.xlane.f32.xlu1 %v2813_v12 }
 0x4d9   : > { %v1935_v59 = vmul.f32 0.015625, %v1889_v42  ;;  %v2020_v14 = vmul.f32 %v4421_v34, %v5994_v61  ;;  %v1880_v55 = vpop.xlane.xlu1 %1879  ;;  %v2151_v29 = vpack.c.bf16 %v2124_v54, %v2123_v51  ;;  %v2095_v23 = vadd.f32 %v6313_v1, %v2057_v2  ;;  %v7233_v54 = vld [vmem:[#allocation39_spill] sm:$0xff] }
 0x4da   : > { %v2098_v17 = vadd.f32 %v6313_v1, %v2060_v40  ;;  %v4423_v8 = vpop.eup %4422  ;;  %4432 = vrsqrt.f32 %v1966_v13  ;;  %v1932_v48 = vmul.f32 0.015625, %v1880_v55  ;;  %v2152_v36 = vpack.c.bf16 %v2126_v60, %v2125_v50 }
 0x4db   : > { %v1967_v33 = vadd.f32 1e-05, %v1935_v59  ;;  %v2025_v32 = vmul.f32 %v4423_v8, %v6013_v52  ;;  %4200 = vmatprep.mubr.msk.bf16.mxu1 %vm831_vm0, %v2151_v29  ;;  %v1895_v45 = vpop.xlane.xlu0 %1894  ;;  %v2058_v46 = vmul.f32 %v6293_v24, %v2020_v14  ;;  %v2097_v61 = vadd.f32 %v6313_v1, %v2059_v39  ;;  %v6424_v39 = vld [vmem:[#allocation2] ss:$0 sm:$0xff] }
 0x4dc   : > { %v4425_v18 = vpop.eup %4424  ;;  %v1964_v22 = vadd.f32 1e-05, %v1932_v48  ;;  %v1937_v57 = vmul.f32 0.015625, %v1895_v45  ;;  %2878 = vadd.xlane.f32.xlu1 %v7232_v3  ;;  %4201 = vmatmul.mubr.msk.bf16.gmra.mrb[28].mxu1 %vm831_vm0, %v2152_v36  ;;  %v2061_v15 = vmul.f32 %v6293_v24, %v2023_v4  ;;  %v2130_v56 = vmax.f32 %v2098_v17, 0.0  ;;  %v7234_v36 = vld [vmem:[#allocation40_spill] sm:$0xff]  ;;  %v7235_v45 = vld [vmem:[#allocation38_spill] sm:$0xff] }
 0x4dd   : > { %4434 = vrsqrt.f32 %v1967_v33  ;;  %v2026_v19 = vmul.f32 %v4425_v18, %v6020_v5  ;;  %v1898_v52 = vpop.xlane.xlu1 %1897  ;;  %v2096_v35 = vadd.f32 %v6313_v1, %v2058_v46  ;;  %v2127_v58 = vmax.f32 %v2095_v23, 0.0 }
 0x4de   : > { %4436 = vrsqrt.f32 %v1964_v22  ;;  %v1969_v41 = vadd.f32 1e-05, %v1937_v57  ;;  %v1938_v49 = vmul.f32 0.015625, %v1898_v52  ;;  %v2129_v9 = vmax.f32 %v2097_v61, 0.0 }
 0x4df   : > { %v4427_v7 = vpop.eup %4426  ;;  %v1901_v28 = vpop.xlane.xlu0 %1900  ;;  %v2128_v11 = vmax.f32 %v2096_v35, 0.0  ;;  %v2063_v0 = vmul.f32 %v6293_v24, %v2025_v32  ;;  %v2064_v43 = vmul.f32 %v6293_v24, %v2026_v19  ;;  %v2099_v44 = vadd.f32 %v6313_v1, %v2061_v15 }
 0x4e0   : > { %v4429_v21 = vpop.eup %4428  ;;  %4438 = vrsqrt.f32 %v1969_v41  ;;  %v1970_v27 = vadd.f32 1e-05, %v1938_v49  ;;  %v1939_v5 = vmul.f32 0.015625, %v1901_v28  ;;  %v2154_v16 = vpack.c.bf16 %v2130_v56, %v2129_v9  ;;  %v7237_v9 = vld [vmem:[#allocation43_spill] sm:$0xff] }
 0x4e1   : > { %v2024_v20 = vmul.f32 %v4429_v21, %v6017_v10  ;;  %v1892_v25 = vpop.xlane.xlu1 %1891  ;;  %v2153_v26 = vpack.c.bf16 %v2128_v11, %v2127_v58  ;;  %v2102_v31 = vadd.f32 %v6313_v1, %v2064_v43  ;;  %v2027_v51 = vmul.f32 %v4427_v7, %v6026_v6  ;;  %v7236_v58 = vld [vmem:[#allocation41_spill] sm:$0xff] }
 0x4e2   : > { %v4431_v12 = vpop.eup %4430  ;;  %4440 = vrsqrt.f32 %v1970_v27  ;;  %v1971_v30 = vadd.f32 1e-05, %v1939_v5  ;;  %v1936_v37 = vmul.f32 0.015625, %v1892_v25  ;;  %v2101_v10 = vadd.f32 %v6313_v1, %v2063_v0 }
 0x4e3   : > { %v2029_v63 = vmul.f32 %v4431_v12, %v6037_v53  ;;  %4204 = vmatprep.mubr.msk.bf16.mxu1 %vm831_vm0, %v2153_v26  ;;  %v1907_v2 = vpop.xlane.xlu0 %1906  ;;  %v2062_v47 = vmul.f32 %v6293_v24, %v2024_v20  ;;  %v2131_v42 = vmax.f32 %v2099_v44, 0.0  ;;  %v2134_v40 = vmax.f32 %v2102_v31, 0.0 }
 0x4e4   : > { %v4433_v62 = vpop.eup %4432  ;;  %v1968_v38 = vadd.f32 1e-05, %v1936_v37  ;;  %v1941_v60 = vmul.f32 0.015625, %v1907_v2  ;;  %4205 = vmatmul.mubr.msk.bf16.gmra.mrb[32].mxu1 %vm831_vm0, %v2154_v16  ;;  %4442 = vrsqrt.f32 %v1971_v30  ;;  %v2065_v59 = vmul.f32 %v6293_v24, %v2027_v51  ;;  %v7238_v2 = vld [vmem:[#allocation42_spill] sm:$0xff] }
 0x4e5   : > { %v2030_v6 = vmul.f32 %v4433_v62, %v7233_v54  ;;  %v1910_v50 = vpop.xlane.xlu1 %1909  ;;  %v2100_v53 = vadd.f32 %v6313_v1, %v2062_v47  ;;  %v2133_v29 = vmax.f32 %v2101_v10, 0.0  ;;  %v2067_v23 = vmul.f32 %v6293_v24, %v2029_v63 }
 0x4e6   : > { %4444 = vrsqrt.f32 %v1968_v38  ;;  %v1973_v4 = vadd.f32 1e-05, %v1941_v60  ;;  %v1942_v13 = vmul.f32 0.015625, %v1910_v50  ;;  %v2103_v56 = vadd.f32 %v6313_v1, %v2065_v59  ;;  %v7240_v59 = vld [vmem:[#allocation45_spill] sm:$0xff] }
 0x4e7   : > { %v4435_v34 = vpop.eup %4434  ;;  %v2483_v14 = vpop.xlane.xlu0 %2482  ;;  %v2132_v55 = vmax.f32 %v2100_v53, 0.0  ;;  %v2068_v17 = vmul.f32 %v6293_v24, %v2030_v6  ;;  %v2156_v22 = vpack.c.bf16 %v2134_v40, %v2133_v29  ;;  %v2105_v41 = vadd.f32 %v6313_v1, %v2067_v23  ;;  %v7239_v53 = vld [vmem:[#allocation44_spill] sm:$0xff]  ;;  %v7241_v23 = vld [vmem:[#allocation47_spill] sm:$0xff] }
 0x4e8   : > { %v4437_v8 = vpop.eup %4436  ;;  %4446 = vrsqrt.f32 %v1973_v4  ;;  %v1974_v33 = vadd.f32 1e-05, %v1942_v13  ;;  %v2553_v48 = vadd.f32 %v6424_v39, %v2483_v14  ;;  %v2031_v32 = vmul.f32 %v4435_v34, %v7234_v36 }
 0x4e9   : > { %v2028_v46 = vmul.f32 %v4437_v8, %v7235_v45  ;;  %v1904_v61 = vpop.xlane.xlu1 %1903  ;;  %v2155_v18 = vpack.c.bf16 %v2132_v55, %v2131_v42  ;;  %v2106_v19 = vadd.f32 %v6313_v1, %v2068_v17  ;;  %v2135_v16 = vmax.f32 %v2103_v56, 0.0 }
 0x4ea   : > { %v4439_v57 = vpop.eup %4438  ;;  %4448 = vrsqrt.f32 %v1974_v33  ;;  %v3959_v3 = vmul.f32 -1.442695, %v2553_v48  ;;  %v1940_v15 = vmul.f32 0.015625, %v1904_v61  ;;  %v2069_v27 = vmul.f32 %v6293_v24, %v2031_v32 }
 0x4eb   : > { %4208 = vmatprep.mubr.msk.bf16.mxu1 %vm831_vm0, %v2155_v18  ;;  %v2487_v52 = vpop.xlane.xlu0 %2486  ;;  %v2066_v35 = vmul.f32 %v6293_v24, %v2028_v46  ;;  %v2033_v7 = vmul.f32 %v4439_v57, %v7236_v58  ;;  %v2138_v20 = vmax.f32 %v2106_v19, 0.0  ;;  %v2137_v37 = vmax.f32 %v2105_v41, 0.0  ;;  %v7242_v41 = vld [vmem:[#allocation46_spill] sm:$0xff] }
 0x4ec   : > { %v4441_v49 = vpop.eup %4440  ;;  %4450 = vpow2.f32 %v3959_v3  ;;  %v1972_v28 = vadd.f32 1e-05, %v1940_v15  ;;  %v2555_v11 = vadd.f32 %v6424_v39, %v2487_v52  ;;  %4209 = vmatmul.mubr.msk.bf16.gmra.mrb[36].mxu1 %vm831_vm0, %v2156_v22  ;;  %v2107_v60 = vadd.f32 %v6313_v1, %v2069_v27 }
 0x4ed   : > { %v2034_v0 = vmul.f32 %v4441_v49, %v7237_v9  ;;  %v2485_v43 = vpop.xlane.xlu1 %2484  ;;  %v2104_v21 = vadd.f32 %v6313_v1, %v2066_v35  ;;  %v2071_v63 = vmul.f32 %v6293_v24, %v2033_v7  ;;  %v2158_v6 = vpack.c.bf16 %v2138_v20, %v2137_v37 }
 0x4ee   : > { %4452 = vrsqrt.f32 %v1972_v28  ;;  %v3961_v5 = vmul.f32 -1.442695, %v2555_v11  ;;  %v2554_v44 = vadd.f32 %v6424_v39, %v2485_v43  ;;  %v4443_v25 = vpop.eup %4442  ;;  %v2139_v36 = vmax.f32 %v2107_v60, 0.0 }
 0x4ef   : > { %v2491_v26 = vpop.xlane.xlu0 %2490  ;;  %v2136_v31 = vmax.f32 %v2104_v21, 0.0  ;;  %v2072_v12 = vmul.f32 %v6293_v24, %v2034_v0  ;;  %v2035_v40 = vmul.f32 %v4443_v25, %v7239_v53  ;;  %v2109_v29 = vadd.f32 %v6313_v1, %v2071_v63 }
 0x4f0   : > { %v4445_v51 = vpop.eup %4444  ;;  %4454 = vpow2.f32 %v3961_v5  ;;  %v3960_v30 = vmul.f32 -1.442695, %v2554_v44  ;;  %v2557_v10 = vadd.f32 %v6424_v39, %v2491_v26 }
 0x4f1   : > { %v2032_v47 = vmul.f32 %v4445_v51, %v7238_v2  ;;  %v2489_v62 = vpop.xlane.xlu1 %2488  ;;  %v2157_v38 = vpack.c.bf16 %v2136_v31, %v2135_v16  ;;  %v2110_v50 = vadd.f32 %v6313_v1, %v2072_v12  ;;  %v2073_v3 = vmul.f32 %v6293_v24, %v2035_v40 }
 0x4f2   : > { %v4447_v42 = vpop.eup %4446  ;;  %4456 = vpow2.f32 %v3960_v30  ;;  %v2556_v54 = vadd.f32 %v6424_v39, %v2489_v62  ;;  %v3963_v8 = vmul.f32 -1.442695, %v2557_v10  ;;  %v2141_v35 = vmax.f32 %v2109_v29, 0.0 }
 0x4f3   : > { %4212 = vmatprep.mubr.msk.bf16.mxu1 %vm831_vm0, %v2157_v38  ;;  %v2495_v34 = vpop.xlane.xlu0 %2494  ;;  %v2070_v4 = vmul.f32 %v6293_v24, %v2032_v47  ;;  %v2037_v14 = vmul.f32 %v4447_v42, %v7240_v59  ;;  %v2142_v61 = vmax.f32 %v2110_v50, 0.0  ;;  %v2111_v5 = vadd.f32 %v6313_v1, %v2073_v3 }
 0x4f4   : > { %v4449_v13 = vpop.eup %4448  ;;  %v3962_v55 = vmul.f32 -1.442695, %v2556_v54  ;;  %4213 = vmatmul.mubr.msk.bf16.gmra.mrb[40].mxu1 %vm831_vm0, %v2158_v6  ;;  %v2559_v45 = vadd.f32 %v6424_v39, %v2495_v34 }
 0x4f5   : > { %v2038_v17 = vmul.f32 %v4449_v13, %v7241_v23  ;;  %v2493_v33 = vpop.xlane.xlu1 %2492  ;;  %v2108_v48 = vadd.f32 %v6313_v1, %v2070_v4  ;;  %v2075_v56 = vmul.f32 %v6293_v24, %v2037_v14  ;;  %v2160_v9 = vpack.c.bf16 %v2142_v61, %v2141_v35 }
 0x4f6   : > { %v4451_v32 = vpop.eup %4450  ;;  %4458 = vpow2.f32 %v3962_v55  ;;  %v2558_v46 = vadd.f32 %v6424_v39, %v2493_v33  ;;  %v3965_v11 = vmul.f32 -1.442695, %v2559_v45  ;;  %v2143_v63 = vmax.f32 %v2111_v5, 0.0 }
 0x4f7   : > { %v2681_v18 = vadd.f32 1.0, %v4451_v32  ;;  %v2499_v22 = vpop.xlane.xlu0 %2498  ;;  %v2140_v57 = vmax.f32 %v2108_v48, 0.0  ;;  %v2076_v15 = vmul.f32 %v6293_v24, %v2038_v17  ;;  %v2113_v20 = vadd.f32 %v6313_v1, %v2075_v56 }
 0x4f8   : > { %v4453_v19 = vpop.eup %4452  ;;  %v3964_v52 = vmul.f32 -1.442695, %v2558_v46  ;;  %v2561_v16 = vadd.f32 %v6424_v39, %v2499_v22 }
 0x4f9   : > { %4460 = vrcp.f32 %v2681_v18  ;;  %v2036_v49 = vmul.f32 %v4453_v19, %v7242_v41  ;;  %v2497_v58 = vpop.xlane.xlu1 %2496  ;;  %v2159_v7 = vpack.c.bf16 %v2140_v57, %v2139_v36  ;;  %v2114_v0 = vadd.f32 %v6313_v1, %v2076_v15 }
 0x4fa   : > { %v4455_v28 = vpop.eup %4454  ;;  %4462 = vpow2.f32 %v3963_v8  ;;  %v2560_v43 = vadd.f32 %v6424_v39, %v2497_v58  ;;  %v2145_v62 = vmax.f32 %v2113_v20, 0.0  ;;  %v3967_v38 = vmul.f32 -1.442695, %v2561_v16 }
 0x4fb   : > { %4216 = vmatprep.mubr.msk.bf16.mxu1 %vm831_vm0, %v2159_v7  ;;  %v2503_v21 = vpop.xlane.xlu0 %2502  ;;  %v2074_v27 = vmul.f32 %v6293_v24, %v2036_v49  ;;  %4464 = vpow2.f32 %v3964_v52  ;;  %v2683_v25 = vadd.f32 1.0, %v4455_v28  ;;  %v2146_v30 = vmax.f32 %v2114_v0, 0.0 }
 0x4fc   : > { %v4457_v44 = vpop.eup %4456  ;;  %4217 = vmatmul.mubr.msk.bf16.gmra.mrb[44].mxu1 %vm831_vm0, %v2160_v9  ;;  %4466 = vpow2.f32 %v3965_v11  ;;  %v3966_v24 = vmul.f32 -1.442695, %v2560_v43  ;;  %v2563_v60 = vadd.f32 %v6424_v39, %v2503_v21 }
 0x4fd   : > { %v2682_v26 = vadd.f32 1.0, %v4457_v44  ;;  %v2501_v31 = vpop.xlane.xlu1 %2500  ;;  %v2112_v12 = vadd.f32 %v6313_v1, %v2074_v27  ;;  %v2162_v6 = vpack.c.bf16 %v2146_v30, %v2145_v62 }
 0x4fe   : > { %v2562_v51 = vadd.f32 %v6424_v39, %v2501_v31  ;;  %v3969_v59 = vmul.f32 -1.442695, %v2563_v60 }
 0x4ff   : > { %4468 = vrcp.f32 %v2682_v26  ;;  %v2507_v37 = vpop.xlane.xlu0 %2506  ;;  %v2144_v2 = vmax.f32 %v2112_v12, 0.0 }
 0x500   : > { %v4459_v47 = vpop.eup %4458  ;;  %v3968_v10 = vmul.f32 -1.442695, %v2562_v51  ;;  %4470 = vrcp.f32 %v2683_v25  ;;  %v2565_v4 = vadd.f32 %v6424_v39, %v2507_v37 }
 0x501   : > { %v2505_v42 = vpop.xlane.xlu1 %2504  ;;  %v2161_v54 = vpack.c.bf16 %v2144_v2, %v2143_v63  ;;  %v2684_v53 = vadd.f32 1.0, %v4459_v47 }
 0x502   : > { %4472 = vpow2.f32 %v3968_v10  ;;  %v2564_v1 = vadd.f32 %v6424_v39, %v2505_v42  ;;  %v3971_v33 = vmul.f32 -1.442695, %v2565_v4 }
 0x503   : > { %v4461_v50 = vpop.eup %4460  ;;  %4474 = vpow2.f32 %v3966_v24  ;;  %4220 = vmatprep.mubr.msk.bf16.mxu1 %vm831_vm0, %v2161_v54  ;;  %v2511_v40 = vpop.xlane.xlu0 %2510 }
 0x504   : > { %v4463_v34 = vpop.eup %4462  ;;  %v3970_v13 = vmul.f32 -1.442695, %v2564_v1  ;;  %4221 = vmatmul.mubr.msk.bf16.gmra.mrb[48].mxu1 %vm831_vm0, %v2162_v6  ;;  %3145 = vperm.xlu0 %4306, %v4461_v50   ;;  %4476 = vpow2.f32 %v3967_v38  ;;  %v2567_v45 = vadd.f32 %v6424_v39, %v2511_v40 }
 0x505   : > { %v2509_v14 = vpop.xlane.xlu1 %2508  ;;  %v4465_v55 = vpop.eup %4464  ;;  %v2685_v23 = vadd.f32 1.0, %v4463_v34 }
 0x506   : > { %4478 = vpow2.f32 %v3970_v13  ;;  %v2566_v29 = vadd.f32 %v6424_v39, %v2509_v14  ;;  %v4467_v8 = vpop.eup %4466  ;;  %v2686_v32 = vadd.f32 1.0, %v4465_v55  ;;  %v3973_v35 = vmul.f32 -1.442695, %v2567_v45 }
 0x507   : > { %4480 = vrcp.f32 %v2684_v53  ;;  %v2515_v17 = vpop.xlane.xlu0 %2514  ;;  %v2687_v3 = vadd.f32 1.0, %v4467_v8 }
 0x508   : > { %v3972_v48 = vmul.f32 -1.442695, %v2566_v29  ;;  %4482 = vpow2.f32 %v3969_v59  ;;  %v2569_v56 = vadd.f32 %v6424_v39, %v2515_v17 }
 0x509   : > { %v4469_v36 = vpop.eup %4468  ;;  %v2513_v46 = vpop.xlane.xlu1 %2512 }
 0x50a   : > { %4484 = vpow2.f32 %v3972_v48  ;;  %v2568_v61 = vadd.f32 %v6424_v39, %v2513_v46  ;;  %3150 = vperm.xlu1 %4307, %v4469_v36   ;;  %v4471_v18 = vpop.eup %4470  ;;  %v3975_v21 = vmul.f32 -1.442695, %v2569_v56 }
 0x50b   : > { %4486 = vrcp.f32 %v2685_v23  ;;  %v2519_v22 = vpop.xlane.xlu0 %2518 }
 0x50c   : > { %v4473_v57 = vpop.eup %4472  ;;  %4488 = vpow2.f32 %v3971_v33  ;;  %v3974_v15 = vmul.f32 -1.442695, %v2568_v61  ;;  %v2571_v27 = vadd.f32 %v6424_v39, %v2519_v22 }
 0x50d   : > { %v4475_v19 = vpop.eup %4474  ;;  %4490 = vrcp.f32 %v2686_v32  ;;  %v2690_v52 = vadd.f32 1.0, %v4473_v57  ;;  %v2517_v41 = vpop.xlane.xlu1 %2516 }
 0x50e   : > { %4492 = vpow2.f32 %v3974_v15  ;;  %v2570_v49 = vadd.f32 %v6424_v39, %v2517_v41  ;;  %3155 = vperm.xlu1 %4307, %v4471_v18   ;;  %v4477_v58 = vpop.eup %4476  ;;  %v2688_v11 = vadd.f32 1.0, %v4475_v19  ;;  %v3977_v30 = vmul.f32 -1.442695, %v2571_v27 }
 0x50f   : > { %4494 = vrcp.f32 %v2690_v52  ;;  %v2523_v7 = vpop.xlane.xlu0 %2522  ;;  %v2689_v16 = vadd.f32 1.0, %v4477_v58 }
 0x510   : > { %v4479_v28 = vpop.eup %4478  ;;  %4496 = vrcp.f32 %v2687_v3  ;;  %v3976_v9 = vmul.f32 -1.442695, %v2570_v49  ;;  %v2573_v10 = vadd.f32 %v6424_v39, %v2523_v7 }
 0x511   : > { %v4481_v0 = vpop.eup %4480  ;;  %v2692_v43 = vadd.f32 1.0, %v4479_v28  ;;  %4498 = vpow2.f32 %v3973_v35  ;;  %v2521_v5 = vpop.xlane.xlu1 %2520 }
 0x512   : > { %4500 = vpow2.f32 %v3976_v9  ;;  %v2572_v44 = vadd.f32 %v6424_v39, %v2521_v5  ;;  %3160 = vperm.xlu1 %4307, %v4481_v0   ;;  %v4483_v20 = vpop.eup %4482  ;;  %v3979_v34 = vmul.f32 -1.442695, %v2573_v10 }
 0x513   : > { %4502 = vrcp.f32 %v2692_v43  ;;  %v2527_v25 = vpop.xlane.xlu0 %2526  ;;  %v2691_v60 = vadd.f32 1.0, %v4483_v20 }
 0x514   : > { %v4485_v26 = vpop.eup %4484  ;;  %4504 = vrcp.f32 %v2688_v11  ;;  %v3978_v31 = vmul.f32 -1.442695, %v2572_v44  ;;  %v2575_v4 = vadd.f32 %v6424_v39, %v2527_v25 }
 0x515   : > { %v4487_v12 = vpop.eup %4486  ;;  %v2694_v51 = vadd.f32 1.0, %v4485_v26  ;;  %4506 = vpow2.f32 %v3975_v21  ;;  %v2525_v24 = vpop.xlane.xlu1 %2524 }
 0x516   : > { %v4489_v37 = vpop.eup %4488  ;;  %4508 = vpow2.f32 %v3978_v31  ;;  %v2574_v63 = vadd.f32 %v6424_v39, %v2525_v24  ;;  %3165 = vperm.xlu1 %4307, %v4487_v12   ;;  %v3981_v36 = vmul.f32 -1.442695, %v2575_v4 }
 0x517   : > { %v4491_v2 = vpop.eup %4490  ;;  %4510 = vrcp.f32 %v2694_v51  ;;  %v2531_v54 = vpop.xlane.xlu0 %2530  ;;  %v2693_v14 = vadd.f32 1.0, %v4489_v37 }
 0x518   : > { %v4493_v47 = vpop.eup %4492  ;;  %4512 = vrcp.f32 %v2689_v16  ;;  %v3980_v62 = vmul.f32 -1.442695, %v2574_v63  ;;  %v2577_v18 = vadd.f32 %v6424_v39, %v2531_v54 }
 0x519   : > { %v4495_v38 = vpop.eup %4494  ;;  %v2696_v42 = vadd.f32 1.0, %v4493_v47  ;;  %4514 = vpow2.f32 %v3977_v30  ;;  %v2529_v1 = vpop.xlane.xlu1 %2528 }
 0x51a   : > { %v4497_v6 = vpop.eup %4496  ;;  %4516 = vpow2.f32 %v3980_v62  ;;  %v2576_v50 = vadd.f32 %v6424_v39, %v2529_v1  ;;  %3190 = vperm.xlu0 %4306, %v4495_v38   ;;  %3170 = vperm.xlu1 %4307, %v4491_v2   ;;  %v3983_v49 = vmul.f32 -1.442695, %v2577_v18 }
 0x51b   : > { %v4499_v53 = vpop.eup %4498  ;;  %4518 = vrcp.f32 %v2696_v42  ;;  %v2535_v33 = vpop.xlane.xlu0 %2534 }
 0x51c   : > { %v4501_v40 = vpop.eup %4500  ;;  %v3982_v13 = vmul.f32 -1.442695, %v2576_v50  ;;  %4520 = vrcp.f32 %v2691_v60  ;;  %v2695_v46 = vadd.f32 1.0, %v4499_v53  ;;  %v2579_v58 = vadd.f32 %v6424_v39, %v2535_v33 }
 0x51d   : > { %v4503_v59 = vpop.eup %4502  ;;  %v2698_v55 = vadd.f32 1.0, %v4501_v40  ;;  %v2533_v29 = vpop.xlane.xlu1 %2532 }
 0x51e   : > { %v4505_v23 = vpop.eup %4504  ;;  %4522 = vpow2.f32 %v3982_v13  ;;  %v2578_v17 = vadd.f32 %v6424_v39, %v2533_v29  ;;  %3200 = vperm.xlu0 %4306, %v4503_v59   ;;  %3175 = vperm.xlu1 %4307, %v4497_v6   ;;  %v3985_v44 = vmul.f32 -1.442695, %v2579_v58 }
 0x51f   : > { %v4507_v8 = vpop.eup %4506  ;;  %4524 = vrcp.f32 %v2698_v55  ;;  %v2539_v7 = vpop.xlane.xlu0 %2538 }
 0x520   : > { %v4509_v48 = vpop.eup %4508  ;;  %4526 = vpow2.f32 %v3979_v34  ;;  %v3984_v32 = vmul.f32 -1.442695, %v2578_v17  ;;  %v2697_v52 = vadd.f32 1.0, %v4507_v8  ;;  %v2581_v26 = vadd.f32 %v6424_v39, %v2539_v7 }
 0x521   : > { %v4511_v45 = vpop.eup %4510  ;;  %4528 = vrcp.f32 %v2693_v14  ;;  %v2700_v61 = vadd.f32 1.0, %v4509_v48  ;;  %v2537_v22 = vpop.xlane.xlu1 %2536 }
 0x522   : > { %v4513_v57 = vpop.eup %4512  ;;  %4530 = vpow2.f32 %v3984_v32  ;;  %v2580_v3 = vadd.f32 %v6424_v39, %v2537_v22  ;;  %3210 = vperm.xlu0 %4306, %v4511_v45   ;;  %3180 = vperm.xlu1 %4307, %v4505_v23   ;;  %v3987_v10 = vmul.f32 -1.442695, %v2581_v26 }
 0x523   : > { %v4515_v15 = vpop.eup %4514  ;;  %4532 = vrcp.f32 %v2700_v61  ;;  %v2543_v12 = vpop.xlane.xlu0 %2542 }
 0x524   : > { %v4517_v19 = vpop.eup %4516  ;;  %4534 = vpow2.f32 %v3981_v36  ;;  %v3986_v35 = vmul.f32 -1.442695, %v2580_v3  ;;  %v2699_v43 = vadd.f32 1.0, %v4515_v15  ;;  %v2583_v62 = vadd.f32 %v6424_v39, %v2543_v12 }
 0x525   : > { %v4519_v56 = vpop.eup %4518  ;;  %4536 = vrcp.f32 %v2695_v46  ;;  %v2702_v41 = vadd.f32 1.0, %v4517_v19  ;;  %v2541_v28 = vpop.xlane.xlu1 %2540 }
 0x526   : > { %4538 = vpow2.f32 %v3986_v35  ;;  %v2582_v11 = vadd.f32 %v6424_v39, %v2541_v28  ;;  %3220 = vperm.xlu0 %4306, %v4519_v56   ;;  %3185 = vperm.xlu1 %4307, %v4513_v57   ;;  %v4521_v9 = vpop.eup %4520  ;;  %v3989_v53 = vmul.f32 -1.442695, %v2583_v62 }
 0x527   : > { %4540 = vrcp.f32 %v2702_v41  ;;  %v6504_v55 = vpop.xlane.xlu0 %2816 }
 0x528   : > { %v4523_v0 = vpop.eup %4522  ;;  %4542 = vrcp.f32 %v2697_v52  ;;  %v3988_v21 = vmul.f32 -1.442695, %v2582_v11 }
 0x529   : > { %v4525_v27 = vpop.eup %4524  ;;  %4544 = vpow2.f32 %v3983_v49  ;;  %v2704_v5 = vadd.f32 1.0, %v4523_v0  ;;  %v2545_v20 = vpop.xlane.xlu1 %2544 }
 0x52a   : > { %v4527_v25 = vpop.eup %4526  ;;  %4546 = vpow2.f32 %v3988_v21  ;;  %v2584_v16 = vadd.f32 %v6424_v39, %v2545_v20  ;;  %3230 = vperm.xlu0 %4306, %v4525_v27   ;;  %3195 = vperm.xlu1 %4307, %v4521_v9  }
 0x52b   : > { %v4529_v31 = vpop.eup %4528  ;;  %4548 = vrcp.f32 %v2704_v5  ;;  %v2701_v37 = vadd.f32 1.0, %v4527_v25  ;;  %v6508_v45 = vpop.xlane.xlu0 %2820 }
 0x52c   : > { %v4531_v51 = vpop.eup %4530  ;;  %4550 = vrcp.f32 %v2699_v43  ;;  %v3990_v30 = vmul.f32 -1.442695, %v2584_v16 }
 0x52d   : > { %v4533_v24 = vpop.eup %4532  ;;  %4552 = vpow2.f32 %v3985_v44  ;;  %v2706_v63 = vadd.f32 1.0, %v4531_v51  ;;  %v6499_v2 = vpop.xlane.xlu1 %2818 }
 0x52e   : > { %v4535_v47 = vpop.eup %4534  ;;  %4554 = vpow2.f32 %v3990_v30  ;;  %3240 = vperm.xlu0 %4306, %v4533_v24   ;;  %3205 = vperm.xlu1 %4307, %v4529_v31  }
 0x52f   : > { %v4537_v38 = vpop.eup %4536  ;;  %4556 = vrcp.f32 %v2706_v63  ;;  %v2703_v54 = vadd.f32 1.0, %v4535_v47  ;;  %v6512_v15 = vpop.xlane.xlu0 %2824 }
 0x530   : > { %v4539_v60 = vpop.eup %4538  ;;  %4558 = vrcp.f32 %v2701_v37 }
 0x531   : > { %v4541_v42 = vpop.eup %4540  ;;  %v2708_v1 = vadd.f32 1.0, %v4539_v60  ;;  %v6502_v6 = vpop.xlane.xlu1 %2822  ;;  %4560 = vpow2.f32 %v3987_v10 }
 0x532   : > { %v4543_v50 = vpop.eup %4542  ;;  %3250 = vperm.xlu0 %4306, %v4541_v42   ;;  %3215 = vperm.xlu1 %4307, %v4537_v38  }
 0x533   : > { %v4545_v40 = vpop.eup %4544  ;;  %4562 = vrcp.f32 %v2708_v1  ;;  %v6516_v41 = vpop.xlane.xlu0 %2828 }
 0x534   : > { %v4547_v39 = vpop.eup %4546  ;;  %4564 = vrcp.f32 %v2703_v54  ;;  %v2705_v59 = vadd.f32 1.0, %v4545_v40  ;;  %v6569_v40 = vld [vmem:[%s7243_s19] ss:$0 sm:$0xff] }
 0x535   : > { %v4549_v34 = vpop.eup %4548  ;;  %v2710_v4 = vadd.f32 1.0, %v4547_v39  ;;  %4566 = vpow2.f32 %v3989_v53  ;;  %v6506_v29 = vpop.xlane.xlu1 %2826 }
 0x536   : > { %v4551_v13 = vpop.eup %4550  ;;  %3260 = vperm.xlu0 %4306, %v4549_v34   ;;  %3225 = vperm.xlu1 %4307, %v4543_v50  }
 0x537   : > { %v4553_v14 = vpop.eup %4552  ;;  %4568 = vrcp.f32 %v2710_v4  ;;  %v6520_v7 = vpop.xlane.xlu0 %2832 }
 0x538   : > { %v4555_v23 = vpop.eup %4554  ;;  %4570 = vrcp.f32 %v2705_v59  ;;  %v2707_v48 = vadd.f32 1.0, %v4553_v14 }
 0x539   : > { %v4557_v17 = vpop.eup %4556  ;;  %v2712_v8 = vadd.f32 1.0, %v4555_v23  ;;  %v6510_v46 = vpop.xlane.xlu1 %2830 }
 0x53a   : > { %3270 = vperm.xlu0 %4306, %v4557_v17   ;;  %3235 = vperm.xlu1 %4307, %v4551_v13   ;;  %v4559_v33 = vpop.eup %4558 }
 0x53b   : > { %4572 = vrcp.f32 %v2712_v8  ;;  %v4561_v36 = vpop.eup %4560  ;;  %v6524_v9 = vpop.xlane.xlu0 %2836 }
 0x53c   : > { %4574 = vrcp.f32 %v2707_v48  ;;  %v2709_v18 = vadd.f32 1.0, %v4561_v36 }
 0x53d   : > { %v4563_v32 = vpop.eup %4562  ;;  %v6514_v19 = vpop.xlane.xlu1 %2834 }
 0x53e   : > { %3280 = vperm.xlu0 %4306, %v4563_v32   ;;  %3245 = vperm.xlu1 %4307, %v4559_v33   ;;  %v4565_v61 = vpop.eup %4564  ;;  %4576 = vrcp.f32 %v2709_v18 }
 0x53f   : > { %v4567_v22 = vpop.eup %4566  ;;  %v6528_v43 = vpop.xlane.xlu0 %2840 }
 0x540   : > { %v2711_v3 = vadd.f32 1.0, %v4567_v22 }
 0x541   : > { %v4569_v57 = vpop.eup %4568  ;;  %v6518_v49 = vpop.xlane.xlu1 %2838 }
 0x542   : > { %3290 = vperm.xlu0 %4306, %v4569_v57   ;;  %3255 = vperm.xlu1 %4307, %v4565_v61   ;;  %v4571_v52 = vpop.eup %4570  ;;  %4578 = vrcp.f32 %v2711_v3 }
 0x543   : > { %v6532_v27 = vpop.xlane.xlu0 %2844 }
 0x545   : > { %v4573_v35 = vpop.eup %4572  ;;  %v6522_v28 = vpop.xlane.xlu1 %2842 }
 0x546   : > { %3300 = vperm.xlu0 %4306, %v4573_v35   ;;  %3265 = vperm.xlu1 %4307, %v4571_v52   ;;  %v4575_v56 = vpop.eup %4574 }
 0x547   : > { %v6536_v44 = vpop.xlane.xlu0 %2848 }
 0x548   : > { %v4577_v58 = vpop.eup %4576 }
 0x549   : > { %v6526_v0 = vpop.xlane.xlu1 %2846 }
 0x54a   : > { %3275 = vperm.xlu1 %4307, %v4575_v56  }
 0x54b   : > { %v6540_v25 = vpop.xlane.xlu0 %2852 }
 0x54c   : > { %v4579_v11 = vpop.eup %4578 }
 0x54d   : > { %v6530_v21 = vpop.xlane.xlu1 %2850 }
 0x54e   : > { %3285 = vperm.xlu1 %4307, %v4577_v58  }
 0x54f   : > { %v6544_v16 = vpop.xlane.xlu0 %2856 }
 0x551   : > { %v6534_v5 = vpop.xlane.xlu1 %2854 }
 0x552   : > { %3295 = vperm.xlu1 %4307, %v4579_v11  }
 0x553   : > { %v6548_v12 = vpop.xlane.xlu0 %2860 }
 0x555   : > { %v6538_v20 = vpop.xlane.xlu1 %2858 }
 0x557   : > { %v6552_v30 = vpop.xlane.xlu0 %2864 }
 0x559   : > { %v6542_v26 = vpop.xlane.xlu1 %2862 }
 0x55b   : > { %v6556_v37 = vpop.xlane.xlu0 %2868 }
 0x55d   : > { %v6546_v31 = vpop.xlane.xlu1 %2866 }
 0x55f   : > { %v6560_v10 = vpop.xlane.xlu0 %2872 }
 0x561   : > { %v6550_v51 = vpop.xlane.xlu1 %2870 }
 0x563   : > { %v6562_v38 = vpop.xlane.xlu0 %2876 }
 0x565   : > { %v6554_v24 = vpop.xlane.xlu1 %2874 }
 0x569   : > { %v6558_v63 = vpop.xlane.xlu1 %2878 }
 0x583   : > { %v3146_v42 = vpop.permute.xlu0 %3145 }
 0x589   : > { %v3151_v47 = vpop.permute.xlu1 %3150 }
 0x58d   : > { %v3156_v62 = vpop.permute.xlu1 %3155 }
 0x591   : > { %v3161_v60 = vpop.permute.xlu1 %3160 }
 0x595   : > { %v3166_v54 = vpop.permute.xlu1 %3165 }
 0x599   : > { %v3171_v1 = vpop.permute.xlu1 %3170  ;;  %v6564_v50 = vpop.permute.xlu0 %3190 }
 0x59d   : > { %v3176_v53 = vpop.permute.xlu1 %3175  ;;  %v3201_v39 = vpop.permute.xlu0 %3200 }
 0x59f   : > { %v4194_v34 = vpop.f32.mrb[20].mxu1 }
 0x5a0   : > { %v2293_v4 = vadd.f32 %v4194_v34, %v6569_v40  ;;  %v2284_v13 = vpop.f32.mrb[21].mxu1 }
 0x5a1   : > { %v2285_v59 = vadd.f32 %v6569_v40, %v2284_v13  ;;  %v4195_v14 = vpop.f32.mrb[22].mxu1  ;;  %v3181_v23 = vpop.permute.xlu1 %3180 }
 0x5a2   : > { %v6573_v17 = vmul.f32 %v3156_v62, %v2293_v4  ;;  %v2296_v8 = vadd.f32 %v4195_v14, %v6569_v40  ;;  %v2287_v33 = vpop.f32.mrb[23].mxu1  ;;  %v6579_v32 = vpop.permute.xlu0 %3210 }
 0x5a3   : > { %v6576_v48 = vmul.f32 %v3146_v42, %v2285_v59  ;;  %v2288_v36 = vadd.f32 %v6569_v40, %v2287_v33 }
 0x5a4   : > { %v3337_v61 = vmul.f32 %v6573_v17, %v6573_v17  ;;  %v6583_v18 = vmul.f32 %v3161_v60, %v2296_v8 }
 0x5a5   : > { %v6585_v22 = vmul.f32 %v3151_v47, %v2288_v36  ;;  %v3186_v57 = vpop.permute.xlu1 %3185  ;;  %v3335_v3 = vmul.f32 %v6576_v48, %v6576_v48 }
 0x5a6   : > { %3371 = vadd.xlane.f32.xlu0 %v3337_v61  ;;  %v3338_v47 = vmul.f32 %v6583_v18, %v6583_v18  ;;  %v3221_v42 = vpop.permute.xlu0 %3220 }
 0x5a7   : > { %v4198_v52 = vpop.f32.mrb[24].mxu1  ;;  %3367 = vadd.xlane.f32.xlu1 %v3335_v3  ;;  %v3336_v35 = vmul.f32 %v6585_v22, %v6585_v22 }
 0x5a8   : > { %v2309_v56 = vadd.f32 %v4198_v52, %v6569_v40  ;;  %v2300_v58 = vpop.f32.mrb[25].mxu1 }
 0x5a9   : > { %v2301_v11 = vadd.f32 %v6569_v40, %v2300_v58  ;;  %v4199_v62 = vpop.f32.mrb[26].mxu1  ;;  %v3196_v60 = vpop.permute.xlu1 %3195 }
 0x5aa   : > { %v6595_v34 = vmul.f32 %v3176_v53, %v2309_v56  ;;  %v2312_v4 = vadd.f32 %v4199_v62, %v6569_v40  ;;  %v2303_v13 = vpop.f32.mrb[27].mxu1  ;;  %3369 = vadd.xlane.f32.xlu0 %v3336_v35  ;;  %v6609_v52 = vpop.permute.xlu0 %3230 }
 0x5ab   : > { %v2304_v59 = vadd.f32 %v6569_v40, %v2303_v13  ;;  %3373 = vadd.xlane.f32.xlu1 %v3338_v47  ;;  %v6599_v14 = vmul.f32 %v3166_v54, %v2301_v11 }
 0x5ac   : > { %v6601_v8 = vmul.f32 %v3181_v23, %v2312_v4  ;;  %v3341_v33 = vmul.f32 %v6595_v34, %v6595_v34 }
 0x5ad   : > { %v3206_v36 = vpop.permute.xlu1 %3205  ;;  %v6605_v61 = vmul.f32 %v3171_v1, %v2304_v59  ;;  %v3339_v54 = vmul.f32 %v6599_v14, %v6599_v14 }
 0x5ae   : > { %3379 = vadd.xlane.f32.xlu0 %v3341_v33  ;;  %v3342_v53 = vmul.f32 %v6601_v8, %v6601_v8 }
 0x5af   : > { %v4202_v3 = vpop.f32.mrb[28].mxu1  ;;  %v3340_v4 = vmul.f32 %v6605_v61, %v6605_v61 }
 0x5b0   : > { %v2325_v35 = vadd.f32 %v4202_v3, %v6569_v40  ;;  %v2316_v56 = vpop.f32.mrb[29].mxu1  ;;  %3381 = vadd.xlane.f32.xlu1 %v3342_v53 }
 0x5b1   : > { %v2317_v23 = vadd.f32 %v6569_v40, %v2316_v56  ;;  %v4203_v58 = vpop.f32.mrb[30].mxu1  ;;  %v3216_v11 = vpop.permute.xlu1 %3215 }
 0x5b2   : > { %v6615_v1 = vmul.f32 %v3196_v60, %v2325_v35  ;;  %v2328_v62 = vadd.f32 %v4203_v58, %v6569_v40  ;;  %v2319_v47 = vpop.f32.mrb[31].mxu1  ;;  %3375 = vadd.xlane.f32.xlu0 %v3339_v54  ;;  %v3241_v56 = vpop.permute.xlu0 %3240 }
 0x5b3   : > { %v2320_v13 = vadd.f32 %v6569_v40, %v2319_v47  ;;  %v6621_v59 = vmul.f32 %v3186_v57, %v2317_v23 }
 0x5b4   : > { %v6623_v33 = vmul.f32 %v3201_v39, %v2328_v62  ;;  %3377 = vadd.xlane.f32.xlu1 %v3340_v4  ;;  %v3345_v53 = vmul.f32 %v6615_v1, %v6615_v1 }
 0x5b5   : > { %7244 = vst [vmem:[#allocation17_spill] sm:$0xff] %v6621_v59  ;;  %v3226_v3 = vpop.permute.xlu1 %3225  ;;  %v6628_v60 = vmul.f32 %v6564_v50, %v2320_v13  ;;  %v3343_v39 = vmul.f32 %v6621_v59, %v6621_v59 }
 0x5b6   : > { %7245 = vst [vmem:[#allocation16_spill] sm:$0xff] %v6623_v33  ;;  %3387 = vadd.xlane.f32.xlu0 %v3345_v53  ;;  %v3346_v35 = vmul.f32 %v6623_v33, %v6623_v33  ;;  %v3251_v59 = vpop.permute.xlu0 %3250 }
 0x5b7   : > { %7246 = vst [vmem:[#allocation18_spill] sm:$0xff] %v6628_v60  ;;  %v4206_v54 = vpop.f32.mrb[32].mxu1  ;;  %v3344_v53 = vmul.f32 %v6628_v60, %v6628_v60 }
 0x5b8   : > { %v2341_v58 = vadd.f32 %v4206_v54, %v6569_v40  ;;  %v2332_v57 = vpop.f32.mrb[33].mxu1  ;;  %3389 = vadd.xlane.f32.xlu1 %v3346_v35 }
 0x5b9   : > { %v2333_v23 = vadd.f32 %v6569_v40, %v2332_v57  ;;  %v4207_v62 = vpop.f32.mrb[34].mxu1  ;;  %v3236_v47 = vpop.permute.xlu1 %3235 }
 0x5ba   : > { %v6636_v4 = vmul.f32 %v3216_v11, %v2341_v58  ;;  %v2344_v50 = vadd.f32 %v4207_v62, %v6569_v40  ;;  %v2335_v13 = vpop.f32.mrb[35].mxu1  ;;  %3383 = vadd.xlane.f32.xlu0 %v3343_v39 }
 0x5bb   : > { %v2336_v54 = vadd.f32 %v6569_v40, %v2335_v13  ;;  %v6642_v33 = vmul.f32 %v3206_v36, %v2333_v23 }
 0x5bc   : > { %7247 = vst [vmem:[#allocation19_spill] sm:$0xff] %v6636_v4  ;;  %v6644_v35 = vmul.f32 %v3221_v42, %v2344_v50  ;;  %3385 = vadd.xlane.f32.xlu1 %v3344_v53  ;;  %v3349_v57 = vmul.f32 %v6636_v4, %v6636_v4 }
 0x5bd   : > { %v3246_v11 = vpop.permute.xlu1 %3245  ;;  %v6649_v58 = vmul.f32 %v6579_v32, %v2336_v54  ;;  %v3347_v42 = vmul.f32 %v6642_v33, %v6642_v33 }
 0x5be   : > { %7248 = vst [vmem:[#allocation21_spill] sm:$0xff] %v6644_v35  ;;  %3395 = vadd.xlane.f32.xlu0 %v3349_v57  ;;  %v3350_v39 = vmul.f32 %v6644_v35, %v6644_v35  ;;  %v3261_v35 = vpop.permute.xlu0 %3260 }
 0x5bf   : > { %7249 = vst [vmem:[#allocation20_spill] sm:$0xff] %v6649_v58  ;;  %v4210_v62 = vpop.f32.mrb[36].mxu1  ;;  %v3348_v57 = vmul.f32 %v6649_v58, %v6649_v58 }
 0x5c0   : > { %v2357_v13 = vadd.f32 %v4210_v62, %v6569_v40  ;;  %v2348_v36 = vpop.f32.mrb[37].mxu1  ;;  %3397 = vadd.xlane.f32.xlu1 %v3350_v39 }
 0x5c1   : > { %v2349_v23 = vadd.f32 %v6569_v40, %v2348_v36  ;;  %v4211_v50 = vpop.f32.mrb[38].mxu1  ;;  %v3256_v53 = vpop.permute.xlu1 %3255 }
 0x5c2   : > { %v6657_v4 = vmul.f32 %v3236_v47, %v2357_v13  ;;  %v2360_v32 = vadd.f32 %v4211_v50, %v6569_v40  ;;  %v2351_v54 = vpop.f32.mrb[39].mxu1  ;;  %3391 = vadd.xlane.f32.xlu0 %v3347_v42 }
 0x5c3   : > { %v2352_v62 = vadd.f32 %v6569_v40, %v2351_v54  ;;  %v6663_v39 = vmul.f32 %v3226_v3, %v2349_v23 }
 0x5c4   : > { %v6665_v60 = vmul.f32 %v3241_v56, %v2360_v32  ;;  %3393 = vadd.xlane.f32.xlu1 %v3348_v57  ;;  %v3353_v36 = vmul.f32 %v6657_v4, %v6657_v4  ;;  %v3271_v56 = vpop.permute.xlu0 %3270 }
 0x5c5   : > { %7250 = vst [vmem:[#allocation22_spill] sm:$0xff] %v6663_v39  ;;  %v6670_v47 = vmul.f32 %v6609_v52, %v2352_v62  ;;  %v3266_v42 = vpop.permute.xlu1 %3265  ;;  %v3351_v3 = vmul.f32 %v6663_v39, %v6663_v39 }
 0x5c6   : > { %7251 = vst [vmem:[#allocation23_spill] sm:$0xff] %v6665_v60  ;;  %3403 = vadd.xlane.f32.xlu0 %v3353_v36  ;;  %v3354_v13 = vmul.f32 %v6665_v60, %v6665_v60 }
 0x5c7   : > { %7252 = vst [vmem:[#allocation25_spill] sm:$0xff] %v6670_v47  ;;  %v4214_v50 = vpop.f32.mrb[40].mxu1  ;;  %v3352_v36 = vmul.f32 %v6670_v47, %v6670_v47 }
 0x5c8   : > { %v2373_v58 = vadd.f32 %v4214_v50, %v6569_v40  ;;  %v2364_v54 = vpop.f32.mrb[41].mxu1  ;;  %3405 = vadd.xlane.f32.xlu1 %v3354_v13 }
 0x5c9   : > { %v2365_v23 = vadd.f32 %v6569_v40, %v2364_v54  ;;  %v4215_v32 = vpop.f32.mrb[42].mxu1  ;;  %v3276_v39 = vpop.permute.xlu1 %3275 }
 0x5ca   : > { %v6678_v57 = vmul.f32 %v3256_v53, %v2373_v58  ;;  %v2376_v52 = vadd.f32 %v4215_v32, %v6569_v40  ;;  %v2367_v62 = vpop.f32.mrb[43].mxu1  ;;  %3399 = vadd.xlane.f32.xlu0 %v3351_v3  ;;  %v3281_v3 = vpop.permute.xlu0 %3280 }
 0x5cb   : > { %v2368_v50 = vadd.f32 %v6569_v40, %v2367_v62  ;;  %v6684_v60 = vmul.f32 %v3246_v11, %v2365_v23 }
 0x5cc   : > { %v6686_v13 = vmul.f32 %v3261_v35, %v2376_v52  ;;  %3401 = vadd.xlane.f32.xlu1 %v3352_v36  ;;  %v3357_v54 = vmul.f32 %v6678_v57, %v6678_v57 }
 0x5cd   : > { %7253 = vst [vmem:[#allocation24_spill] sm:$0xff] %v6684_v60  ;;  %v6690_v58 = vmul.f32 %v3251_v59, %v2368_v50  ;;  %v3355_v35 = vmul.f32 %v6684_v60, %v6684_v60 }
 0x5ce   : > { %7254 = vst [vmem:[#allocation26_spill] sm:$0xff] %v6686_v13  ;;  %3411 = vadd.xlane.f32.xlu0 %v3357_v54  ;;  %v3358_v53 = vmul.f32 %v6686_v13, %v6686_v13  ;;  %v3286_v54 = vpop.permute.xlu1 %3285 }
 0x5cf   : > { %7255 = vst [vmem:[#allocation27_spill] sm:$0xff] %v6690_v58  ;;  %v4218_v32 = vpop.f32.mrb[44].mxu1  ;;  %v3356_v50 = vmul.f32 %v6690_v58, %v6690_v58 }
 0x5d0   : > { %v2389_v47 = vadd.f32 %v4218_v32, %v6569_v40  ;;  %v2380_v62 = vpop.f32.mrb[45].mxu1  ;;  %3413 = vadd.xlane.f32.xlu1 %v3358_v53 }
 0x5d1   : > { %v2381_v11 = vadd.f32 %v6569_v40, %v2380_v62  ;;  %v4219_v23 = vpop.f32.mrb[46].mxu1 }
 0x5d2   : > { %v6698_v52 = vmul.f32 %v3276_v39, %v2389_v47  ;;  %v2392_v59 = vadd.f32 %v4219_v23, %v6569_v40  ;;  %v2383_v36 = vpop.f32.mrb[47].mxu1  ;;  %3407 = vadd.xlane.f32.xlu0 %v3355_v35  ;;  %v3291_v39 = vpop.permute.xlu0 %3290 }
 0x5d3   : > { %v2384_v32 = vadd.f32 %v6569_v40, %v2383_v36  ;;  %v6704_v13 = vmul.f32 %v3266_v42, %v2381_v11 }
 0x5d4   : > { %v6706_v53 = vmul.f32 %v3281_v3, %v2392_v59  ;;  %3409 = vadd.xlane.f32.xlu1 %v3356_v50  ;;  %v3361_v62 = vmul.f32 %v6698_v52, %v6698_v52  ;;  %v3296_v3 = vpop.permute.xlu1 %3295 }
 0x5d5   : > { %v6710_v47 = vmul.f32 %v3271_v56, %v2384_v32  ;;  %v3359_v42 = vmul.f32 %v6704_v13, %v6704_v13 }
 0x5d6   : > { %7256 = vst [vmem:[#allocation29_spill] sm:$0xff] %v6706_v53  ;;  %3419 = vadd.xlane.f32.xlu0 %v3361_v62  ;;  %v3362_v35 = vmul.f32 %v6706_v53, %v6706_v53  ;;  %v3301_v62 = vpop.permute.xlu0 %3300 }
 0x5d7   : > { %v4222_v23 = vpop.f32.mrb[48].mxu1  ;;  %v3360_v32 = vmul.f32 %v6710_v47, %v6710_v47 }
 0x5d8   : > { %v2405_v58 = vadd.f32 %v4222_v23, %v6569_v40  ;;  %v2396_v60 = vpop.f32.mrb[49].mxu1  ;;  %3421 = vadd.xlane.f32.xlu1 %v3362_v35 }
 0x5d9   : > { %v2397_v11 = vadd.f32 %v6569_v40, %v2396_v60  ;;  %v4223_v59 = vpop.f32.mrb[50].mxu1 }
 0x5da   : > { %v6718_v36 = vmul.f32 %v3296_v3, %v2405_v58  ;;  %v2408_v56 = vadd.f32 %v4223_v59, %v6569_v40  ;;  %v2399_v50 = vpop.f32.mrb[51].mxu1  ;;  %3415 = vadd.xlane.f32.xlu0 %v3359_v42 }
 0x5db   : > { %v2400_v23 = vadd.f32 %v6569_v40, %v2399_v50  ;;  %v6724_v35 = vmul.f32 %v3286_v54, %v2397_v11  ;;  %v6738_v54 = vld [vmem:[#allocation3] ss:$0 sm:$0xff] }
 0x5dc   : > { %v6726_v53 = vmul.f32 %v3301_v62, %v2408_v56  ;;  %3417 = vadd.xlane.f32.xlu1 %v3360_v32  ;;  %v3365_v60 = vmul.f32 %v6718_v36, %v6718_v36  ;;  %v2887_v11 = vadd.f32 %v6738_v54, %v6504_v55  ;;  %v2888_v56 = vadd.f32 %v6738_v54, %v6499_v2 }
 0x5dd   : > { %v6730_v58 = vmul.f32 %v3291_v39, %v2400_v23  ;;  %v3363_v3 = vmul.f32 %v6724_v35, %v6724_v35  ;;  %v2889_v39 = vadd.f32 %v6738_v54, %v6508_v45  ;;  %v2891_v32 = vadd.f32 %v6738_v54, %v6512_v15 }
 0x5de   : > { %3427 = vadd.xlane.f32.xlu0 %v3365_v60  ;;  %v3366_v42 = vmul.f32 %v6726_v53, %v6726_v53  ;;  %v3993_v59 = vmul.f32 -1.442695, %v2887_v11  ;;  %v3994_v62 = vmul.f32 -1.442695, %v2888_v56  ;;  %v2890_v23 = vadd.f32 %v6738_v54, %v6502_v6 }
 0x5df   : > { %v3364_v40 = vmul.f32 %v6730_v58, %v6730_v58  ;;  %v3995_v50 = vmul.f32 -1.442695, %v2889_v39  ;;  %v3997_v60 = vmul.f32 -1.442695, %v2891_v32  ;;  %v2893_v55 = vadd.f32 %v6738_v54, %v6516_v41 }
 0x5e0   : > { %3429 = vadd.xlane.f32.xlu1 %v3366_v42  ;;  %4580 = vpow2.f32 %v3993_v59  ;;  %v2892_v45 = vadd.f32 %v6738_v54, %v6506_v29  ;;  %v3996_v42 = vmul.f32 -1.442695, %v2890_v23  ;;  %v2895_v2 = vadd.f32 %v6738_v54, %v6520_v7 }
 0x5e1   : > { %4582 = vpow2.f32 %v3995_v50  ;;  %v3999_v15 = vmul.f32 -1.442695, %v2893_v55  ;;  %v2897_v6 = vadd.f32 %v6738_v54, %v6524_v9  ;;  %v2896_v41 = vadd.f32 %v6738_v54, %v6514_v19 }
 0x5e2   : > { %3423 = vadd.xlane.f32.xlu0 %v3363_v3  ;;  %4584 = vpow2.f32 %v3994_v62  ;;  %v2894_v3 = vadd.f32 %v6738_v54, %v6510_v46  ;;  %v4001_v11 = vmul.f32 -1.442695, %v2895_v2  ;;  %v2899_v7 = vadd.f32 %v6738_v54, %v6528_v43 }
 0x5e3   : > { %4586 = vpow2.f32 %v3997_v60  ;;  %v4003_v59 = vmul.f32 -1.442695, %v2897_v6  ;;  %v4002_v46 = vmul.f32 -1.442695, %v2896_v41  ;;  %v2898_v50 = vadd.f32 %v6738_v54, %v6518_v49 }
 0x5e4   : > { %3425 = vadd.xlane.f32.xlu1 %v3364_v40  ;;  %v3998_v40 = vmul.f32 -1.442695, %v2892_v45  ;;  %4588 = vpow2.f32 %v3996_v42  ;;  %v4000_v39 = vmul.f32 -1.442695, %v2894_v3  ;;  %v4005_v62 = vmul.f32 -1.442695, %v2899_v7 }
 0x5e5   : > { %4590 = vpow2.f32 %v3999_v15  ;;  %v2901_v19 = vadd.f32 %v6738_v54, %v6532_v27  ;;  %v4004_v43 = vmul.f32 -1.442695, %v2898_v50  ;;  %v2900_v55 = vadd.f32 %v6738_v54, %v6522_v28 }
 0x5e6   : > { %4592 = vpow2.f32 %v3998_v40  ;;  %v2903_v2 = vadd.f32 %v6738_v54, %v6536_v44  ;;  %v2902_v28 = vadd.f32 %v6738_v54, %v6526_v0  ;;  %v2905_v50 = vadd.f32 %v6738_v54, %v6540_v25 }
 0x5e7   : > { %4594 = vpow2.f32 %v4001_v11  ;;  %v4007_v49 = vmul.f32 -1.442695, %v2901_v19  ;;  %v4006_v27 = vmul.f32 -1.442695, %v2900_v55  ;;  %v2904_v19 = vadd.f32 %v6738_v54, %v6530_v21 }
 0x5e8   : > { %4596 = vpow2.f32 %v4000_v39  ;;  %v4009_v41 = vmul.f32 -1.442695, %v2903_v2  ;;  %v4011_v55 = vmul.f32 -1.442695, %v2905_v50  ;;  %v2907_v25 = vadd.f32 %v6738_v54, %v6544_v16 }
 0x5e9   : > { %4598 = vpow2.f32 %v4003_v59  ;;  %v4010_v2 = vmul.f32 -1.442695, %v2904_v19  ;;  %v2906_v21 = vadd.f32 %v6738_v54, %v6534_v5  ;;  %v2909_v16 = vadd.f32 %v6738_v54, %v6548_v12 }
 0x5ea   : > { %v4581_v29 = vpop.eup %4580  ;;  %4600 = vpow2.f32 %v4002_v46  ;;  %v4008_v46 = vmul.f32 -1.442695, %v2902_v28  ;;  %v2908_v5 = vadd.f32 %v6738_v54, %v6538_v20  ;;  %v2911_v50 = vadd.f32 %v6738_v54, %v6552_v30 }
 0x5eb   : > { %v4583_v56 = vpop.eup %4582  ;;  %v3015_v9 = vadd.f32 1.0, %v4581_v29  ;;  %v4012_v28 = vmul.f32 -1.442695, %v2906_v21 }
 0x5ec   : > { %v4585_v32 = vpop.eup %4584  ;;  %v3017_v23 = vadd.f32 1.0, %v4583_v56 }
 0x5ed   : > { %v4587_v60 = vpop.eup %4586  ;;  %4602 = vrcp.f32 %v3015_v9  ;;  %v3016_v45 = vadd.f32 1.0, %v4585_v32 }
 0x5ee   : > { %v4589_v42 = vpop.eup %4588  ;;  %4604 = vpow2.f32 %v4005_v62  ;;  %v3019_v15 = vadd.f32 1.0, %v4587_v60 }
 0x5ef   : > { %4606 = vrcp.f32 %v3017_v23  ;;  %v4591_v3 = vpop.eup %4590  ;;  %v3018_v6 = vadd.f32 1.0, %v4589_v42 }
 0x5f0   : > { %4608 = vpow2.f32 %v4004_v43  ;;  %v4593_v40 = vpop.eup %4592  ;;  %v3021_v29 = vadd.f32 1.0, %v4591_v3 }
 0x5f1   : > { %4610 = vrcp.f32 %v3016_v45  ;;  %v4595_v11 = vpop.eup %4594  ;;  %v3020_v7 = vadd.f32 1.0, %v4593_v40  ;;  %v4013_v40 = vmul.f32 -1.442695, %v2907_v25  ;;  %v4017_v25 = vmul.f32 -1.442695, %v2911_v50 }
 0x5f2   : > { %4612 = vpow2.f32 %v4007_v49  ;;  %v4597_v39 = vpop.eup %4596  ;;  %v3023_v59 = vadd.f32 1.0, %v4595_v11 }
 0x5f3   : > { %4614 = vrcp.f32 %v3019_v15  ;;  %v4599_v44 = vpop.eup %4598  ;;  %v3022_v32 = vadd.f32 1.0, %v4597_v39 }
 0x5f4   : > { %4616 = vpow2.f32 %v4006_v27  ;;  %v4601_v56 = vpop.eup %4600  ;;  %v3025_v0 = vadd.f32 1.0, %v4599_v44  ;;  %v4015_v44 = vmul.f32 -1.442695, %v2909_v16 }
 0x5f5   : > { %4618 = vrcp.f32 %v3018_v6  ;;  %v3024_v60 = vadd.f32 1.0, %v4601_v56 }
 0x5f6   : > { %4620 = vpow2.f32 %v4009_v41 }
 0x5f7   : > { %v6776_v9 = vpop.eup %4602  ;;  %4622 = vrcp.f32 %v3021_v29 }
 0x5f8   : > { %v4605_v62 = vpop.eup %4604  ;;  %4624 = vrcp.f32 %v3020_v7 }
 0x5f9   : > { %v6780_v23 = vpop.eup %4606  ;;  %4626 = vrcp.f32 %v3023_v59  ;;  %v3027_v42 = vadd.f32 1.0, %v4605_v62 }
 0x5fa   : > { %v4609_v43 = vpop.eup %4608  ;;  %4628 = vpow2.f32 %v4008_v46  ;;  %v4014_v46 = vmul.f32 -1.442695, %v2908_v5 }
 0x5fb   : > { %v6784_v45 = vpop.eup %4610  ;;  %4630 = vrcp.f32 %v3022_v32  ;;  %v3026_v3 = vadd.f32 1.0, %v4609_v43 }
 0x5fc   : > { %v4613_v49 = vpop.eup %4612  ;;  %4632 = vrcp.f32 %v3025_v0 }
 0x5fd   : > { %v6788_v15 = vpop.eup %4614  ;;  %4634 = vrcp.f32 %v3024_v60  ;;  %v3029_v11 = vadd.f32 1.0, %v4613_v49 }
 0x5fe   : > { %v4617_v27 = vpop.eup %4616  ;;  %4636 = vpow2.f32 %v4011_v55 }
 0x5ff   : > { %v6792_v6 = vpop.eup %4618  ;;  %4638 = vrcp.f32 %v3027_v42  ;;  %v3028_v39 = vadd.f32 1.0, %v4617_v27  ;;  %v2910_v42 = vadd.f32 %v6738_v54, %v6542_v26 }
 0x600   : > { %v4621_v41 = vpop.eup %4620  ;;  %4640 = vpow2.f32 %v4010_v2 }
 0x601   : > { %v6796_v29 = vpop.eup %4622  ;;  %4642 = vrcp.f32 %v3026_v3  ;;  %v3031_v12 = vadd.f32 1.0, %v4621_v41  ;;  %v4016_v41 = vmul.f32 -1.442695, %v2910_v42 }
 0x602   : > { %v6798_v7 = vpop.eup %4624  ;;  %4644 = vpow2.f32 %v4013_v40 }
 0x603   : > { %v6800_v59 = vpop.eup %4626  ;;  %4646 = vrcp.f32 %v3029_v11 }
 0x604   : > { %v4629_v56 = vpop.eup %4628  ;;  %4648 = vpow2.f32 %v4012_v28  ;;  %v2913_v28 = vadd.f32 %v6738_v54, %v6556_v37 }
 0x605   : > { %v6804_v32 = vpop.eup %4630  ;;  %4650 = vrcp.f32 %v3028_v39  ;;  %v3030_v19 = vadd.f32 1.0, %v4629_v56 }
 0x606   : > { %v6806_v20 = vpop.eup %4632  ;;  %4652 = vpow2.f32 %v4015_v44 }
 0x607   : > { %v6808_v0 = vpop.eup %4634  ;;  %4654 = vrcp.f32 %v3031_v12 }
 0x608   : > { %v4637_v55 = vpop.eup %4636  ;;  %4656 = vpow2.f32 %v4014_v46 }
 0x609   : > { %v6812_v49 = vpop.eup %4638  ;;  %v3033_v27 = vadd.f32 1.0, %v4637_v55 }
 0x60a   : > { %v4641_v2 = vpop.eup %4640 }
 0x60b   : > { %v6814_v3 = vpop.eup %4642  ;;  %v3032_v44 = vadd.f32 1.0, %v4641_v2 }
 0x60c   : > { %v4645_v11 = vpop.eup %4644 }
 0x60d   : > { %v6818_v5 = vpop.eup %4646  ;;  %v3035_v42 = vadd.f32 1.0, %v4645_v11 }
 0x60e   : > { %v4649_v39 = vpop.eup %4648 }
 0x60f   : > { %v6820_v56 = vpop.eup %4650 }
 0x610   : > { %v4653_v50 = vpop.eup %4652 }
 0x611   : > { %v6824_v37 = vpop.eup %4654 }
 0x612   : > { %v6826_v55 = vpop.eup %4656 }
 0x633   : > { %v3372_v62 = vpop.xlane.xlu0 %3371 }
 0x634   : > { %v3433_v60 = vadd.f32 1e-16, %v3372_v62  ;;  %v3368_v43 = vpop.xlane.xlu1 %3367  ;;  %v4019_v62 = vmul.f32 -1.442695, %v2913_v28 }
 0x635   : > { %v3431_v30 = vadd.f32 1e-16, %v3368_v43 }
 0x636   : > { %4658 = vrsqrt.f32 %v3433_v60 }
 0x637   : > { %4660 = vrsqrt.f32 %v3431_v30  ;;  %v3370_v21 = vpop.xlane.xlu0 %3369 }
 0x638   : > { %4662 = vrcp.f32 %v3030_v19  ;;  %v3432_v40 = vadd.f32 1e-16, %v3370_v21  ;;  %v3374_v16 = vpop.xlane.xlu1 %3373  ;;  %v2912_v19 = vadd.f32 %v6738_v54, %v6546_v31  ;;  %v3111_v21 = vmul.f32 10.0, %v6776_v9 }
 0x639   : > { %4664 = vpow2.f32 %v4017_v25  ;;  %v3434_v26 = vadd.f32 1e-16, %v3374_v16  ;;  %v3113_v25 = vmul.f32 10.0, %v6780_v23  ;;  %v2915_v16 = vadd.f32 %v6738_v54, %v6560_v10 }
 0x63a   : > { %4666 = vrsqrt.f32 %v3432_v40  ;;  %v4018_v31 = vmul.f32 -1.442695, %v2912_v19  ;;  %v3034_v9 = vadd.f32 1.0, %v4649_v39  ;;  %v3114_v19 = vmul.f32 10.0, %v6792_v6 }
 0x63b   : > { %4668 = vrsqrt.f32 %v3434_v26  ;;  %v3380_v12 = vpop.xlane.xlu0 %3379  ;;  %v2914_v6 = vadd.f32 %v6738_v54, %v6550_v51 }
 0x63c   : > { %4670 = vrcp.f32 %v3033_v27  ;;  %v3437_v46 = vadd.f32 1e-16, %v3380_v12  ;;  %v3112_v12 = vmul.f32 10.0, %v6784_v45 }
 0x63d   : > { %4672 = vpow2.f32 %v4016_v41  ;;  %v3382_v60 = vpop.xlane.xlu1 %3381 }
 0x63e   : > { %4674 = vrsqrt.f32 %v3437_v46  ;;  %v3438_v43 = vadd.f32 1e-16, %v3382_v60 }
 0x63f   : > { %4676 = vrcp.f32 %v3032_v44  ;;  %v3376_v30 = vpop.xlane.xlu0 %3375 }
 0x640   : > { %v4659_v2 = vpop.eup %4658  ;;  %4678 = vrsqrt.f32 %v3438_v43  ;;  %v3435_v27 = vadd.f32 1e-16, %v3376_v30  ;;  %v4021_v30 = vmul.f32 -1.442695, %v2915_v16 }
 0x641   : > { %v4661_v40 = vpop.eup %4660  ;;  %4680 = vpow2.f32 %v4019_v62  ;;  %v3378_v41 = vpop.xlane.xlu1 %3377  ;;  %v3497_v28 = vmul.f32 %v4659_v2, %v3113_v25 }
 0x642   : > { %v6832_v26 = vpop.eup %4662  ;;  %4682 = vrsqrt.f32 %v3435_v27  ;;  %v3436_v23 = vadd.f32 1e-16, %v3378_v41  ;;  %v3495_v44 = vmul.f32 %v4661_v40, %v3111_v21  ;;  %v3117_v40 = vmul.f32 10.0, %v6796_v29 }
 0x643   : > { %v6834_v11 = vpop.eup %4664  ;;  %4684 = vrcp.f32 %v3035_v42  ;;  %v3388_v46 = vpop.xlane.xlu0 %3387  ;;  %v3529_v60 = vmin.f32 %v3497_v28, 1.0 }
 0x644   : > { %v4667_v62 = vpop.eup %4666  ;;  %4686 = vrsqrt.f32 %v3436_v23  ;;  %v3441_v10 = vadd.f32 1e-16, %v3388_v46  ;;  %v3527_v43 = vmin.f32 %v3495_v44, 1.0  ;;  %v3037_v46 = vadd.f32 1.0, %v4653_v50 }
 0x645   : > { %v4669_v25 = vpop.eup %4668  ;;  %4688 = vpow2.f32 %v4018_v31  ;;  %v3390_v2 = vpop.xlane.xlu1 %3389  ;;  %3571 = vperm.xlu1 %4307, %v3529_v60   ;;  %v3496_v21 = vmul.f32 %v4667_v62, %v3112_v12  ;;  %v3118_v12 = vmul.f32 10.0, %v6804_v32 }
 0x646   : > { %v6838_v27 = vpop.eup %4670  ;;  %4690 = vrsqrt.f32 %v3441_v10  ;;  %v3442_v45 = vadd.f32 1e-16, %v3390_v2  ;;  %3561 = vperm.xlu0 %4306, %v3527_v43   ;;  %v3498_v39 = vmul.f32 %v4669_v25, %v3114_v19  ;;  %v4020_v10 = vmul.f32 -1.442695, %v2914_v6 }
 0x647   : > { %v6840_v42 = vpop.eup %4672  ;;  %4692 = vrcp.f32 %v3034_v9  ;;  %v3384_v41 = vpop.xlane.xlu0 %3383  ;;  %v3528_v31 = vmin.f32 %v3496_v21, 1.0  ;;  %v3115_v9 = vmul.f32 10.0, %v6788_v15  ;;  %v2917_v43 = vadd.f32 %v6738_v54, %v6562_v38 }
 0x648   : > { %v4675_v16 = vpop.eup %4674  ;;  %4694 = vrsqrt.f32 %v3442_v45  ;;  %v3439_v28 = vadd.f32 1e-16, %v3384_v41  ;;  %v3530_v23 = vmin.f32 %v3498_v39, 1.0  ;;  %v3036_v15 = vadd.f32 1.0, %v6826_v55 }
 0x649   : > { %v6845_v44 = vpop.eup %4676  ;;  %4696 = vpow2.f32 %v4021_v30  ;;  %v3386_v60 = vpop.xlane.xlu1 %3385  ;;  %3566 = vperm.xlu1 %4307, %v3528_v31   ;;  %v3501_v62 = vmul.f32 %v4675_v16, %v3117_v40  ;;  %v3116_v30 = vmul.f32 10.0, %v6798_v7  ;;  %v3121_v38 = vmul.f32 10.0, %v6806_v20 }
 0x64a   : > { %v4679_v29 = vpop.eup %4678  ;;  %4698 = vrsqrt.f32 %v3439_v28  ;;  %v3440_v51 = vadd.f32 1e-16, %v3386_v60  ;;  %3576 = vperm.xlu0 %4306, %v3530_v23   ;;  %v4023_v7 = vmul.f32 -1.442695, %v2917_v43  ;;  %v3122_v55 = vmul.f32 10.0, %v6814_v3 }
 0x64b   : > { %v6849_v19 = vpop.eup %4680  ;;  %v3396_v25 = vpop.xlane.xlu0 %3395  ;;  %v3533_v2 = vmin.f32 %v3501_v62, 1.0  ;;  %v3502_v32 = vmul.f32 %v4679_v29, %v3118_v12  ;;  %v2916_v60 = vadd.f32 %v6738_v54, %v6554_v24  ;;  %v3039_v20 = vadd.f32 1.0, %v6834_v11 }
 0x64c   : > { %v4683_v50 = vpop.eup %4682  ;;  %4700 = vrsqrt.f32 %v3440_v51  ;;  %v3445_v21 = vadd.f32 1e-16, %v3396_v25  ;;  %v3119_v3 = vmul.f32 10.0, %v6800_v59 }
 0x64d   : > { %v6854_v45 = vpop.eup %4684  ;;  %4702 = vrcp.f32 %v3037_v46  ;;  %v3398_v39 = vpop.xlane.xlu1 %3397  ;;  %3591 = vperm.xlu1 %4307, %v3533_v2   ;;  %v3534_v40 = vmin.f32 %v3502_v32, 1.0  ;;  %v3499_v6 = vmul.f32 %v4683_v50, %v3115_v9 }
 0x64e   : > { %v4687_v41 = vpop.eup %4686  ;;  %4704 = vrsqrt.f32 %v3445_v21  ;;  %v3446_v31 = vadd.f32 1e-16, %v3398_v39  ;;  %v3120_v21 = vmul.f32 10.0, %v6808_v0  ;;  %v2918_v0 = vadd.f32 %v6738_v54, %v6558_v63 }
 0x64f   : > { %v6858_v16 = vpop.eup %4688  ;;  %4706 = vpow2.f32 %v4020_v10  ;;  %3596 = vperm.xlu0 %4306, %v3534_v40   ;;  %v3392_v28 = vpop.xlane.xlu0 %3391  ;;  %v3531_v23 = vmin.f32 %v3499_v6, 1.0  ;;  %v3500_v12 = vmul.f32 %v4687_v41, %v3116_v30  ;;  %v3123_v63 = vmul.f32 10.0, %v6812_v49 }
 0x650   : > { %v4691_v46 = vpop.eup %4690  ;;  %4708 = vrsqrt.f32 %v3446_v31  ;;  %v3443_v62 = vadd.f32 1e-16, %v3392_v28 }
 0x651   : > { %v6863_v29 = vpop.eup %4692  ;;  %4710 = vrcp.f32 %v3036_v15  ;;  %v3394_v9 = vpop.xlane.xlu1 %3393  ;;  %3581 = vperm.xlu1 %4307, %v3531_v23   ;;  %v3532_v51 = vmin.f32 %v3500_v12, 1.0  ;;  %v3505_v10 = vmul.f32 %v4691_v46, %v3121_v38  ;;  %v4022_v15 = vmul.f32 -1.442695, %v2916_v60 }
 0x652   : > { %v4695_v43 = vpop.eup %4694  ;;  %4712 = vrsqrt.f32 %v3443_v62  ;;  %v3444_v25 = vadd.f32 1e-16, %v3394_v9  ;;  %v3125_v38 = vmul.f32 10.0, %v6818_v5  ;;  %v3041_v5 = vadd.f32 1.0, %v6849_v19 }
 0x653   : > { %v6866_v2 = vpop.eup %4696  ;;  %4714 = vpow2.f32 %v4023_v7  ;;  %3586 = vperm.xlu0 %4306, %v3532_v51   ;;  %v3404_v24 = vpop.xlane.xlu0 %3403  ;;  %v3537_v32 = vmin.f32 %v3505_v10, 1.0  ;;  %v3506_v50 = vmul.f32 %v4695_v43, %v3122_v55  ;;  %v3038_v7 = vadd.f32 1.0, %v6840_v42 }
 0x654   : > { %v4699_v30 = vpop.eup %4698  ;;  %4716 = vrsqrt.f32 %v3444_v25  ;;  %v3449_v11 = vadd.f32 1e-16, %v3404_v24  ;;  %v3126_v55 = vmul.f32 10.0, %v6832_v26  ;;  %v4024_v43 = vmul.f32 -1.442695, %v2918_v0 }
 0x655   : > { %4718 = vrcp.f32 %v3039_v20  ;;  %v3406_v39 = vpop.xlane.xlu1 %3405  ;;  %3611 = vperm.xlu1 %4307, %v3537_v32   ;;  %v3538_v40 = vmin.f32 %v3506_v50, 1.0  ;;  %v3503_v6 = vmul.f32 %v4699_v30, %v3119_v3  ;;  %v3124_v50 = vmul.f32 10.0, %v6820_v56 }
 0x656   : > { %v4701_v41 = vpop.eup %4700  ;;  %4720 = vrsqrt.f32 %v3449_v11  ;;  %v3450_v59 = vadd.f32 1e-16, %v3406_v39  ;;  %v3130_v0 = vmul.f32 10.0, %v6863_v29 }
 0x657   : > { %v6871_v31 = vpop.eup %4702  ;;  %3616 = vperm.xlu0 %4306, %v3538_v40   ;;  %v3400_v28 = vpop.xlane.xlu0 %3399  ;;  %v3535_v23 = vmin.f32 %v3503_v6, 1.0  ;;  %v3504_v12 = vmul.f32 %v4701_v41, %v3120_v21 }
 0x658   : > { %v4705_v46 = vpop.eup %4704  ;;  %4722 = vrsqrt.f32 %v3450_v59  ;;  %v3447_v60 = vadd.f32 1e-16, %v3400_v28  ;;  %v3040_v28 = vadd.f32 1.0, %v6858_v16  ;;  %v3128_v16 = vmul.f32 10.0, %v6845_v44 }
 0x659   : > { %v4707_v62 = vpop.eup %4706  ;;  %4724 = vpow2.f32 %v4022_v15  ;;  %v3402_v20 = vpop.xlane.xlu1 %3401  ;;  %3601 = vperm.xlu1 %4307, %v3535_v23   ;;  %v3536_v9 = vmin.f32 %v3504_v12, 1.0  ;;  %v3509_v42 = vmul.f32 %v4705_v46, %v3125_v38  ;;  %v3129_v15 = vmul.f32 10.0, %v6838_v27 }
 0x65a   : > { %v4709_v51 = vpop.eup %4708  ;;  %4726 = vrsqrt.f32 %v3447_v60  ;;  %v3448_v54 = vadd.f32 1e-16, %v3402_v20  ;;  %v3042_v6 = vadd.f32 1.0, %v4707_v62  ;;  %v3127_v62 = vmul.f32 10.0, %v6824_v37 }
 0x65b   : > { %v6879_v10 = vpop.eup %4710  ;;  %4728 = vrcp.f32 %v3038_v7  ;;  %3606 = vperm.xlu0 %4306, %v3536_v9   ;;  %v3412_v26 = vpop.xlane.xlu0 %3411  ;;  %v3541_v25 = vmin.f32 %v3509_v42, 1.0  ;;  %v3510_v3 = vmul.f32 %v4709_v51, %v3126_v55 }
 0x65c   : > { %v4713_v24 = vpop.eup %4712  ;;  %4730 = vrsqrt.f32 %v3448_v54  ;;  %v3453_v19 = vadd.f32 1e-16, %v3412_v26 }
 0x65d   : > { %v4715_v32 = vpop.eup %4714  ;;  %4732 = vrcp.f32 %v3041_v5  ;;  %v3414_v30 = vpop.xlane.xlu1 %3413  ;;  %3631 = vperm.xlu1 %4307, %v3541_v25   ;;  %v3542_v49 = vmin.f32 %v3510_v3, 1.0  ;;  %v3507_v21 = vmul.f32 %v4713_v24, %v3123_v63  ;;  %v3133_v3 = vmul.f32 10.0, %v6871_v31 }
 0x65e   : > { %v4717_v11 = vpop.eup %4716  ;;  %4734 = vrsqrt.f32 %v3453_v19  ;;  %v3454_v39 = vadd.f32 1e-16, %v3414_v30  ;;  %v3043_v24 = vadd.f32 1.0, %v6866_v2  ;;  %v3131_v2 = vmul.f32 10.0, %v6854_v45 }
 0x65f   : > { %v6883_v40 = vpop.eup %4718  ;;  %4736 = vpow2.f32 %v4024_v43  ;;  %3636 = vperm.xlu0 %4306, %v3542_v49   ;;  %v3408_v41 = vpop.xlane.xlu0 %3407  ;;  %v3539_v38 = vmin.f32 %v3507_v21, 1.0  ;;  %v3508_v59 = vmul.f32 %v4717_v11, %v3124_v50 }
 0x660   : > { %v4721_v7 = vpop.eup %4720  ;;  %4738 = vrsqrt.f32 %v3454_v39  ;;  %v3451_v56 = vadd.f32 1e-16, %v3408_v41 }
 0x661   : > { %v3410_v23 = vpop.xlane.xlu1 %3409  ;;  %3621 = vperm.xlu1 %4307, %v3539_v38   ;;  %v3540_v27 = vmin.f32 %v3508_v59, 1.0  ;;  %v3513_v12 = vmul.f32 %v4721_v7, %v3129_v15  ;;  %v3045_v15 = vadd.f32 1.0, %v4715_v32 }
 0x662   : > { %v4723_v46 = vpop.eup %4722  ;;  %4740 = vrsqrt.f32 %v3451_v56  ;;  %v3452_v55 = vadd.f32 1e-16, %v3410_v23  ;;  %v3132_v23 = vmul.f32 10.0, %v6879_v10 }
 0x663   : > { %v4725_v60 = vpop.eup %4724  ;;  %4742 = vrcp.f32 %v3042_v6  ;;  %3626 = vperm.xlu0 %4306, %v3540_v27   ;;  %v3420_v5 = vpop.xlane.xlu0 %3419  ;;  %v3545_v20 = vmin.f32 %v3513_v12, 1.0  ;;  %v3514_v9 = vmul.f32 %v4723_v46, %v3130_v0 }
 0x664   : > { %v4727_v42 = vpop.eup %4726  ;;  %4744 = vrsqrt.f32 %v3452_v55  ;;  %v3457_v29 = vadd.f32 1e-16, %v3420_v5  ;;  %v3044_v59 = vadd.f32 1.0, %v4725_v60 }
 0x665   : > { %v4729_v51 = vpop.eup %4728  ;;  %4746 = vrcp.f32 %v3040_v28  ;;  %v3422_v63 = vpop.xlane.xlu1 %3421  ;;  %3651 = vperm.xlu1 %4307, %v3545_v20   ;;  %v3546_v54 = vmin.f32 %v3514_v9, 1.0  ;;  %v3511_v43 = vmul.f32 %v4727_v42, %v3127_v62 }
 0x666   : > { %v4731_v26 = vpop.eup %4730  ;;  %4748 = vrsqrt.f32 %v3457_v29  ;;  %v3458_v25 = vadd.f32 1e-16, %v3422_v63  ;;  %v3134_v11 = vmul.f32 10.0, %v4729_v51 }
 0x667   : > { %v4733_v37 = vpop.eup %4732  ;;  %3656 = vperm.xlu0 %4306, %v3546_v54   ;;  %v3416_v19 = vpop.xlane.xlu0 %3415  ;;  %v3543_v50 = vmin.f32 %v3511_v43, 1.0  ;;  %v3512_v30 = vmul.f32 %v4731_v26, %v3128_v16 }
 0x668   : > { %v4735_v49 = vpop.eup %4734  ;;  %4750 = vrsqrt.f32 %v3458_v25  ;;  %v3455_v44 = vadd.f32 1e-16, %v3416_v19  ;;  %v3137_v5 = vmul.f32 10.0, %v4733_v37 }
 0x669   : > { %v4737_v21 = vpop.eup %4736  ;;  %v3418_v39 = vpop.xlane.xlu1 %3417  ;;  %3641 = vperm.xlu1 %4307, %v3543_v50   ;;  %v3544_v6 = vmin.f32 %v3512_v30, 1.0  ;;  %v3517_v41 = vmul.f32 %v4735_v49, %v3133_v3  ;;  %v3135_v3 = vmul.f32 10.0, %v6883_v40 }
 0x66a   : > { %v4739_v38 = vpop.eup %4738  ;;  %4752 = vrsqrt.f32 %v3455_v44  ;;  %v3456_v31 = vadd.f32 1e-16, %v3418_v39  ;;  %v3046_v27 = vadd.f32 1.0, %v4737_v21 }
 0x66b   : > { %4754 = vrcp.f32 %v3043_v24  ;;  %3646 = vperm.xlu0 %4306, %v3544_v6   ;;  %v3428_v7 = vpop.xlane.xlu0 %3427  ;;  %v3549_v56 = vmin.f32 %v3517_v41, 1.0  ;;  %v3518_v0 = vmul.f32 %v4739_v38, %v3134_v11 }
 0x66c   : > { %v4741_v28 = vpop.eup %4740  ;;  %4756 = vrsqrt.f32 %v3456_v31  ;;  %v3461_v12 = vadd.f32 1e-16, %v3428_v7 }
 0x66d   : > { %v4743_v32 = vpop.eup %4742  ;;  %4758 = vrcp.f32 %v3045_v15  ;;  %v3430_v46 = vpop.xlane.xlu1 %3429  ;;  %3671 = vperm.xlu1 %4307, %v3549_v56   ;;  %v3550_v55 = vmin.f32 %v3518_v0, 1.0  ;;  %v3515_v60 = vmul.f32 %v4741_v28, %v3131_v2 }
 0x66e   : > { %v4745_v62 = vpop.eup %4744  ;;  %4760 = vrcp.f32 %v3044_v59  ;;  %v3462_v20 = vadd.f32 1e-16, %v3430_v46  ;;  %v3138_v16 = vmul.f32 10.0, %v4743_v32 }
 0x66f   : > { %v4747_v45 = vpop.eup %4746  ;;  %3676 = vperm.xlu0 %4306, %v3550_v55   ;;  %v3424_v9 = vpop.xlane.xlu0 %3423  ;;  %v3547_v42 = vmin.f32 %v3515_v60, 1.0  ;;  %v3516_v29 = vmul.f32 %v4745_v62, %v3132_v23  ;;  %4762 = vrcp.f32 %v3046_v27 }
 0x670   : > { %v4749_v51 = vpop.eup %4748  ;;  %v3459_v10 = vadd.f32 1e-16, %v3424_v9  ;;  %4764 = vrsqrt.f32 %v3461_v12  ;;  %v3136_v30 = vmul.f32 10.0, %v4747_v45 }
 0x671   : > { %v3426_v63 = vpop.xlane.xlu1 %3425  ;;  %3661 = vperm.xlu1 %4307, %v3547_v42   ;;  %v3548_v54 = vmin.f32 %v3516_v29, 1.0  ;;  %v3521_v43 = vmul.f32 %v4749_v51, %v3137_v5 }
 0x672   : > { %v4751_v26 = vpop.eup %4750  ;;  %4766 = vrsqrt.f32 %v3459_v10  ;;  %v3460_v25 = vadd.f32 1e-16, %v3426_v63 }
 0x673   : > { %4768 = vrsqrt.f32 %v3462_v20  ;;  %3666 = vperm.xlu0 %4306, %v3548_v54   ;;  %v3553_v37 = vmin.f32 %v3521_v43, 1.0  ;;  %v3522_v24 = vmul.f32 %v4751_v26, %v3138_v16 }
 0x674   : > { %v4753_v19 = vpop.eup %4752  ;;  %4770 = vrsqrt.f32 %v3460_v25 }
 0x675   : > { %v4755_v50 = vpop.eup %4754  ;;  %3691 = vperm.xlu1 %4307, %v3553_v37   ;;  %v3554_v49 = vmin.f32 %v3522_v24, 1.0  ;;  %v3519_v44 = vmul.f32 %v4753_v19, %v3135_v3  ;;  %v7257_v3 = vld [vmem:[#allocation16_spill] sm:$0xff]  ;;  %v7258_v24 = vld [vmem:[#allocation17_spill] sm:$0xff] }
 0x676   : > { %v4757_v21 = vpop.eup %4756  ;;  %v3139_v59 = vmul.f32 10.0, %v4755_v50  ;;  %v7259_v50 = vld [vmem:[#allocation18_spill] sm:$0xff] }
 0x677   : > { %v4759_v11 = vpop.eup %4758  ;;  %3696 = vperm.xlu0 %4306, %v3554_v49   ;;  %v3551_v15 = vmin.f32 %v3519_v44, 1.0  ;;  %v3520_v39 = vmul.f32 %v4757_v21, %v3136_v30  ;;  %v7260_v49 = vld [vmem:[#allocation19_spill] sm:$0xff]  ;;  %v7261_v21 = vld [vmem:[#allocation21_spill] sm:$0xff] }
 0x678   : > { %v4761_v6 = vpop.eup %4760  ;;  %v3141_v7 = vmul.f32 10.0, %v4759_v11 }
 0x679   : > { %3681 = vperm.xlu1 %4307, %v3551_v15   ;;  %v3552_v41 = vmin.f32 %v3520_v39, 1.0  ;;  %v4763_v40 = vpop.eup %4762  ;;  %v3140_v56 = vmul.f32 10.0, %v4761_v6 }
 0x67a   : > { %v4765_v38 = vpop.eup %4764  ;;  %v3142_v23 = vmul.f32 10.0, %v4763_v40 }
 0x67b   : > { %3686 = vperm.xlu0 %4306, %v3552_v41   ;;  %v3525_v12 = vmul.f32 %v4765_v38, %v3141_v7  ;;  %v7262_v41 = vld [vmem:[#allocation20_spill] sm:$0xff] }
 0x67c   : > { %v4767_v31 = vpop.eup %4766 }
 0x67d   : > { %v4769_v2 = vpop.eup %4768  ;;  %v3523_v0 = vmul.f32 %v4767_v31, %v3139_v59  ;;  %v3557_v60 = vmin.f32 %v3525_v12, 1.0 }
 0x67e   : > { %v4771_v28 = vpop.eup %4770  ;;  %v3526_v55 = vmul.f32 %v4769_v2, %v3142_v23  ;;  %v7263_v2 = vld [vmem:[#allocation23_spill] sm:$0xff]  ;;  %v7265_v23 = vld [vmem:[#allocation25_spill] sm:$0xff] }
 0x67f   : > { %v3555_v27 = vmin.f32 %v3523_v0, 1.0  ;;  %v3524_v32 = vmul.f32 %v4771_v28, %v3140_v56  ;;  %v7264_v0 = vld [vmem:[#allocation22_spill] sm:$0xff] }
 0x680   : > { %v3558_v62 = vmin.f32 %v3526_v55, 1.0 }
 0x681   : > { %3701 = vperm.xlu1 %4307, %v3555_v27   ;;  %v3556_v46 = vmin.f32 %v3524_v32, 1.0 }
 0x683   : > { %3706 = vperm.xlu0 %4306, %v3556_v46   ;;  %v7266_v46 = vld [vmem:[#allocation26_spill] sm:$0xff] }
 0x685   : > { %3711 = vperm.xlu1 %4307, %v3557_v60  }
 0x687   : > { %3716 = vperm.xlu0 %4306, %v3558_v62   ;;  %v7267_v62 = vld [vmem:[#allocation24_spill] sm:$0xff] }
 0x6c4   : > { %v3572_v45 = vpop.permute.xlu1 %3571 }
 0x6c5   : > { %v3721_v5 = vmul.f32 %v3572_v45, %v6573_v17  ;;  %v3562_v20 = vpop.permute.xlu0 %3561 }
 0x6c6   : > { %v3719_v9 = vmul.f32 %v3562_v20, %v6576_v48  ;;  %v7268_v20 = vld [vmem:[#allocation27_spill] sm:$0xff] }
 0x6c7   : > { %3753 = vst [vmem:[%s6898_s22 + $0x10] sm:$0xff] %v3721_v5 }
 0x6c8   : > { %3751 = vst [vmem:[%s6898_s22] sm:$0xff] %v3719_v9  ;;  %v3567_v42 = vpop.permute.xlu1 %3566 }
 0x6c9   : > { %v3720_v29 = vmul.f32 %v3567_v42, %v6585_v22  ;;  %v3577_v51 = vpop.permute.xlu0 %3576 }
 0x6ca   : > { %v3722_v17 = vmul.f32 %v3577_v51, %v6583_v18  ;;  %v7269_v51 = vld [vmem:[#allocation29_spill] sm:$0xff] }
 0x6cb   : > { %3752 = vst [vmem:[%s6898_s22 + $0x8] sm:$0xff] %v3720_v29 }
 0x6cc   : > { %3754 = vst [vmem:[%s6898_s22 + $0x18] sm:$0xff] %v3722_v17  ;;  %v3592_v48 = vpop.permute.xlu1 %3591 }
 0x6cd   : > { %v3725_v10 = vmul.f32 %v3592_v48, %v6595_v34 }
 0x6ce   : > { %v3597_v16 = vpop.permute.xlu0 %3596 }
 0x6cf   : > { %3757 = vst [vmem:[%s6898_s22 + $0x30] sm:$0xff] %v3725_v10  ;;  %v3726_v63 = vmul.f32 %v3597_v16, %v6601_v8 }
 0x6d0   : > { %v3582_v54 = vpop.permute.xlu1 %3581 }
 0x6d1   : > { %3758 = vst [vmem:[%s6898_s22 + $0x38] sm:$0xff] %v3726_v63  ;;  %v3723_v22 = vmul.f32 %v3582_v54, %v6599_v14 }
 0x6d2   : > { %v3587_v43 = vpop.permute.xlu0 %3586 }
 0x6d3   : > { %3755 = vst [vmem:[%s6898_s22 + $0x20] sm:$0xff] %v3723_v22  ;;  %v3724_v18 = vmul.f32 %v3587_v43, %v6605_v61 }
 0x6d4   : > { %v3612_v26 = vpop.permute.xlu1 %3611 }
 0x6d5   : > { %3756 = vst [vmem:[%s6898_s22 + $0x28] sm:$0xff] %v3724_v18  ;;  %v3729_v34 = vmul.f32 %v3612_v26, %v6615_v1 }
 0x6d6   : > { %v3617_v25 = vpop.permute.xlu0 %3616 }
 0x6d7   : > { %3761 = vst [vmem:[%s6898_s22 + $0x50] sm:$0xff] %v3729_v34  ;;  %v3730_v8 = vmul.f32 %v3617_v25, %v7257_v3 }
 0x6d8   : > { %v3602_v37 = vpop.permute.xlu1 %3601 }
 0x6d9   : > { %3762 = vst [vmem:[%s6898_s22 + $0x58] sm:$0xff] %v3730_v8  ;;  %v3727_v14 = vmul.f32 %v3602_v37, %v7258_v24 }
 0x6da   : > { %v3607_v19 = vpop.permute.xlu0 %3606 }
 0x6db   : > { %3759 = vst [vmem:[%s6898_s22 + $0x40] sm:$0xff] %v3727_v14  ;;  %v3728_v61 = vmul.f32 %v3607_v19, %v7259_v50 }
 0x6dc   : > { %v3632_v30 = vpop.permute.xlu1 %3631 }
 0x6dd   : > { %3760 = vst [vmem:[%s6898_s22 + $0x48] sm:$0xff] %v3728_v61  ;;  %v3733_v1 = vmul.f32 %v3632_v30, %v7260_v49 }
 0x6de   : > { %v3637_v44 = vpop.permute.xlu0 %3636 }
 0x6df   : > { %3765 = vst [vmem:[%s6898_s22 + $0x70] sm:$0xff] %v3733_v1  ;;  %v3734_v11 = vmul.f32 %v3637_v44, %v7261_v21 }
 0x6e0   : > { %v3622_v15 = vpop.permute.xlu1 %3621 }
 0x6e1   : > { %3766 = vst [vmem:[%s6898_s22 + $0x78] sm:$0xff] %v3734_v11  ;;  %v3731_v39 = vmul.f32 %v3622_v15, %v6642_v33 }
 0x6e2   : > { %v3627_v6 = vpop.permute.xlu0 %3626 }
 0x6e3   : > { %3763 = vst [vmem:[%s6898_s22 + $0x60] sm:$0xff] %v3731_v39  ;;  %v3732_v40 = vmul.f32 %v3627_v6, %v7262_v41 }
 0x6e4   : > { %v3652_v38 = vpop.permute.xlu1 %3651 }
 0x6e5   : > { %3764 = vst [vmem:[%s6898_s22 + $0x68] sm:$0xff] %v3732_v40  ;;  %v3737_v59 = vmul.f32 %v3652_v38, %v6657_v4 }
 0x6e6   : > { %v3657_v31 = vpop.permute.xlu0 %3656 }
 0x6e7   : > { %3769 = vst [vmem:[%s6898_s22 + $0x90] sm:$0xff] %v3737_v59  ;;  %v3738_v7 = vmul.f32 %v3657_v31, %v7263_v2 }
 0x6e8   : > { %v3642_v56 = vpop.permute.xlu1 %3641 }
 0x6e9   : > { %3770 = vst [vmem:[%s6898_s22 + $0x98] sm:$0xff] %v3738_v7  ;;  %v3735_v33 = vmul.f32 %v3642_v56, %v7264_v0 }
 0x6ea   : > { %v3647_v28 = vpop.permute.xlu0 %3646 }
 0x6eb   : > { %3767 = vst [vmem:[%s6898_s22 + $0x80] sm:$0xff] %v3735_v33  ;;  %v3736_v27 = vmul.f32 %v3647_v28, %v7265_v23 }
 0x6ec   : > { %v3672_v32 = vpop.permute.xlu1 %3671 }
 0x6ed   : > { %3768 = vst [vmem:[%s6898_s22 + $0x88] sm:$0xff] %v3736_v27  ;;  %v3741_v4 = vmul.f32 %v3672_v32, %v6678_v57 }
 0x6ee   : > { %v3677_v12 = vpop.permute.xlu0 %3676 }
 0x6ef   : > { %3773 = vst [vmem:[%s6898_s22 + $0xb0] sm:$0xff] %v3741_v4  ;;  %v3742_v55 = vmul.f32 %v3677_v12, %v7266_v46 }
 0x6f0   : > { %v3662_v60 = vpop.permute.xlu1 %3661 }
 0x6f1   : > { %3774 = vst [vmem:[%s6898_s22 + $0xb8] sm:$0xff] %v3742_v55  ;;  %v3739_v45 = vmul.f32 %v3662_v60, %v7267_v62 }
 0x6f2   : > { %v3667_v5 = vpop.permute.xlu0 %3666 }
 0x6f3   : > { %3771 = vst [vmem:[%s6898_s22 + $0xa0] sm:$0xff] %v3739_v45  ;;  %v3740_v9 = vmul.f32 %v3667_v5, %v7268_v20 }
 0x6f4   : > { %v3692_v42 = vpop.permute.xlu1 %3691 }
 0x6f5   : > { %3772 = vst [vmem:[%s6898_s22 + $0xa8] sm:$0xff] %v3740_v9  ;;  %v3745_v57 = vmul.f32 %v3692_v42, %v6698_v52 }
 0x6f6   : > { %v3697_v29 = vpop.permute.xlu0 %3696 }
 0x6f7   : > { %3777 = vst [vmem:[%s6898_s22 + $0xd0] sm:$0xff] %v3745_v57  ;;  %v3746_v17 = vmul.f32 %v3697_v29, %v7269_v51 }
 0x6f8   : > { %v3682_v48 = vpop.permute.xlu1 %3681 }
 0x6f9   : > { %3778 = vst [vmem:[%s6898_s22 + $0xd8] sm:$0xff] %v3746_v17  ;;  %v3743_v10 = vmul.f32 %v3682_v48, %v6704_v13 }
 0x6fa   : > { %v3687_v16 = vpop.permute.xlu0 %3686 }
 0x6fb   : > { %3775 = vst [vmem:[%s6898_s22 + $0xc0] sm:$0xff] %v3743_v10  ;;  %v3744_v63 = vmul.f32 %v3687_v16, %v6710_v47 }
 0x6fd   : > { %3776 = vst [vmem:[%s6898_s22 + $0xc8] sm:$0xff] %v3744_v63 }
 0x700   : > { %v3702_v54 = vpop.permute.xlu1 %3701 }
 0x701   : > { %v3747_v52 = vmul.f32 %v3702_v54, %v6724_v35 }
 0x702   : > { %v3707_v22 = vpop.permute.xlu0 %3706 }
 0x703   : > { %3779 = vst [vmem:[%s6898_s22 + $0xe0] sm:$0xff] %v3747_v52  ;;  %v3748_v43 = vmul.f32 %v3707_v22, %v6730_v58 }
 0x704   : > { %v3712_v18 = vpop.permute.xlu1 %3711 }
 0x705   : > { %3780 = vst [vmem:[%s6898_s22 + $0xe8] sm:$0xff] %v3748_v43  ;;  %v3749_v13 = vmul.f32 %v3712_v18, %v6718_v36 }
 0x706   : > { %v3717_v26 = vpop.permute.xlu0 %3716 }
 0x707   : > { %3781 = vst [vmem:[%s6898_s22 + $0xf0] sm:$0xff] %v3749_v13  ;;  %v3750_v47 = vmul.f32 %v3717_v26, %v6726_v53 }
 0x709   : > { %3782 = vst [vmem:[%s6898_s22 + $0xf8] sm:$0xff] %v3750_v47 }
 0x70a   : > { %4872 = shalt.err (!%p4869_p2)
}
 0x70b   : > { %s4873_s19 = scalar_lea.hbm %s6964_s17, 4096  ;;  %s4877_s18 = scalar_lea.hbm %s7270_s28, 8192 }
 0x70c   : > { %p4874_p13 = scmp.ne.s32.totalorder %s6964_s17, %s4873_s19  ;;  %p4878_p4 = scmp.lt.u32.totalorder %s6964_s17, %s7270_s28 }
 0x70d   : > { %p4879_p5 = scmp.lt.u32.totalorder %s4877_s18, %s4873_s19  ;;  %p4881_p11 = scmp.lt.u32.totalorder %s4873_s19, %s6964_s17 }
 0x70e   : > { %p4875_p6 = pnand %p4874_p13, %p7271_p0 }
 0x70f   : > { %p4880_p8 = por %p4879_p5, %p4878_p4 }
 0x710   : > { %p4876_p10 = pneg %p4875_p6 }
 0x711   : > { %p4882_p1 = por %p4881_p11, %p4880_p8 }
 0x713   : > { %p4883_p3 = pnand %p4882_p1, %p4876_p10 }
 0x715   : > { %4886 = shalt.err (!%p4883_p3)
}
 0x716   : > { %s4940_s8 = smov 128   ;;  %s4941_s16 = smov 8  }
 0x717   : > { %4242 = dma.vmem_to_hbm [thread:$0]  (%p7271_p0), %s6966_s29, 4096, %s6964_s17, %s3784_s12, %s4940_s8, %s4940_s8, %s4941_s16  }
 0x718 PF: > { %s7272_s27 = sld [smem:[#allocation14_spill]]  ;;  %s7273_s22 = sld [smem:[#allocation15_spill]] }
 0x719   : > { %p7275_p9 = scmp.ge.s32.totalorder %s4929_s25, 2 }
 0x71e   : > { %s3812_s14 = sand.u32 1, %s7272_s27   ;;  %p7274_p7 = scmp.ne.s32.totalorder %s7273_s22, 0 }
 0x71f   : > { %s3813_s19 = scalar_lea.sflag [#allocation6], %s3812_s14 }
 0x720   : > { %p4256_p12 = pnand %p7275_p9, %p7274_p7 }
 0x722   : > { %4912 = dma.done.wait (!%p4256_p12), %s3813_s19, 4096  }
 0x723   : > { %4914 = vsyncadd (!%p4256_p12), %s3813_s19, 4294963200  ;;  %p33_p2 = scmp.ge.s32.totalorder %s5138_s15, 4   ;;  %s7276_s22 = smov %s4921_s23 }
 0x724   : > { %s7277_s23 = smov %s4925_s24  ;;  %s7278_s24 = smov %s5154_s21 }
 0x725   : > { %s7279_s25 = smov %s5138_s15  ;;  %35 = sbr.rel (!%p33_p2) target bundleno = 10 (0xa), region = 133 }
 0x72c   :  { %3818 = vsyncpa [#allocation5], 1 }
 0x72d   :  { %3820 = vsyncpa [#allocation5 + $0x1], 1 }
 0x72e   :  { %3821 = vsyncpa [#allocation8], 1 }
 0x72f   :  { %3822 = vsyncpa [#allocation6], 1 }
 0x730   :  { %3824 = vsyncpa [#allocation6 + $0x1], 1 }

</bundles_post_ra>
